<compile_context>
chip_gen: v7x
topology: tpu7x:2x2x1
jax: 0.10.0
libtpu: 0.0.40
codegen_flags: <defaults>
</compile_context>

<pallas_src>
import math
from functools import partial

import jax
import jax.numpy as jnp
from jax.experimental import pallas as pl
from jax.experimental.pallas import tpu as pltpu


# ------------------------------ kernel helpers -------------------------------

def _layernorm(x, g, b, eps=1e-5):
    mu = jnp.mean(x, axis=-1, keepdims=True)
    var = jnp.mean((x - mu) ** 2, axis=-1, keepdims=True)
    return (x - mu) * jax.lax.rsqrt(var + eps) * g + b


def _gelu_exact(x):
    # PyTorch nn.GELU() default = exact erf formulation.
    return 0.5 * x * (1.0 + jax.lax.erf(x * (1.0 / math.sqrt(2.0))))


# ------------------------------- fused kernel --------------------------------

def _vit_fused_kernel(
    patches_ref, pw_ref, pb_ref,          # patch embedding
    wqkv_ref, bqkv_ref,                   # (L, D, 3D) bf16, (L, 1, 3D) f32
    wo_ref,                               # (L, D, D)  bf16
    w1_ref, w2_ref,                       # (L, D, Dh), (L, Dh, D) bf16
    vecs_ref,                             # (L, 6, D) f32: ln1_g, ln1_b, bo, ln2_g, ln2_b, b2
    b1_ref,                               # (L, 1, Dh) f32
    headmask_ref,                         # (H*BN, D) f32 0/1 per-head column mask
    amask_ref,                            # (H*BN, BN) f32 additive block-diag batch mask
    o_ref,                                # (BN, D) f32 output
    *, num_heads,
):
    bn, d = o_ref.shape
    num_layers = wqkv_ref.shape[0]
    hd = d // num_heads

    # ---- patch embedding (Conv2d as matmul on pre-unfolded patches) ----
    x = (jnp.dot(patches_ref[...], pw_ref[...],
                 preferred_element_type=jnp.float32) + pb_ref[...])    # (BN, D) f32

    # ---- layer-invariant constants, hoisted above the layer loop ----
    hm = headmask_ref[...]                       # 0/1 head-column mask (H*BN, D)
    hm_scaled = hm * (1.0 / math.sqrt(hd))       # fold 1/sqrt(hd) into the q path
    am = amask_ref[...]                          # additive batch mask (H*BN, BN)

    for l in range(num_layers):                  # static unrolled layer loop
        vd = vecs_ref[l]                         # (6, D)
        ln1_g, ln1_b = vd[0:1], vd[1:2]
        bo = vd[2:3]
        ln2_g, ln2_b = vd[3:4], vd[4:5]
        b2 = vd[5:6]
        bqkv = bqkv_ref[l]                       # (1, 3D)
        b1 = b1_ref[l]                           # (1, Dh)

        # ---------------- attention block (pre-norm + residual) ----------------
        h = x
        xn = _layernorm(x, ln1_g, ln1_b)

        qkv = jnp.dot(xn.astype(jnp.bfloat16), wqkv_ref[l],
                      preferred_element_type=jnp.float32) + bqkv       # (BN, 3D)
        q = qkv[:, 0:d]
        k = qkv[:, d:2 * d]
        v = qkv[:, 2 * d:3 * d]

        # heads on the sublane axis: replicate q to (H*BN, D) and zero out the
        # columns not belonging to each row-block's head -> one 2D score matmul.
        q_rep = jnp.concatenate([q] * num_heads, axis=0) * hm_scaled   # (H*BN, D)
        s = jax.lax.dot_general(
            q_rep.astype(jnp.bfloat16), k.astype(jnp.bfloat16),
            (((1,), (1,)), ((), ())),
            preferred_element_type=jnp.float32)                        # (H*BN, BN)
        s = s + am                                                     # batch block-diag
        s = s - jnp.max(s, axis=-1, keepdims=True)
        e = jnp.exp(s)
        p = e * pl.reciprocal(jnp.sum(e, axis=-1, keepdims=True), approx=True)

        c = jnp.dot(p.astype(jnp.bfloat16), v.astype(jnp.bfloat16),
                    preferred_element_type=jnp.float32)                # (H*BN, D)
        c = c * hm                                  # keep only head h's columns per block
        attn = c[0:bn]                              # fold H row-blocks back to (BN, D)
        for hh in range(1, num_heads):
            attn = attn + c[hh * bn:(hh + 1) * bn]

        attn = jnp.dot(attn.astype(jnp.bfloat16), wo_ref[l],
                       preferred_element_type=jnp.float32) + bo
        x = attn + h

        # ------------------- MLP block (pre-norm + residual) -------------------
        h = x
        xn = _layernorm(x, ln2_g, ln2_b)
        y = jnp.dot(xn.astype(jnp.bfloat16), w1_ref[l],
                    preferred_element_type=jnp.float32) + b1
        y = _gelu_exact(y)
        y = jnp.dot(y.astype(jnp.bfloat16), w2_ref[l],
                    preferred_element_type=jnp.float32) + b2
        x = y + h

    o_ref[...] = x


# -------------------------------- JAX wrapper ---------------------------------

def vit_forward(x_nchw, params, patch_size, num_heads=4):
    B, C, H, W = x_nchw.shape
    P = patch_size
    D = params["patch_b"].shape[0]
    nH, nW = H // P, W // P
    N = nH * nW
    K = C * P * P
    BN = B * N
    layers = params["layers"]
    L = len(layers)
    Dh = layers[0]["w1"].shape[-1]
    hd = D // num_heads
    HB = num_heads * BN

    # Unfold NCHW into (B*N, K) with K ordered [c, ph, pw] (matches Conv2d
    # weight flattening).  Done in the wrapper (plain XLA), not in-kernel.
    patches = x_nchw.reshape(B, C, nH, P, nW, P)
    patches = jnp.transpose(patches, (0, 2, 4, 1, 3, 5)).reshape(BN, K)
    patches = patches.astype(jnp.bfloat16)

    pw = params["patch_w"].reshape(D, K).T.astype(jnp.bfloat16)        # (K, D)
    pb = params["patch_b"].reshape(1, D).astype(jnp.float32)

    # Stack per-layer weights (bf16 for the MXU) and pack small vectors.
    wqkv = jnp.stack([jnp.concatenate([lp["wq"], lp["wk"], lp["wv"]], axis=1)
                      for lp in layers]).astype(jnp.bfloat16)          # (L, D, 3D)
    bqkv = jnp.stack([jnp.concatenate([lp["bq"], lp["bk"], lp["bv"]])
                      for lp in layers]).reshape(L, 1, 3 * D).astype(jnp.float32)
    wo = jnp.stack([lp["wo"] for lp in layers]).astype(jnp.bfloat16)   # (L, D, D)
    w1 = jnp.stack([lp["w1"] for lp in layers]).astype(jnp.bfloat16)   # (L, D, Dh)
    w2 = jnp.stack([lp["w2"] for lp in layers]).astype(jnp.bfloat16)   # (L, Dh, D)
    vecs = jnp.stack([
        jnp.stack([lp["ln1_g"], lp["ln1_b"], lp["bo"],
                   lp["ln2_g"], lp["ln2_b"], lp["b2"]])
        for lp in layers
    ]).astype(jnp.float32)                                             # (L, 6, D)
    b1 = jnp.stack([lp["b1"] for lp in layers]).reshape(L, 1, Dh).astype(jnp.float32)

    # Layer-invariant masks, computed once here (hoisted out of the kernel loop).
    col_head = jnp.arange(D, dtype=jnp.int32) // hd
    row_head = jnp.arange(HB, dtype=jnp.int32) // BN
    headmask = (col_head[None, :] == row_head[:, None]).astype(jnp.float32)  # (H*BN, D)

    row_tok = jnp.arange(HB, dtype=jnp.int32) % BN
    col_tok = jnp.arange(BN, dtype=jnp.int32)
    amask = jnp.where((row_tok[:, None] // N) == (col_tok[None, :] // N),
                      0.0, -1e30).astype(jnp.float32)                        # (H*BN, BN)

    kernel = partial(_vit_fused_kernel, num_heads=num_heads)

    out = pl.pallas_call(
        kernel,
        out_shape=jax.ShapeDtypeStruct((BN, D), jnp.float32),
        in_specs=[pl.BlockSpec(memory_space=pltpu.MemorySpace.VMEM)] * 12,
        out_specs=pl.BlockSpec(memory_space=pltpu.MemorySpace.VMEM),
    )(patches, pw, pb, wqkv, bqkv, wo, w1, w2, vecs, b1, headmask, amask)

    return out.reshape(B, N, D)


# --------------------------- parameter construction ---------------------------

def init_params(key, patch_size, embed_dim, num_layers=5, split_ratio=3):
    D = embed_dim
    Dh = D * split_ratio

    def normal(k, shape, scale=0.02):
        return (scale * jax.random.normal(k, shape)).astype(jnp.float32)

    keys = jax.random.split(key, 2 + num_layers)
    params = {
        "patch_w": normal(keys[0], (D, 3, patch_size, patch_size)),
        "patch_b": normal(keys[1], (D,)),
        "layers": [],
    }
    for li in range(num_layers):
        lk = jax.random.split(keys[2 + li], 8)
        params["layers"].append({
            "ln1_g": jnp.ones((D,), jnp.float32),
            "ln1_b": jnp.zeros((D,), jnp.float32),
            "wq": normal(lk[0], (D, D)), "bq": jnp.zeros((D,), jnp.float32),
            "wk": normal(lk[1], (D, D)), "bk": jnp.zeros((D,), jnp.float32),
            "wv": normal(lk[2], (D, D)), "bv": jnp.zeros((D,), jnp.float32),
            "wo": normal(lk[3], (D, D)), "bo": jnp.zeros((D,), jnp.float32),
            "ln2_g": jnp.ones((D,), jnp.float32),
            "ln2_b": jnp.zeros((D,), jnp.float32),
            "w1": normal(lk[4], (D, Dh)), "b1": normal(lk[5], (Dh,)),
            "w2": normal(lk[6], (Dh, D)), "b2": normal(lk[7], (D,)),
        })
    return params


# ------------------------------------ main ------------------------------------

if __name__ == "__main__":
    PATCH = 4
    EMBED = 32
    B, C, H, W = 2, 3, 16, 16          # -> N = 16 patches, D = 32

    root = jax.random.PRNGKey(0)
    k_x, k_p = jax.random.split(root)
    x = jax.random.normal(k_x, (B, C, H, W), dtype=jnp.float32)
    params = init_params(k_p, PATCH, EMBED)

    out = vit_forward(x, params, PATCH, num_heads=4)
    out = jax.block_until_ready(out)
    assert out.shape == (B, (H // PATCH) * (W // PATCH), EMBED)
    assert bool(jnp.all(jnp.isfinite(out)))
    print("KERNEL_OK")
</pallas_src>

<mosaic_0001>
module attributes {stable_mosaic.version = 11 : i64} {
  func.func @_vit_fused_kernel(%arg0: memref<32x48xbf16, #tpu.memory_space<vmem>>, %arg1: memref<48x32xbf16, #tpu.memory_space<vmem>>, %arg2: memref<1x32xf32, #tpu.memory_space<vmem>>, %arg3: memref<5x32x96xbf16, #tpu.memory_space<vmem>>, %arg4: memref<5x1x96xf32, #tpu.memory_space<vmem>>, %arg5: memref<5x32x32xbf16, #tpu.memory_space<vmem>>, %arg6: memref<5x32x96xbf16, #tpu.memory_space<vmem>>, %arg7: memref<5x96x32xbf16, #tpu.memory_space<vmem>>, %arg8: memref<5x6x32xf32, #tpu.memory_space<vmem>>, %arg9: memref<5x1x96xf32, #tpu.memory_space<vmem>>, %arg10: memref<128x32xf32, #tpu.memory_space<vmem>>, %arg11: memref<128x32xf32, #tpu.memory_space<vmem>>, %arg12: memref<32x32xf32, #tpu.memory_space<vmem>>) attributes {dimension_semantics = [], scalar_prefetch = 0 : i64, scratch_operands = 0 : i64, tpu.core_type = #tpu.core_type<tc>} {
    %c0 = arith.constant 0 : index
    %c0_0 = arith.constant 0 : index
    %0 = vector.load %arg0[%c0, %c0_0] : memref<32x48xbf16, #tpu.memory_space<vmem>>, vector<32x48xbf16>
    %c0_1 = arith.constant 0 : index
    %c0_2 = arith.constant 0 : index
    %1 = vector.load %arg1[%c0_1, %c0_2] : memref<48x32xbf16, #tpu.memory_space<vmem>>, vector<48x32xbf16>
    %cst = arith.constant dense<0.000000e+00> : vector<32x32xf32>
    %2 = tpu.matmul %0, %1, %cst {dimension_numbers = #tpu.dot_dimension_numbers<[1], [0], [0], [1], [0, 0, 1, 1], [], []>} : vector<32x48xbf16>, vector<48x32xbf16>, vector<32x32xf32> -> vector<32x32xf32>
    %c0_3 = arith.constant 0 : index
    %c0_4 = arith.constant 0 : index
    %3 = vector.load %arg2[%c0_3, %c0_4] : memref<1x32xf32, #tpu.memory_space<vmem>>, vector<1x32xf32>
    %4 = vector.broadcast %3 : vector<1x32xf32> to vector<32x32xf32>
    %5 = arith.addf %2, %4 : vector<32x32xf32>
    %c0_5 = arith.constant 0 : index
    %c0_6 = arith.constant 0 : index
    %6 = vector.load %arg10[%c0_5, %c0_6] : memref<128x32xf32, #tpu.memory_space<vmem>>, vector<128x32xf32>
    %cst_7 = arith.constant 0.353553385 : f32
    %7 = vector.broadcast %cst_7 : f32 to vector<128x32xf32>
    %8 = arith.mulf %6, %7 : vector<128x32xf32>
    %c0_8 = arith.constant 0 : index
    %c0_9 = arith.constant 0 : index
    %9 = vector.load %arg11[%c0_8, %c0_9] : memref<128x32xf32, #tpu.memory_space<vmem>>, vector<128x32xf32>
    %c0_10 = arith.constant 0 : index
    %c0_11 = arith.constant 0 : index
    %c0_12 = arith.constant 0 : index
    %10 = vector.load %arg8[%c0_10, %c0_11, %c0_12] : memref<5x6x32xf32, #tpu.memory_space<vmem>>, vector<1x6x32xf32>
    %11 = vector.shape_cast %10 : vector<1x6x32xf32> to vector<6x32xf32>
    %12 = vector.extract_strided_slice %11 {offsets = [0, 0], sizes = [1, 32], strides = [1, 1]} : vector<6x32xf32> to vector<1x32xf32>
    %13 = vector.extract_strided_slice %11 {offsets = [1, 0], sizes = [1, 32], strides = [1, 1]} : vector<6x32xf32> to vector<1x32xf32>
    %14 = vector.extract_strided_slice %11 {offsets = [2, 0], sizes = [1, 32], strides = [1, 1]} : vector<6x32xf32> to vector<1x32xf32>
    %15 = vector.extract_strided_slice %11 {offsets = [3, 0], sizes = [1, 32], strides = [1, 1]} : vector<6x32xf32> to vector<1x32xf32>
    %16 = vector.extract_strided_slice %11 {offsets = [4, 0], sizes = [1, 32], strides = [1, 1]} : vector<6x32xf32> to vector<1x32xf32>
    %17 = vector.extract_strided_slice %11 {offsets = [5, 0], sizes = [1, 32], strides = [1, 1]} : vector<6x32xf32> to vector<1x32xf32>
    %c0_13 = arith.constant 0 : index
    %c0_14 = arith.constant 0 : index
    %c0_15 = arith.constant 0 : index
    %18 = vector.load %arg4[%c0_13, %c0_14, %c0_15] : memref<5x1x96xf32, #tpu.memory_space<vmem>>, vector<1x1x96xf32>
    %19 = vector.shape_cast %18 : vector<1x1x96xf32> to vector<1x96xf32>
    %c0_16 = arith.constant 0 : index
    %c0_17 = arith.constant 0 : index
    %c0_18 = arith.constant 0 : index
    %20 = vector.load %arg9[%c0_16, %c0_17, %c0_18] : memref<5x1x96xf32, #tpu.memory_space<vmem>>, vector<1x1x96xf32>
    %21 = vector.shape_cast %20 : vector<1x1x96xf32> to vector<1x96xf32>
    %cst_19 = arith.constant dense<0.000000e+00> : vector<32xf32>
    %22 = vector.multi_reduction <add>, %5, %cst_19 [1] : vector<32x32xf32> to vector<32xf32>
    %23 = vector.shape_cast %22 : vector<32xf32> to vector<32x1xf32>
    %cst_20 = arith.constant 3.200000e+01 : f32
    %24 = vector.broadcast %cst_20 : f32 to vector<32x1xf32>
    %25 = arith.divf %23, %24 : vector<32x1xf32>
    %26 = vector.broadcast %25 : vector<32x1xf32> to vector<32x32xf32>
    %27 = arith.subf %5, %26 : vector<32x32xf32>
    %28 = arith.mulf %27, %27 : vector<32x32xf32>
    %cst_21 = arith.constant dense<0.000000e+00> : vector<32xf32>
    %29 = vector.multi_reduction <add>, %28, %cst_21 [1] : vector<32x32xf32> to vector<32xf32>
    %30 = vector.shape_cast %29 : vector<32xf32> to vector<32x1xf32>
    %cst_22 = arith.constant 3.200000e+01 : f32
    %31 = vector.broadcast %cst_22 : f32 to vector<32x1xf32>
    %32 = arith.divf %30, %31 : vector<32x1xf32>
    %33 = vector.broadcast %25 : vector<32x1xf32> to vector<32x32xf32>
    %34 = arith.subf %5, %33 : vector<32x32xf32>
    %cst_23 = arith.constant 9.99999974E-6 : f32
    %35 = vector.broadcast %cst_23 : f32 to vector<32x1xf32>
    %36 = arith.addf %32, %35 : vector<32x1xf32>
    %37 = math.rsqrt %36 : vector<32x1xf32>
    %38 = vector.broadcast %37 : vector<32x1xf32> to vector<32x32xf32>
    %39 = arith.mulf %34, %38 : vector<32x32xf32>
    %40 = vector.broadcast %12 : vector<1x32xf32> to vector<32x32xf32>
    %41 = arith.mulf %39, %40 : vector<32x32xf32>
    %42 = vector.broadcast %13 : vector<1x32xf32> to vector<32x32xf32>
    %43 = arith.addf %41, %42 : vector<32x32xf32>
    %44 = arith.truncf %43 : vector<32x32xf32> to vector<32x32xbf16>
    %c0_24 = arith.constant 0 : index
    %c0_25 = arith.constant 0 : index
    %c0_26 = arith.constant 0 : index
    %45 = vector.load %arg3[%c0_24, %c0_25, %c0_26] : memref<5x32x96xbf16, #tpu.memory_space<vmem>>, vector<1x32x96xbf16>
    %46 = vector.shape_cast %45 : vector<1x32x96xbf16> to vector<32x96xbf16>
    %cst_27 = arith.constant dense<0.000000e+00> : vector<32x96xf32>
    %47 = tpu.matmul %44, %46, %cst_27 {dimension_numbers = #tpu.dot_dimension_numbers<[1], [0], [0], [1], [0, 0, 1, 1], [], []>} : vector<32x32xbf16>, vector<32x96xbf16>, vector<32x96xf32> -> vector<32x96xf32>
    %48 = vector.broadcast %19 : vector<1x96xf32> to vector<32x96xf32>
    %49 = arith.addf %47, %48 : vector<32x96xf32>
    %50 = vector.extract_strided_slice %49 {offsets = [0, 0], sizes = [32, 32], strides = [1, 1]} : vector<32x96xf32> to vector<32x32xf32>
    %51 = vector.extract_strided_slice %49 {offsets = [0, 32], sizes = [32, 32], strides = [1, 1]} : vector<32x96xf32> to vector<32x32xf32>
    %52 = vector.extract_strided_slice %49 {offsets = [0, 64], sizes = [32, 32], strides = [1, 1]} : vector<32x96xf32> to vector<32x32xf32>
    %53 = tpu.concatenate %50, %50, %50, %50 in 0 : vector<32x32xf32>, vector<32x32xf32>, vector<32x32xf32>, vector<32x32xf32> -> vector<128x32xf32>
    %54 = arith.mulf %53, %8 : vector<128x32xf32>
    %55 = arith.truncf %54 : vector<128x32xf32> to vector<128x32xbf16>
    %56 = arith.truncf %51 : vector<32x32xf32> to vector<32x32xbf16>
    %cst_28 = arith.constant dense<0.000000e+00> : vector<128x32xf32>
    %57 = tpu.matmul %55, %56, %cst_28 {dimension_numbers = #tpu.dot_dimension_numbers<[1], [1], [0], [0], [0, 0, 1, 0], [], []>} : vector<128x32xbf16>, vector<32x32xbf16>, vector<128x32xf32> -> vector<128x32xf32>
    %58 = arith.addf %57, %9 : vector<128x32xf32>
    %cst_29 = arith.constant dense<0xFF800000> : vector<128xf32>
    %59 = vector.multi_reduction <maximumf>, %58, %cst_29 [1] : vector<128x32xf32> to vector<128xf32>
    %60 = vector.shape_cast %59 : vector<128xf32> to vector<128x1xf32>
    %61 = vector.broadcast %60 : vector<128x1xf32> to vector<128x32xf32>
    %62 = arith.subf %58, %61 : vector<128x32xf32>
    %63 = math.exp %62 : vector<128x32xf32>
    %cst_30 = arith.constant dense<0.000000e+00> : vector<128xf32>
    %64 = vector.multi_reduction <add>, %63, %cst_30 [1] : vector<128x32xf32> to vector<128xf32>
    %65 = vector.shape_cast %64 : vector<128xf32> to vector<128x1xf32>
    %66 = tpu.reciprocal %65 {approx = true} : vector<128x1xf32> -> vector<128x1xf32>
    %67 = vector.broadcast %66 : vector<128x1xf32> to vector<128x32xf32>
    %68 = arith.mulf %63, %67 : vector<128x32xf32>
    %69 = arith.truncf %68 : vector<128x32xf32> to vector<128x32xbf16>
    %70 = arith.truncf %52 : vector<32x32xf32> to vector<32x32xbf16>
    %cst_31 = arith.constant dense<0.000000e+00> : vector<128x32xf32>
    %71 = tpu.matmul %69, %70, %cst_31 {dimension_numbers = #tpu.dot_dimension_numbers<[1], [0], [0], [1], [0, 0, 1, 1], [], []>} : vector<128x32xbf16>, vector<32x32xbf16>, vector<128x32xf32> -> vector<128x32xf32>
    %72 = arith.mulf %71, %6 : vector<128x32xf32>
    %73 = vector.extract_strided_slice %72 {offsets = [0, 0], sizes = [32, 32], strides = [1, 1]} : vector<128x32xf32> to vector<32x32xf32>
    %74 = vector.extract_strided_slice %72 {offsets = [32, 0], sizes = [32, 32], strides = [1, 1]} : vector<128x32xf32> to vector<32x32xf32>
    %75 = arith.addf %73, %74 : vector<32x32xf32>
    %76 = vector.extract_strided_slice %72 {offsets = [64, 0], sizes = [32, 32], strides = [1, 1]} : vector<128x32xf32> to vector<32x32xf32>
    %77 = arith.addf %75, %76 : vector<32x32xf32>
    %78 = vector.extract_strided_slice %72 {offsets = [96, 0], sizes = [32, 32], strides = [1, 1]} : vector<128x32xf32> to vector<32x32xf32>
    %79 = arith.addf %77, %78 : vector<32x32xf32>
    %80 = arith.truncf %79 : vector<32x32xf32> to vector<32x32xbf16>
    %c0_32 = arith.constant 0 : index
    %c0_33 = arith.constant 0 : index
    %c0_34 = arith.constant 0 : index
    %81 = vector.load %arg5[%c0_32, %c0_33, %c0_34] : memref<5x32x32xbf16, #tpu.memory_space<vmem>>, vector<1x32x32xbf16>
    %82 = vector.shape_cast %81 : vector<1x32x32xbf16> to vector<32x32xbf16>
    %cst_35 = arith.constant dense<0.000000e+00> : vector<32x32xf32>
    %83 = tpu.matmul %80, %82, %cst_35 {dimension_numbers = #tpu.dot_dimension_numbers<[1], [0], [0], [1], [0, 0, 1, 1], [], []>} : vector<32x32xbf16>, vector<32x32xbf16>, vector<32x32xf32> -> vector<32x32xf32>
    %84 = vector.broadcast %14 : vector<1x32xf32> to vector<32x32xf32>
    %85 = arith.addf %83, %84 : vector<32x32xf32>
    %86 = arith.addf %85, %5 : vector<32x32xf32>
    %cst_36 = arith.constant dense<0.000000e+00> : vector<32xf32>
    %87 = vector.multi_reduction <add>, %86, %cst_36 [1] : vector<32x32xf32> to vector<32xf32>
    %88 = vector.shape_cast %87 : vector<32xf32> to vector<32x1xf32>
    %cst_37 = arith.constant 3.200000e+01 : f32
    %89 = vector.broadcast %cst_37 : f32 to vector<32x1xf32>
    %90 = arith.divf %88, %89 : vector<32x1xf32>
    %91 = vector.broadcast %90 : vector<32x1xf32> to vector<32x32xf32>
    %92 = arith.subf %86, %91 : vector<32x32xf32>
    %93 = arith.mulf %92, %92 : vector<32x32xf32>
    %cst_38 = arith.constant dense<0.000000e+00> : vector<32xf32>
    %94 = vector.multi_reduction <add>, %93, %cst_38 [1] : vector<32x32xf32> to vector<32xf32>
    %95 = vector.shape_cast %94 : vector<32xf32> to vector<32x1xf32>
    %cst_39 = arith.constant 3.200000e+01 : f32
    %96 = vector.broadcast %cst_39 : f32 to vector<32x1xf32>
    %97 = arith.divf %95, %96 : vector<32x1xf32>
    %98 = vector.broadcast %90 : vector<32x1xf32> to vector<32x32xf32>
    %99 = arith.subf %86, %98 : vector<32x32xf32>
    %cst_40 = arith.constant 9.99999974E-6 : f32
    %100 = vector.broadcast %cst_40 : f32 to vector<32x1xf32>
    %101 = arith.addf %97, %100 : vector<32x1xf32>
    %102 = math.rsqrt %101 : vector<32x1xf32>
    %103 = vector.broadcast %102 : vector<32x1xf32> to vector<32x32xf32>
    %104 = arith.mulf %99, %103 : vector<32x32xf32>
    %105 = vector.broadcast %15 : vector<1x32xf32> to vector<32x32xf32>
    %106 = arith.mulf %104, %105 : vector<32x32xf32>
    %107 = vector.broadcast %16 : vector<1x32xf32> to vector<32x32xf32>
    %108 = arith.addf %106, %107 : vector<32x32xf32>
    %109 = arith.truncf %108 : vector<32x32xf32> to vector<32x32xbf16>
    %c0_41 = arith.constant 0 : index
    %c0_42 = arith.constant 0 : index
    %c0_43 = arith.constant 0 : index
    %110 = vector.load %arg6[%c0_41, %c0_42, %c0_43] : memref<5x32x96xbf16, #tpu.memory_space<vmem>>, vector<1x32x96xbf16>
    %111 = vector.shape_cast %110 : vector<1x32x96xbf16> to vector<32x96xbf16>
    %cst_44 = arith.constant dense<0.000000e+00> : vector<32x96xf32>
    %112 = tpu.matmul %109, %111, %cst_44 {dimension_numbers = #tpu.dot_dimension_numbers<[1], [0], [0], [1], [0, 0, 1, 1], [], []>} : vector<32x32xbf16>, vector<32x96xbf16>, vector<32x96xf32> -> vector<32x96xf32>
    %113 = vector.broadcast %21 : vector<1x96xf32> to vector<32x96xf32>
    %114 = arith.addf %112, %113 : vector<32x96xf32>
    %cst_45 = arith.constant 5.000000e-01 : f32
    %115 = vector.broadcast %cst_45 : f32 to vector<32x96xf32>
    %116 = arith.mulf %115, %114 : vector<32x96xf32>
    %cst_46 = arith.constant 0.707106769 : f32
    %117 = vector.broadcast %cst_46 : f32 to vector<32x96xf32>
    %118 = arith.mulf %114, %117 : vector<32x96xf32>
    %119 = math.erf %118 : vector<32x96xf32>
    %cst_47 = arith.constant 1.000000e+00 : f32
    %120 = vector.broadcast %cst_47 : f32 to vector<32x96xf32>
    %121 = arith.addf %120, %119 : vector<32x96xf32>
    %122 = arith.mulf %116, %121 : vector<32x96xf32>
    %123 = arith.truncf %122 : vector<32x96xf32> to vector<32x96xbf16>
    %c0_48 = arith.constant 0 : index
    %c0_49 = arith.constant 0 : index
    %c0_50 = arith.constant 0 : index
    %124 = vector.load %arg7[%c0_48, %c0_49, %c0_50] : memref<5x96x32xbf16, #tpu.memory_space<vmem>>, vector<1x96x32xbf16>
    %125 = vector.shape_cast %124 : vector<1x96x32xbf16> to vector<96x32xbf16>
    %cst_51 = arith.constant dense<0.000000e+00> : vector<32x32xf32>
    %126 = tpu.matmul %123, %125, %cst_51 {dimension_numbers = #tpu.dot_dimension_numbers<[1], [0], [0], [1], [0, 0, 1, 1], [], []>} : vector<32x96xbf16>, vector<96x32xbf16>, vector<32x32xf32> -> vector<32x32xf32>
    %127 = vector.broadcast %17 : vector<1x32xf32> to vector<32x32xf32>
    %128 = arith.addf %126, %127 : vector<32x32xf32>
    %129 = arith.addf %128, %86 : vector<32x32xf32>
    %c1 = arith.constant 1 : index
    %c0_52 = arith.constant 0 : index
    %c0_53 = arith.constant 0 : index
    %130 = vector.load %arg8[%c1, %c0_52, %c0_53] : memref<5x6x32xf32, #tpu.memory_space<vmem>>, vector<1x6x32xf32>
    %131 = vector.shape_cast %130 : vector<1x6x32xf32> to vector<6x32xf32>
    %132 = vector.extract_strided_slice %131 {offsets = [0, 0], sizes = [1, 32], strides = [1, 1]} : vector<6x32xf32> to vector<1x32xf32>
    %133 = vector.extract_strided_slice %131 {offsets = [1, 0], sizes = [1, 32], strides = [1, 1]} : vector<6x32xf32> to vector<1x32xf32>
    %134 = vector.extract_strided_slice %131 {offsets = [2, 0], sizes = [1, 32], strides = [1, 1]} : vector<6x32xf32> to vector<1x32xf32>
    %135 = vector.extract_strided_slice %131 {offsets = [3, 0], sizes = [1, 32], strides = [1, 1]} : vector<6x32xf32> to vector<1x32xf32>
    %136 = vector.extract_strided_slice %131 {offsets = [4, 0], sizes = [1, 32], strides = [1, 1]} : vector<6x32xf32> to vector<1x32xf32>
    %137 = vector.extract_strided_slice %131 {offsets = [5, 0], sizes = [1, 32], strides = [1, 1]} : vector<6x32xf32> to vector<1x32xf32>
    %c1_54 = arith.constant 1 : index
    %c0_55 = arith.constant 0 : index
    %c0_56 = arith.constant 0 : index
    %138 = vector.load %arg4[%c1_54, %c0_55, %c0_56] : memref<5x1x96xf32, #tpu.memory_space<vmem>>, vector<1x1x96xf32>
    %139 = vector.shape_cast %138 : vector<1x1x96xf32> to vector<1x96xf32>
    %c1_57 = arith.constant 1 : index
    %c0_58 = arith.constant 0 : index
    %c0_59 = arith.constant 0 : index
    %140 = vector.load %arg9[%c1_57, %c0_58, %c0_59] : memref<5x1x96xf32, #tpu.memory_space<vmem>>, vector<1x1x96xf32>
    %141 = vector.shape_cast %140 : vector<1x1x96xf32> to vector<1x96xf32>
    %cst_60 = arith.constant dense<0.000000e+00> : vector<32xf32>
    %142 = vector.multi_reduction <add>, %129, %cst_60 [1] : vector<32x32xf32> to vector<32xf32>
    %143 = vector.shape_cast %142 : vector<32xf32> to vector<32x1xf32>
    %cst_61 = arith.constant 3.200000e+01 : f32
    %144 = vector.broadcast %cst_61 : f32 to vector<32x1xf32>
    %145 = arith.divf %143, %144 : vector<32x1xf32>
    %146 = vector.broadcast %145 : vector<32x1xf32> to vector<32x32xf32>
    %147 = arith.subf %129, %146 : vector<32x32xf32>
    %148 = arith.mulf %147, %147 : vector<32x32xf32>
    %cst_62 = arith.constant dense<0.000000e+00> : vector<32xf32>
    %149 = vector.multi_reduction <add>, %148, %cst_62 [1] : vector<32x32xf32> to vector<32xf32>
    %150 = vector.shape_cast %149 : vector<32xf32> to vector<32x1xf32>
    %cst_63 = arith.constant 3.200000e+01 : f32
    %151 = vector.broadcast %cst_63 : f32 to vector<32x1xf32>
    %152 = arith.divf %150, %151 : vector<32x1xf32>
    %153 = vector.broadcast %145 : vector<32x1xf32> to vector<32x32xf32>
    %154 = arith.subf %129, %153 : vector<32x32xf32>
    %cst_64 = arith.constant 9.99999974E-6 : f32
    %155 = vector.broadcast %cst_64 : f32 to vector<32x1xf32>
    %156 = arith.addf %152, %155 : vector<32x1xf32>
    %157 = math.rsqrt %156 : vector<32x1xf32>
    %158 = vector.broadcast %157 : vector<32x1xf32> to vector<32x32xf32>
    %159 = arith.mulf %154, %158 : vector<32x32xf32>
    %160 = vector.broadcast %132 : vector<1x32xf32> to vector<32x32xf32>
    %161 = arith.mulf %159, %160 : vector<32x32xf32>
    %162 = vector.broadcast %133 : vector<1x32xf32> to vector<32x32xf32>
    %163 = arith.addf %161, %162 : vector<32x32xf32>
    %164 = arith.truncf %163 : vector<32x32xf32> to vector<32x32xbf16>
    %c1_65 = arith.constant 1 : index
    %c0_66 = arith.constant 0 : index
    %c0_67 = arith.constant 0 : index
    %165 = vector.load %arg3[%c1_65, %c0_66, %c0_67] : memref<5x32x96xbf16, #tpu.memory_space<vmem>>, vector<1x32x96xbf16>
    %166 = vector.shape_cast %165 : vector<1x32x96xbf16> to vector<32x96xbf16>
    %cst_68 = arith.constant dense<0.000000e+00> : vector<32x96xf32>
    %167 = tpu.matmul %164, %166, %cst_68 {dimension_numbers = #tpu.dot_dimension_numbers<[1], [0], [0], [1], [0, 0, 1, 1], [], []>} : vector<32x32xbf16>, vector<32x96xbf16>, vector<32x96xf32> -> vector<32x96xf32>
    %168 = vector.broadcast %139 : vector<1x96xf32> to vector<32x96xf32>
    %169 = arith.addf %167, %168 : vector<32x96xf32>
    %170 = vector.extract_strided_slice %169 {offsets = [0, 0], sizes = [32, 32], strides = [1, 1]} : vector<32x96xf32> to vector<32x32xf32>
    %171 = vector.extract_strided_slice %169 {offsets = [0, 32], sizes = [32, 32], strides = [1, 1]} : vector<32x96xf32> to vector<32x32xf32>
    %172 = vector.extract_strided_slice %169 {offsets = [0, 64], sizes = [32, 32], strides = [1, 1]} : vector<32x96xf32> to vector<32x32xf32>
    %173 = tpu.concatenate %170, %170, %170, %170 in 0 : vector<32x32xf32>, vector<32x32xf32>, vector<32x32xf32>, vector<32x32xf32> -> vector<128x32xf32>
    %174 = arith.mulf %173, %8 : vector<128x32xf32>
    %175 = arith.truncf %174 : vector<128x32xf32> to vector<128x32xbf16>
    %176 = arith.truncf %171 : vector<32x32xf32> to vector<32x32xbf16>
    %cst_69 = arith.constant dense<0.000000e+00> : vector<128x32xf32>
    %177 = tpu.matmul %175, %176, %cst_69 {dimension_numbers = #tpu.dot_dimension_numbers<[1], [1], [0], [0], [0, 0, 1, 0], [], []>} : vector<128x32xbf16>, vector<32x32xbf16>, vector<128x32xf32> -> vector<128x32xf32>
    %178 = arith.addf %177, %9 : vector<128x32xf32>
    %cst_70 = arith.constant dense<0xFF800000> : vector<128xf32>
    %179 = vector.multi_reduction <maximumf>, %178, %cst_70 [1] : vector<128x32xf32> to vector<128xf32>
    %180 = vector.shape_cast %179 : vector<128xf32> to vector<128x1xf32>
    %181 = vector.broadcast %180 : vector<128x1xf32> to vector<128x32xf32>
    %182 = arith.subf %178, %181 : vector<128x32xf32>
    %183 = math.exp %182 : vector<128x32xf32>
    %cst_71 = arith.constant dense<0.000000e+00> : vector<128xf32>
    %184 = vector.multi_reduction <add>, %183, %cst_71 [1] : vector<128x32xf32> to vector<128xf32>
    %185 = vector.shape_cast %184 : vector<128xf32> to vector<128x1xf32>
    %186 = tpu.reciprocal %185 {approx = true} : vector<128x1xf32> -> vector<128x1xf32>
    %187 = vector.broadcast %186 : vector<128x1xf32> to vector<128x32xf32>
    %188 = arith.mulf %183, %187 : vector<128x32xf32>
    %189 = arith.truncf %188 : vector<128x32xf32> to vector<128x32xbf16>
    %190 = arith.truncf %172 : vector<32x32xf32> to vector<32x32xbf16>
    %cst_72 = arith.constant dense<0.000000e+00> : vector<128x32xf32>
    %191 = tpu.matmul %189, %190, %cst_72 {dimension_numbers = #tpu.dot_dimension_numbers<[1], [0], [0], [1], [0, 0, 1, 1], [], []>} : vector<128x32xbf16>, vector<32x32xbf16>, vector<128x32xf32> -> vector<128x32xf32>
    %192 = arith.mulf %191, %6 : vector<128x32xf32>
    %193 = vector.extract_strided_slice %192 {offsets = [0, 0], sizes = [32, 32], strides = [1, 1]} : vector<128x32xf32> to vector<32x32xf32>
    %194 = vector.extract_strided_slice %192 {offsets = [32, 0], sizes = [32, 32], strides = [1, 1]} : vector<128x32xf32> to vector<32x32xf32>
    %195 = arith.addf %193, %194 : vector<32x32xf32>
    %196 = vector.extract_strided_slice %192 {offsets = [64, 0], sizes = [32, 32], strides = [1, 1]} : vector<128x32xf32> to vector<32x32xf32>
    %197 = arith.addf %195, %196 : vector<32x32xf32>
    %198 = vector.extract_strided_slice %192 {offsets = [96, 0], sizes = [32, 32], strides = [1, 1]} : vector<128x32xf32> to vector<32x32xf32>
    %199 = arith.addf %197, %198 : vector<32x32xf32>
    %200 = arith.truncf %199 : vector<32x32xf32> to vector<32x32xbf16>
    %c1_73 = arith.constant 1 : index
    %c0_74 = arith.constant 0 : index
    %c0_75 = arith.constant 0 : index
    %201 = vector.load %arg5[%c1_73, %c0_74, %c0_75] : memref<5x32x32xbf16, #tpu.memory_space<vmem>>, vector<1x32x32xbf16>
    %202 = vector.shape_cast %201 : vector<1x32x32xbf16> to vector<32x32xbf16>
    %cst_76 = arith.constant dense<0.000000e+00> : vector<32x32xf32>
    %203 = tpu.matmul %200, %202, %cst_76 {dimension_numbers = #tpu.dot_dimension_numbers<[1], [0], [0], [1], [0, 0, 1, 1], [], []>} : vector<32x32xbf16>, vector<32x32xbf16>, vector<32x32xf32> -> vector<32x32xf32>
    %204 = vector.broadcast %134 : vector<1x32xf32> to vector<32x32xf32>
    %205 = arith.addf %203, %204 : vector<32x32xf32>
    %206 = arith.addf %205, %129 : vector<32x32xf32>
    %cst_77 = arith.constant dense<0.000000e+00> : vector<32xf32>
    %207 = vector.multi_reduction <add>, %206, %cst_77 [1] : vector<32x32xf32> to vector<32xf32>
    %208 = vector.shape_cast %207 : vector<32xf32> to vector<32x1xf32>
    %cst_78 = arith.constant 3.200000e+01 : f32
    %209 = vector.broadcast %cst_78 : f32 to vector<32x1xf32>
    %210 = arith.divf %208, %209 : vector<32x1xf32>
    %211 = vector.broadcast %210 : vector<32x1xf32> to vector<32x32xf32>
    %212 = arith.subf %206, %211 : vector<32x32xf32>
    %213 = arith.mulf %212, %212 : vector<32x32xf32>
    %cst_79 = arith.constant dense<0.000000e+00> : vector<32xf32>
    %214 = vector.multi_reduction <add>, %213, %cst_79 [1] : vector<32x32xf32> to vector<32xf32>
    %215 = vector.shape_cast %214 : vector<32xf32> to vector<32x1xf32>
    %cst_80 = arith.constant 3.200000e+01 : f32
    %216 = vector.broadcast %cst_80 : f32 to vector<32x1xf32>
    %217 = arith.divf %215, %216 : vector<32x1xf32>
    %218 = vector.broadcast %210 : vector<32x1xf32> to vector<32x32xf32>
    %219 = arith.subf %206, %218 : vector<32x32xf32>
    %cst_81 = arith.constant 9.99999974E-6 : f32
    %220 = vector.broadcast %cst_81 : f32 to vector<32x1xf32>
    %221 = arith.addf %217, %220 : vector<32x1xf32>
    %222 = math.rsqrt %221 : vector<32x1xf32>
    %223 = vector.broadcast %222 : vector<32x1xf32> to vector<32x32xf32>
    %224 = arith.mulf %219, %223 : vector<32x32xf32>
    %225 = vector.broadcast %135 : vector<1x32xf32> to vector<32x32xf32>
    %226 = arith.mulf %224, %225 : vector<32x32xf32>
    %227 = vector.broadcast %136 : vector<1x32xf32> to vector<32x32xf32>
    %228 = arith.addf %226, %227 : vector<32x32xf32>
    %229 = arith.truncf %228 : vector<32x32xf32> to vector<32x32xbf16>
    %c1_82 = arith.constant 1 : index
    %c0_83 = arith.constant 0 : index
    %c0_84 = arith.constant 0 : index
    %230 = vector.load %arg6[%c1_82, %c0_83, %c0_84] : memref<5x32x96xbf16, #tpu.memory_space<vmem>>, vector<1x32x96xbf16>
    %231 = vector.shape_cast %230 : vector<1x32x96xbf16> to vector<32x96xbf16>
    %cst_85 = arith.constant dense<0.000000e+00> : vector<32x96xf32>
    %232 = tpu.matmul %229, %231, %cst_85 {dimension_numbers = #tpu.dot_dimension_numbers<[1], [0], [0], [1], [0, 0, 1, 1], [], []>} : vector<32x32xbf16>, vector<32x96xbf16>, vector<32x96xf32> -> vector<32x96xf32>
    %233 = vector.broadcast %141 : vector<1x96xf32> to vector<32x96xf32>
    %234 = arith.addf %232, %233 : vector<32x96xf32>
    %cst_86 = arith.constant 5.000000e-01 : f32
    %235 = vector.broadcast %cst_86 : f32 to vector<32x96xf32>
    %236 = arith.mulf %235, %234 : vector<32x96xf32>
    %cst_87 = arith.constant 0.707106769 : f32
    %237 = vector.broadcast %cst_87 : f32 to vector<32x96xf32>
    %238 = arith.mulf %234, %237 : vector<32x96xf32>
    %239 = math.erf %238 : vector<32x96xf32>
    %cst_88 = arith.constant 1.000000e+00 : f32
    %240 = vector.broadcast %cst_88 : f32 to vector<32x96xf32>
    %241 = arith.addf %240, %239 : vector<32x96xf32>
    %242 = arith.mulf %236, %241 : vector<32x96xf32>
    %243 = arith.truncf %242 : vector<32x96xf32> to vector<32x96xbf16>
    %c1_89 = arith.constant 1 : index
    %c0_90 = arith.constant 0 : index
    %c0_91 = arith.constant 0 : index
    %244 = vector.load %arg7[%c1_89, %c0_90, %c0_91] : memref<5x96x32xbf16, #tpu.memory_space<vmem>>, vector<1x96x32xbf16>
    %245 = vector.shape_cast %244 : vector<1x96x32xbf16> to vector<96x32xbf16>
    %cst_92 = arith.constant dense<0.000000e+00> : vector<32x32xf32>
    %246 = tpu.matmul %243, %245, %cst_92 {dimension_numbers = #tpu.dot_dimension_numbers<[1], [0], [0], [1], [0, 0, 1, 1], [], []>} : vector<32x96xbf16>, vector<96x32xbf16>, vector<32x32xf32> -> vector<32x32xf32>
    %247 = vector.broadcast %137 : vector<1x32xf32> to vector<32x32xf32>
    %248 = arith.addf %246, %247 : vector<32x32xf32>
    %249 = arith.addf %248, %206 : vector<32x32xf32>
    %c2 = arith.constant 2 : index
    %c0_93 = arith.constant 0 : index
    %c0_94 = arith.constant 0 : index
    %250 = vector.load %arg8[%c2, %c0_93, %c0_94] : memref<5x6x32xf32, #tpu.memory_space<vmem>>, vector<1x6x32xf32>
    %251 = vector.shape_cast %250 : vector<1x6x32xf32> to vector<6x32xf32>
    %252 = vector.extract_strided_slice %251 {offsets = [0, 0], sizes = [1, 32], strides = [1, 1]} : vector<6x32xf32> to vector<1x32xf32>
    %253 = vector.extract_strided_slice %251 {offsets = [1, 0], sizes = [1, 32], strides = [1, 1]} : vector<6x32xf32> to vector<1x32xf32>
    %254 = vector.extract_strided_slice %251 {offsets = [2, 0], sizes = [1, 32], strides = [1, 1]} : vector<6x32xf32> to vector<1x32xf32>
    %255 = vector.extract_strided_slice %251 {offsets = [3, 0], sizes = [1, 32], strides = [1, 1]} : vector<6x32xf32> to vector<1x32xf32>
    %256 = vector.extract_strided_slice %251 {offsets = [4, 0], sizes = [1, 32], strides = [1, 1]} : vector<6x32xf32> to vector<1x32xf32>
    %257 = vector.extract_strided_slice %251 {offsets = [5, 0], sizes = [1, 32], strides = [1, 1]} : vector<6x32xf32> to vector<1x32xf32>
    %c2_95 = arith.constant 2 : index
    %c0_96 = arith.constant 0 : index
    %c0_97 = arith.constant 0 : index
    %258 = vector.load %arg4[%c2_95, %c0_96, %c0_97] : memref<5x1x96xf32, #tpu.memory_space<vmem>>, vector<1x1x96xf32>
    %259 = vector.shape_cast %258 : vector<1x1x96xf32> to vector<1x96xf32>
    %c2_98 = arith.constant 2 : index
    %c0_99 = arith.constant 0 : index
    %c0_100 = arith.constant 0 : index
    %260 = vector.load %arg9[%c2_98, %c0_99, %c0_100] : memref<5x1x96xf32, #tpu.memory_space<vmem>>, vector<1x1x96xf32>
    %261 = vector.shape_cast %260 : vector<1x1x96xf32> to vector<1x96xf32>
    %cst_101 = arith.constant dense<0.000000e+00> : vector<32xf32>
    %262 = vector.multi_reduction <add>, %249, %cst_101 [1] : vector<32x32xf32> to vector<32xf32>
    %263 = vector.shape_cast %262 : vector<32xf32> to vector<32x1xf32>
    %cst_102 = arith.constant 3.200000e+01 : f32
    %264 = vector.broadcast %cst_102 : f32 to vector<32x1xf32>
    %265 = arith.divf %263, %264 : vector<32x1xf32>
    %266 = vector.broadcast %265 : vector<32x1xf32> to vector<32x32xf32>
    %267 = arith.subf %249, %266 : vector<32x32xf32>
    %268 = arith.mulf %267, %267 : vector<32x32xf32>
    %cst_103 = arith.constant dense<0.000000e+00> : vector<32xf32>
    %269 = vector.multi_reduction <add>, %268, %cst_103 [1] : vector<32x32xf32> to vector<32xf32>
    %270 = vector.shape_cast %269 : vector<32xf32> to vector<32x1xf32>
    %cst_104 = arith.constant 3.200000e+01 : f32
    %271 = vector.broadcast %cst_104 : f32 to vector<32x1xf32>
    %272 = arith.divf %270, %271 : vector<32x1xf32>
    %273 = vector.broadcast %265 : vector<32x1xf32> to vector<32x32xf32>
    %274 = arith.subf %249, %273 : vector<32x32xf32>
    %cst_105 = arith.constant 9.99999974E-6 : f32
    %275 = vector.broadcast %cst_105 : f32 to vector<32x1xf32>
    %276 = arith.addf %272, %275 : vector<32x1xf32>
    %277 = math.rsqrt %276 : vector<32x1xf32>
    %278 = vector.broadcast %277 : vector<32x1xf32> to vector<32x32xf32>
    %279 = arith.mulf %274, %278 : vector<32x32xf32>
    %280 = vector.broadcast %252 : vector<1x32xf32> to vector<32x32xf32>
    %281 = arith.mulf %279, %280 : vector<32x32xf32>
    %282 = vector.broadcast %253 : vector<1x32xf32> to vector<32x32xf32>
    %283 = arith.addf %281, %282 : vector<32x32xf32>
    %284 = arith.truncf %283 : vector<32x32xf32> to vector<32x32xbf16>
    %c2_106 = arith.constant 2 : index
    %c0_107 = arith.constant 0 : index
    %c0_108 = arith.constant 0 : index
    %285 = vector.load %arg3[%c2_106, %c0_107, %c0_108] : memref<5x32x96xbf16, #tpu.memory_space<vmem>>, vector<1x32x96xbf16>
    %286 = vector.shape_cast %285 : vector<1x32x96xbf16> to vector<32x96xbf16>
    %cst_109 = arith.constant dense<0.000000e+00> : vector<32x96xf32>
    %287 = tpu.matmul %284, %286, %cst_109 {dimension_numbers = #tpu.dot_dimension_numbers<[1], [0], [0], [1], [0, 0, 1, 1], [], []>} : vector<32x32xbf16>, vector<32x96xbf16>, vector<32x96xf32> -> vector<32x96xf32>
    %288 = vector.broadcast %259 : vector<1x96xf32> to vector<32x96xf32>
    %289 = arith.addf %287, %288 : vector<32x96xf32>
    %290 = vector.extract_strided_slice %289 {offsets = [0, 0], sizes = [32, 32], strides = [1, 1]} : vector<32x96xf32> to vector<32x32xf32>
    %291 = vector.extract_strided_slice %289 {offsets = [0, 32], sizes = [32, 32], strides = [1, 1]} : vector<32x96xf32> to vector<32x32xf32>
    %292 = vector.extract_strided_slice %289 {offsets = [0, 64], sizes = [32, 32], strides = [1, 1]} : vector<32x96xf32> to vector<32x32xf32>
    %293 = tpu.concatenate %290, %290, %290, %290 in 0 : vector<32x32xf32>, vector<32x32xf32>, vector<32x32xf32>, vector<32x32xf32> -> vector<128x32xf32>
    %294 = arith.mulf %293, %8 : vector<128x32xf32>
    %295 = arith.truncf %294 : vector<128x32xf32> to vector<128x32xbf16>
    %296 = arith.truncf %291 : vector<32x32xf32> to vector<32x32xbf16>
    %cst_110 = arith.constant dense<0.000000e+00> : vector<128x32xf32>
    %297 = tpu.matmul %295, %296, %cst_110 {dimension_numbers = #tpu.dot_dimension_numbers<[1], [1], [0], [0], [0, 0, 1, 0], [], []>} : vector<128x32xbf16>, vector<32x32xbf16>, vector<128x32xf32> -> vector<128x32xf32>
    %298 = arith.addf %297, %9 : vector<128x32xf32>
    %cst_111 = arith.constant dense<0xFF800000> : vector<128xf32>
    %299 = vector.multi_reduction <maximumf>, %298, %cst_111 [1] : vector<128x32xf32> to vector<128xf32>
    %300 = vector.shape_cast %299 : vector<128xf32> to vector<128x1xf32>
    %301 = vector.broadcast %300 : vector<128x1xf32> to vector<128x32xf32>
    %302 = arith.subf %298, %301 : vector<128x32xf32>
    %303 = math.exp %302 : vector<128x32xf32>
    %cst_112 = arith.constant dense<0.000000e+00> : vector<128xf32>
    %304 = vector.multi_reduction <add>, %303, %cst_112 [1] : vector<128x32xf32> to vector<128xf32>
    %305 = vector.shape_cast %304 : vector<128xf32> to vector<128x1xf32>
    %306 = tpu.reciprocal %305 {approx = true} : vector<128x1xf32> -> vector<128x1xf32>
    %307 = vector.broadcast %306 : vector<128x1xf32> to vector<128x32xf32>
    %308 = arith.mulf %303, %307 : vector<128x32xf32>
    %309 = arith.truncf %308 : vector<128x32xf32> to vector<128x32xbf16>
    %310 = arith.truncf %292 : vector<32x32xf32> to vector<32x32xbf16>
    %cst_113 = arith.constant dense<0.000000e+00> : vector<128x32xf32>
    %311 = tpu.matmul %309, %310, %cst_113 {dimension_numbers = #tpu.dot_dimension_numbers<[1], [0], [0], [1], [0, 0, 1, 1], [], []>} : vector<128x32xbf16>, vector<32x32xbf16>, vector<128x32xf32> -> vector<128x32xf32>
    %312 = arith.mulf %311, %6 : vector<128x32xf32>
    %313 = vector.extract_strided_slice %312 {offsets = [0, 0], sizes = [32, 32], strides = [1, 1]} : vector<128x32xf32> to vector<32x32xf32>
    %314 = vector.extract_strided_slice %312 {offsets = [32, 0], sizes = [32, 32], strides = [1, 1]} : vector<128x32xf32> to vector<32x32xf32>
    %315 = arith.addf %313, %314 : vector<32x32xf32>
    %316 = vector.extract_strided_slice %312 {offsets = [64, 0], sizes = [32, 32], strides = [1, 1]} : vector<128x32xf32> to vector<32x32xf32>
    %317 = arith.addf %315, %316 : vector<32x32xf32>
    %318 = vector.extract_strided_slice %312 {offsets = [96, 0], sizes = [32, 32], strides = [1, 1]} : vector<128x32xf32> to vector<32x32xf32>
    %319 = arith.addf %317, %318 : vector<32x32xf32>
    %320 = arith.truncf %319 : vector<32x32xf32> to vector<32x32xbf16>
    %c2_114 = arith.constant 2 : index
    %c0_115 = arith.constant 0 : index
    %c0_116 = arith.constant 0 : index
    %321 = vector.load %arg5[%c2_114, %c0_115, %c0_116] : memref<5x32x32xbf16, #tpu.memory_space<vmem>>, vector<1x32x32xbf16>
    %322 = vector.shape_cast %321 : vector<1x32x32xbf16> to vector<32x32xbf16>
    %cst_117 = arith.constant dense<0.000000e+00> : vector<32x32xf32>
    %323 = tpu.matmul %320, %322, %cst_117 {dimension_numbers = #tpu.dot_dimension_numbers<[1], [0], [0], [1], [0, 0, 1, 1], [], []>} : vector<32x32xbf16>, vector<32x32xbf16>, vector<32x32xf32> -> vector<32x32xf32>
    %324 = vector.broadcast %254 : vector<1x32xf32> to vector<32x32xf32>
    %325 = arith.addf %323, %324 : vector<32x32xf32>
    %326 = arith.addf %325, %249 : vector<32x32xf32>
    %cst_118 = arith.constant dense<0.000000e+00> : vector<32xf32>
    %327 = vector.multi_reduction <add>, %326, %cst_118 [1] : vector<32x32xf32> to vector<32xf32>
    %328 = vector.shape_cast %327 : vector<32xf32> to vector<32x1xf32>
    %cst_119 = arith.constant 3.200000e+01 : f32
    %329 = vector.broadcast %cst_119 : f32 to vector<32x1xf32>
    %330 = arith.divf %328, %329 : vector<32x1xf32>
    %331 = vector.broadcast %330 : vector<32x1xf32> to vector<32x32xf32>
    %332 = arith.subf %326, %331 : vector<32x32xf32>
    %333 = arith.mulf %332, %332 : vector<32x32xf32>
    %cst_120 = arith.constant dense<0.000000e+00> : vector<32xf32>
    %334 = vector.multi_reduction <add>, %333, %cst_120 [1] : vector<32x32xf32> to vector<32xf32>
    %335 = vector.shape_cast %334 : vector<32xf32> to vector<32x1xf32>
    %cst_121 = arith.constant 3.200000e+01 : f32
    %336 = vector.broadcast %cst_121 : f32 to vector<32x1xf32>
    %337 = arith.divf %335, %336 : vector<32x1xf32>
    %338 = vector.broadcast %330 : vector<32x1xf32> to vector<32x32xf32>
    %339 = arith.subf %326, %338 : vector<32x32xf32>
    %cst_122 = arith.constant 9.99999974E-6 : f32
    %340 = vector.broadcast %cst_122 : f32 to vector<32x1xf32>
    %341 = arith.addf %337, %340 : vector<32x1xf32>
    %342 = math.rsqrt %341 : vector<32x1xf32>
    %343 = vector.broadcast %342 : vector<32x1xf32> to vector<32x32xf32>
    %344 = arith.mulf %339, %343 : vector<32x32xf32>
    %345 = vector.broadcast %255 : vector<1x32xf32> to vector<32x32xf32>
    %346 = arith.mulf %344, %345 : vector<32x32xf32>
    %347 = vector.broadcast %256 : vector<1x32xf32> to vector<32x32xf32>
    %348 = arith.addf %346, %347 : vector<32x32xf32>
    %349 = arith.truncf %348 : vector<32x32xf32> to vector<32x32xbf16>
    %c2_123 = arith.constant 2 : index
    %c0_124 = arith.constant 0 : index
    %c0_125 = arith.constant 0 : index
    %350 = vector.load %arg6[%c2_123, %c0_124, %c0_125] : memref<5x32x96xbf16, #tpu.memory_space<vmem>>, vector<1x32x96xbf16>
    %351 = vector.shape_cast %350 : vector<1x32x96xbf16> to vector<32x96xbf16>
    %cst_126 = arith.constant dense<0.000000e+00> : vector<32x96xf32>
    %352 = tpu.matmul %349, %351, %cst_126 {dimension_numbers = #tpu.dot_dimension_numbers<[1], [0], [0], [1], [0, 0, 1, 1], [], []>} : vector<32x32xbf16>, vector<32x96xbf16>, vector<32x96xf32> -> vector<32x96xf32>
    %353 = vector.broadcast %261 : vector<1x96xf32> to vector<32x96xf32>
    %354 = arith.addf %352, %353 : vector<32x96xf32>
    %cst_127 = arith.constant 5.000000e-01 : f32
    %355 = vector.broadcast %cst_127 : f32 to vector<32x96xf32>
    %356 = arith.mulf %355, %354 : vector<32x96xf32>
    %cst_128 = arith.constant 0.707106769 : f32
    %357 = vector.broadcast %cst_128 : f32 to vector<32x96xf32>
    %358 = arith.mulf %354, %357 : vector<32x96xf32>
    %359 = math.erf %358 : vector<32x96xf32>
    %cst_129 = arith.constant 1.000000e+00 : f32
    %360 = vector.broadcast %cst_129 : f32 to vector<32x96xf32>
    %361 = arith.addf %360, %359 : vector<32x96xf32>
    %362 = arith.mulf %356, %361 : vector<32x96xf32>
    %363 = arith.truncf %362 : vector<32x96xf32> to vector<32x96xbf16>
    %c2_130 = arith.constant 2 : index
    %c0_131 = arith.constant 0 : index
    %c0_132 = arith.constant 0 : index
    %364 = vector.load %arg7[%c2_130, %c0_131, %c0_132] : memref<5x96x32xbf16, #tpu.memory_space<vmem>>, vector<1x96x32xbf16>
    %365 = vector.shape_cast %364 : vector<1x96x32xbf16> to vector<96x32xbf16>
    %cst_133 = arith.constant dense<0.000000e+00> : vector<32x32xf32>
    %366 = tpu.matmul %363, %365, %cst_133 {dimension_numbers = #tpu.dot_dimension_numbers<[1], [0], [0], [1], [0, 0, 1, 1], [], []>} : vector<32x96xbf16>, vector<96x32xbf16>, vector<32x32xf32> -> vector<32x32xf32>
    %367 = vector.broadcast %257 : vector<1x32xf32> to vector<32x32xf32>
    %368 = arith.addf %366, %367 : vector<32x32xf32>
    %369 = arith.addf %368, %326 : vector<32x32xf32>
    %c3 = arith.constant 3 : index
    %c0_134 = arith.constant 0 : index
    %c0_135 = arith.constant 0 : index
    %370 = vector.load %arg8[%c3, %c0_134, %c0_135] : memref<5x6x32xf32, #tpu.memory_space<vmem>>, vector<1x6x32xf32>
    %371 = vector.shape_cast %370 : vector<1x6x32xf32> to vector<6x32xf32>
    %372 = vector.extract_strided_slice %371 {offsets = [0, 0], sizes = [1, 32], strides = [1, 1]} : vector<6x32xf32> to vector<1x32xf32>
    %373 = vector.extract_strided_slice %371 {offsets = [1, 0], sizes = [1, 32], strides = [1, 1]} : vector<6x32xf32> to vector<1x32xf32>
    %374 = vector.extract_strided_slice %371 {offsets = [2, 0], sizes = [1, 32], strides = [1, 1]} : vector<6x32xf32> to vector<1x32xf32>
    %375 = vector.extract_strided_slice %371 {offsets = [3, 0], sizes = [1, 32], strides = [1, 1]} : vector<6x32xf32> to vector<1x32xf32>
    %376 = vector.extract_strided_slice %371 {offsets = [4, 0], sizes = [1, 32], strides = [1, 1]} : vector<6x32xf32> to vector<1x32xf32>
    %377 = vector.extract_strided_slice %371 {offsets = [5, 0], sizes = [1, 32], strides = [1, 1]} : vector<6x32xf32> to vector<1x32xf32>
    %c3_136 = arith.constant 3 : index
    %c0_137 = arith.constant 0 : index
    %c0_138 = arith.constant 0 : index
    %378 = vector.load %arg4[%c3_136, %c0_137, %c0_138] : memref<5x1x96xf32, #tpu.memory_space<vmem>>, vector<1x1x96xf32>
    %379 = vector.shape_cast %378 : vector<1x1x96xf32> to vector<1x96xf32>
    %c3_139 = arith.constant 3 : index
    %c0_140 = arith.constant 0 : index
    %c0_141 = arith.constant 0 : index
    %380 = vector.load %arg9[%c3_139, %c0_140, %c0_141] : memref<5x1x96xf32, #tpu.memory_space<vmem>>, vector<1x1x96xf32>
    %381 = vector.shape_cast %380 : vector<1x1x96xf32> to vector<1x96xf32>
    %cst_142 = arith.constant dense<0.000000e+00> : vector<32xf32>
    %382 = vector.multi_reduction <add>, %369, %cst_142 [1] : vector<32x32xf32> to vector<32xf32>
    %383 = vector.shape_cast %382 : vector<32xf32> to vector<32x1xf32>
    %cst_143 = arith.constant 3.200000e+01 : f32
    %384 = vector.broadcast %cst_143 : f32 to vector<32x1xf32>
    %385 = arith.divf %383, %384 : vector<32x1xf32>
    %386 = vector.broadcast %385 : vector<32x1xf32> to vector<32x32xf32>
    %387 = arith.subf %369, %386 : vector<32x32xf32>
    %388 = arith.mulf %387, %387 : vector<32x32xf32>
    %cst_144 = arith.constant dense<0.000000e+00> : vector<32xf32>
    %389 = vector.multi_reduction <add>, %388, %cst_144 [1] : vector<32x32xf32> to vector<32xf32>
    %390 = vector.shape_cast %389 : vector<32xf32> to vector<32x1xf32>
    %cst_145 = arith.constant 3.200000e+01 : f32
    %391 = vector.broadcast %cst_145 : f32 to vector<32x1xf32>
    %392 = arith.divf %390, %391 : vector<32x1xf32>
    %393 = vector.broadcast %385 : vector<32x1xf32> to vector<32x32xf32>
    %394 = arith.subf %369, %393 : vector<32x32xf32>
    %cst_146 = arith.constant 9.99999974E-6 : f32
    %395 = vector.broadcast %cst_146 : f32 to vector<32x1xf32>
    %396 = arith.addf %392, %395 : vector<32x1xf32>
    %397 = math.rsqrt %396 : vector<32x1xf32>
    %398 = vector.broadcast %397 : vector<32x1xf32> to vector<32x32xf32>
    %399 = arith.mulf %394, %398 : vector<32x32xf32>
    %400 = vector.broadcast %372 : vector<1x32xf32> to vector<32x32xf32>
    %401 = arith.mulf %399, %400 : vector<32x32xf32>
    %402 = vector.broadcast %373 : vector<1x32xf32> to vector<32x32xf32>
    %403 = arith.addf %401, %402 : vector<32x32xf32>
    %404 = arith.truncf %403 : vector<32x32xf32> to vector<32x32xbf16>
    %c3_147 = arith.constant 3 : index
    %c0_148 = arith.constant 0 : index
    %c0_149 = arith.constant 0 : index
    %405 = vector.load %arg3[%c3_147, %c0_148, %c0_149] : memref<5x32x96xbf16, #tpu.memory_space<vmem>>, vector<1x32x96xbf16>
    %406 = vector.shape_cast %405 : vector<1x32x96xbf16> to vector<32x96xbf16>
    %cst_150 = arith.constant dense<0.000000e+00> : vector<32x96xf32>
    %407 = tpu.matmul %404, %406, %cst_150 {dimension_numbers = #tpu.dot_dimension_numbers<[1], [0], [0], [1], [0, 0, 1, 1], [], []>} : vector<32x32xbf16>, vector<32x96xbf16>, vector<32x96xf32> -> vector<32x96xf32>
    %408 = vector.broadcast %379 : vector<1x96xf32> to vector<32x96xf32>
    %409 = arith.addf %407, %408 : vector<32x96xf32>
    %410 = vector.extract_strided_slice %409 {offsets = [0, 0], sizes = [32, 32], strides = [1, 1]} : vector<32x96xf32> to vector<32x32xf32>
    %411 = vector.extract_strided_slice %409 {offsets = [0, 32], sizes = [32, 32], strides = [1, 1]} : vector<32x96xf32> to vector<32x32xf32>
    %412 = vector.extract_strided_slice %409 {offsets = [0, 64], sizes = [32, 32], strides = [1, 1]} : vector<32x96xf32> to vector<32x32xf32>
    %413 = tpu.concatenate %410, %410, %410, %410 in 0 : vector<32x32xf32>, vector<32x32xf32>, vector<32x32xf32>, vector<32x32xf32> -> vector<128x32xf32>
    %414 = arith.mulf %413, %8 : vector<128x32xf32>
    %415 = arith.truncf %414 : vector<128x32xf32> to vector<128x32xbf16>
    %416 = arith.truncf %411 : vector<32x32xf32> to vector<32x32xbf16>
    %cst_151 = arith.constant dense<0.000000e+00> : vector<128x32xf32>
    %417 = tpu.matmul %415, %416, %cst_151 {dimension_numbers = #tpu.dot_dimension_numbers<[1], [1], [0], [0], [0, 0, 1, 0], [], []>} : vector<128x32xbf16>, vector<32x32xbf16>, vector<128x32xf32> -> vector<128x32xf32>
    %418 = arith.addf %417, %9 : vector<128x32xf32>
    %cst_152 = arith.constant dense<0xFF800000> : vector<128xf32>
    %419 = vector.multi_reduction <maximumf>, %418, %cst_152 [1] : vector<128x32xf32> to vector<128xf32>
    %420 = vector.shape_cast %419 : vector<128xf32> to vector<128x1xf32>
    %421 = vector.broadcast %420 : vector<128x1xf32> to vector<128x32xf32>
    %422 = arith.subf %418, %421 : vector<128x32xf32>
    %423 = math.exp %422 : vector<128x32xf32>
    %cst_153 = arith.constant dense<0.000000e+00> : vector<128xf32>
    %424 = vector.multi_reduction <add>, %423, %cst_153 [1] : vector<128x32xf32> to vector<128xf32>
    %425 = vector.shape_cast %424 : vector<128xf32> to vector<128x1xf32>
    %426 = tpu.reciprocal %425 {approx = true} : vector<128x1xf32> -> vector<128x1xf32>
    %427 = vector.broadcast %426 : vector<128x1xf32> to vector<128x32xf32>
    %428 = arith.mulf %423, %427 : vector<128x32xf32>
    %429 = arith.truncf %428 : vector<128x32xf32> to vector<128x32xbf16>
    %430 = arith.truncf %412 : vector<32x32xf32> to vector<32x32xbf16>
    %cst_154 = arith.constant dense<0.000000e+00> : vector<128x32xf32>
    %431 = tpu.matmul %429, %430, %cst_154 {dimension_numbers = #tpu.dot_dimension_numbers<[1], [0], [0], [1], [0, 0, 1, 1], [], []>} : vector<128x32xbf16>, vector<32x32xbf16>, vector<128x32xf32> -> vector<128x32xf32>
    %432 = arith.mulf %431, %6 : vector<128x32xf32>
    %433 = vector.extract_strided_slice %432 {offsets = [0, 0], sizes = [32, 32], strides = [1, 1]} : vector<128x32xf32> to vector<32x32xf32>
    %434 = vector.extract_strided_slice %432 {offsets = [32, 0], sizes = [32, 32], strides = [1, 1]} : vector<128x32xf32> to vector<32x32xf32>
    %435 = arith.addf %433, %434 : vector<32x32xf32>
    %436 = vector.extract_strided_slice %432 {offsets = [64, 0], sizes = [32, 32], strides = [1, 1]} : vector<128x32xf32> to vector<32x32xf32>
    %437 = arith.addf %435, %436 : vector<32x32xf32>
    %438 = vector.extract_strided_slice %432 {offsets = [96, 0], sizes = [32, 32], strides = [1, 1]} : vector<128x32xf32> to vector<32x32xf32>
    %439 = arith.addf %437, %438 : vector<32x32xf32>
    %440 = arith.truncf %439 : vector<32x32xf32> to vector<32x32xbf16>
    %c3_155 = arith.constant 3 : index
    %c0_156 = arith.constant 0 : index
    %c0_157 = arith.constant 0 : index
    %441 = vector.load %arg5[%c3_155, %c0_156, %c0_157] : memref<5x32x32xbf16, #tpu.memory_space<vmem>>, vector<1x32x32xbf16>
    %442 = vector.shape_cast %441 : vector<1x32x32xbf16> to vector<32x32xbf16>
    %cst_158 = arith.constant dense<0.000000e+00> : vector<32x32xf32>
    %443 = tpu.matmul %440, %442, %cst_158 {dimension_numbers = #tpu.dot_dimension_numbers<[1], [0], [0], [1], [0, 0, 1, 1], [], []>} : vector<32x32xbf16>, vector<32x32xbf16>, vector<32x32xf32> -> vector<32x32xf32>
    %444 = vector.broadcast %374 : vector<1x32xf32> to vector<32x32xf32>
    %445 = arith.addf %443, %444 : vector<32x32xf32>
    %446 = arith.addf %445, %369 : vector<32x32xf32>
    %cst_159 = arith.constant dense<0.000000e+00> : vector<32xf32>
    %447 = vector.multi_reduction <add>, %446, %cst_159 [1] : vector<32x32xf32> to vector<32xf32>
    %448 = vector.shape_cast %447 : vector<32xf32> to vector<32x1xf32>
    %cst_160 = arith.constant 3.200000e+01 : f32
    %449 = vector.broadcast %cst_160 : f32 to vector<32x1xf32>
    %450 = arith.divf %448, %449 : vector<32x1xf32>
    %451 = vector.broadcast %450 : vector<32x1xf32> to vector<32x32xf32>
    %452 = arith.subf %446, %451 : vector<32x32xf32>
    %453 = arith.mulf %452, %452 : vector<32x32xf32>
    %cst_161 = arith.constant dense<0.000000e+00> : vector<32xf32>
    %454 = vector.multi_reduction <add>, %453, %cst_161 [1] : vector<32x32xf32> to vector<32xf32>
    %455 = vector.shape_cast %454 : vector<32xf32> to vector<32x1xf32>
    %cst_162 = arith.constant 3.200000e+01 : f32
    %456 = vector.broadcast %cst_162 : f32 to vector<32x1xf32>
    %457 = arith.divf %455, %456 : vector<32x1xf32>
    %458 = vector.broadcast %450 : vector<32x1xf32> to vector<32x32xf32>
    %459 = arith.subf %446, %458 : vector<32x32xf32>
    %cst_163 = arith.constant 9.99999974E-6 : f32
    %460 = vector.broadcast %cst_163 : f32 to vector<32x1xf32>
    %461 = arith.addf %457, %460 : vector<32x1xf32>
    %462 = math.rsqrt %461 : vector<32x1xf32>
    %463 = vector.broadcast %462 : vector<32x1xf32> to vector<32x32xf32>
    %464 = arith.mulf %459, %463 : vector<32x32xf32>
    %465 = vector.broadcast %375 : vector<1x32xf32> to vector<32x32xf32>
    %466 = arith.mulf %464, %465 : vector<32x32xf32>
    %467 = vector.broadcast %376 : vector<1x32xf32> to vector<32x32xf32>
    %468 = arith.addf %466, %467 : vector<32x32xf32>
    %469 = arith.truncf %468 : vector<32x32xf32> to vector<32x32xbf16>
    %c3_164 = arith.constant 3 : index
    %c0_165 = arith.constant 0 : index
    %c0_166 = arith.constant 0 : index
    %470 = vector.load %arg6[%c3_164, %c0_165, %c0_166] : memref<5x32x96xbf16, #tpu.memory_space<vmem>>, vector<1x32x96xbf16>
    %471 = vector.shape_cast %470 : vector<1x32x96xbf16> to vector<32x96xbf16>
    %cst_167 = arith.constant dense<0.000000e+00> : vector<32x96xf32>
    %472 = tpu.matmul %469, %471, %cst_167 {dimension_numbers = #tpu.dot_dimension_numbers<[1], [0], [0], [1], [0, 0, 1, 1], [], []>} : vector<32x32xbf16>, vector<32x96xbf16>, vector<32x96xf32> -> vector<32x96xf32>
    %473 = vector.broadcast %381 : vector<1x96xf32> to vector<32x96xf32>
    %474 = arith.addf %472, %473 : vector<32x96xf32>
    %cst_168 = arith.constant 5.000000e-01 : f32
    %475 = vector.broadcast %cst_168 : f32 to vector<32x96xf32>
    %476 = arith.mulf %475, %474 : vector<32x96xf32>
    %cst_169 = arith.constant 0.707106769 : f32
    %477 = vector.broadcast %cst_169 : f32 to vector<32x96xf32>
    %478 = arith.mulf %474, %477 : vector<32x96xf32>
    %479 = math.erf %478 : vector<32x96xf32>
    %cst_170 = arith.constant 1.000000e+00 : f32
    %480 = vector.broadcast %cst_170 : f32 to vector<32x96xf32>
    %481 = arith.addf %480, %479 : vector<32x96xf32>
    %482 = arith.mulf %476, %481 : vector<32x96xf32>
    %483 = arith.truncf %482 : vector<32x96xf32> to vector<32x96xbf16>
    %c3_171 = arith.constant 3 : index
    %c0_172 = arith.constant 0 : index
    %c0_173 = arith.constant 0 : index
    %484 = vector.load %arg7[%c3_171, %c0_172, %c0_173] : memref<5x96x32xbf16, #tpu.memory_space<vmem>>, vector<1x96x32xbf16>
    %485 = vector.shape_cast %484 : vector<1x96x32xbf16> to vector<96x32xbf16>
    %cst_174 = arith.constant dense<0.000000e+00> : vector<32x32xf32>
    %486 = tpu.matmul %483, %485, %cst_174 {dimension_numbers = #tpu.dot_dimension_numbers<[1], [0], [0], [1], [0, 0, 1, 1], [], []>} : vector<32x96xbf16>, vector<96x32xbf16>, vector<32x32xf32> -> vector<32x32xf32>
    %487 = vector.broadcast %377 : vector<1x32xf32> to vector<32x32xf32>
    %488 = arith.addf %486, %487 : vector<32x32xf32>
    %489 = arith.addf %488, %446 : vector<32x32xf32>
    %c4 = arith.constant 4 : index
    %c0_175 = arith.constant 0 : index
    %c0_176 = arith.constant 0 : index
    %490 = vector.load %arg8[%c4, %c0_175, %c0_176] : memref<5x6x32xf32, #tpu.memory_space<vmem>>, vector<1x6x32xf32>
    %491 = vector.shape_cast %490 : vector<1x6x32xf32> to vector<6x32xf32>
    %492 = vector.extract_strided_slice %491 {offsets = [0, 0], sizes = [1, 32], strides = [1, 1]} : vector<6x32xf32> to vector<1x32xf32>
    %493 = vector.extract_strided_slice %491 {offsets = [1, 0], sizes = [1, 32], strides = [1, 1]} : vector<6x32xf32> to vector<1x32xf32>
    %494 = vector.extract_strided_slice %491 {offsets = [2, 0], sizes = [1, 32], strides = [1, 1]} : vector<6x32xf32> to vector<1x32xf32>
    %495 = vector.extract_strided_slice %491 {offsets = [3, 0], sizes = [1, 32], strides = [1, 1]} : vector<6x32xf32> to vector<1x32xf32>
    %496 = vector.extract_strided_slice %491 {offsets = [4, 0], sizes = [1, 32], strides = [1, 1]} : vector<6x32xf32> to vector<1x32xf32>
    %497 = vector.extract_strided_slice %491 {offsets = [5, 0], sizes = [1, 32], strides = [1, 1]} : vector<6x32xf32> to vector<1x32xf32>
    %c4_177 = arith.constant 4 : index
    %c0_178 = arith.constant 0 : index
    %c0_179 = arith.constant 0 : index
    %498 = vector.load %arg4[%c4_177, %c0_178, %c0_179] : memref<5x1x96xf32, #tpu.memory_space<vmem>>, vector<1x1x96xf32>
    %499 = vector.shape_cast %498 : vector<1x1x96xf32> to vector<1x96xf32>
    %c4_180 = arith.constant 4 : index
    %c0_181 = arith.constant 0 : index
    %c0_182 = arith.constant 0 : index
    %500 = vector.load %arg9[%c4_180, %c0_181, %c0_182] : memref<5x1x96xf32, #tpu.memory_space<vmem>>, vector<1x1x96xf32>
    %501 = vector.shape_cast %500 : vector<1x1x96xf32> to vector<1x96xf32>
    %cst_183 = arith.constant dense<0.000000e+00> : vector<32xf32>
    %502 = vector.multi_reduction <add>, %489, %cst_183 [1] : vector<32x32xf32> to vector<32xf32>
    %503 = vector.shape_cast %502 : vector<32xf32> to vector<32x1xf32>
    %cst_184 = arith.constant 3.200000e+01 : f32
    %504 = vector.broadcast %cst_184 : f32 to vector<32x1xf32>
    %505 = arith.divf %503, %504 : vector<32x1xf32>
    %506 = vector.broadcast %505 : vector<32x1xf32> to vector<32x32xf32>
    %507 = arith.subf %489, %506 : vector<32x32xf32>
    %508 = arith.mulf %507, %507 : vector<32x32xf32>
    %cst_185 = arith.constant dense<0.000000e+00> : vector<32xf32>
    %509 = vector.multi_reduction <add>, %508, %cst_185 [1] : vector<32x32xf32> to vector<32xf32>
    %510 = vector.shape_cast %509 : vector<32xf32> to vector<32x1xf32>
    %cst_186 = arith.constant 3.200000e+01 : f32
    %511 = vector.broadcast %cst_186 : f32 to vector<32x1xf32>
    %512 = arith.divf %510, %511 : vector<32x1xf32>
    %513 = vector.broadcast %505 : vector<32x1xf32> to vector<32x32xf32>
    %514 = arith.subf %489, %513 : vector<32x32xf32>
    %cst_187 = arith.constant 9.99999974E-6 : f32
    %515 = vector.broadcast %cst_187 : f32 to vector<32x1xf32>
    %516 = arith.addf %512, %515 : vector<32x1xf32>
    %517 = math.rsqrt %516 : vector<32x1xf32>
    %518 = vector.broadcast %517 : vector<32x1xf32> to vector<32x32xf32>
    %519 = arith.mulf %514, %518 : vector<32x32xf32>
    %520 = vector.broadcast %492 : vector<1x32xf32> to vector<32x32xf32>
    %521 = arith.mulf %519, %520 : vector<32x32xf32>
    %522 = vector.broadcast %493 : vector<1x32xf32> to vector<32x32xf32>
    %523 = arith.addf %521, %522 : vector<32x32xf32>
    %524 = arith.truncf %523 : vector<32x32xf32> to vector<32x32xbf16>
    %c4_188 = arith.constant 4 : index
    %c0_189 = arith.constant 0 : index
    %c0_190 = arith.constant 0 : index
    %525 = vector.load %arg3[%c4_188, %c0_189, %c0_190] : memref<5x32x96xbf16, #tpu.memory_space<vmem>>, vector<1x32x96xbf16>
    %526 = vector.shape_cast %525 : vector<1x32x96xbf16> to vector<32x96xbf16>
    %cst_191 = arith.constant dense<0.000000e+00> : vector<32x96xf32>
    %527 = tpu.matmul %524, %526, %cst_191 {dimension_numbers = #tpu.dot_dimension_numbers<[1], [0], [0], [1], [0, 0, 1, 1], [], []>} : vector<32x32xbf16>, vector<32x96xbf16>, vector<32x96xf32> -> vector<32x96xf32>
    %528 = vector.broadcast %499 : vector<1x96xf32> to vector<32x96xf32>
    %529 = arith.addf %527, %528 : vector<32x96xf32>
    %530 = vector.extract_strided_slice %529 {offsets = [0, 0], sizes = [32, 32], strides = [1, 1]} : vector<32x96xf32> to vector<32x32xf32>
    %531 = vector.extract_strided_slice %529 {offsets = [0, 32], sizes = [32, 32], strides = [1, 1]} : vector<32x96xf32> to vector<32x32xf32>
    %532 = vector.extract_strided_slice %529 {offsets = [0, 64], sizes = [32, 32], strides = [1, 1]} : vector<32x96xf32> to vector<32x32xf32>
    %533 = tpu.concatenate %530, %530, %530, %530 in 0 : vector<32x32xf32>, vector<32x32xf32>, vector<32x32xf32>, vector<32x32xf32> -> vector<128x32xf32>
    %534 = arith.mulf %533, %8 : vector<128x32xf32>
    %535 = arith.truncf %534 : vector<128x32xf32> to vector<128x32xbf16>
    %536 = arith.truncf %531 : vector<32x32xf32> to vector<32x32xbf16>
    %cst_192 = arith.constant dense<0.000000e+00> : vector<128x32xf32>
    %537 = tpu.matmul %535, %536, %cst_192 {dimension_numbers = #tpu.dot_dimension_numbers<[1], [1], [0], [0], [0, 0, 1, 0], [], []>} : vector<128x32xbf16>, vector<32x32xbf16>, vector<128x32xf32> -> vector<128x32xf32>
    %538 = arith.addf %537, %9 : vector<128x32xf32>
    %cst_193 = arith.constant dense<0xFF800000> : vector<128xf32>
    %539 = vector.multi_reduction <maximumf>, %538, %cst_193 [1] : vector<128x32xf32> to vector<128xf32>
    %540 = vector.shape_cast %539 : vector<128xf32> to vector<128x1xf32>
    %541 = vector.broadcast %540 : vector<128x1xf32> to vector<128x32xf32>
    %542 = arith.subf %538, %541 : vector<128x32xf32>
    %543 = math.exp %542 : vector<128x32xf32>
    %cst_194 = arith.constant dense<0.000000e+00> : vector<128xf32>
    %544 = vector.multi_reduction <add>, %543, %cst_194 [1] : vector<128x32xf32> to vector<128xf32>
    %545 = vector.shape_cast %544 : vector<128xf32> to vector<128x1xf32>
    %546 = tpu.reciprocal %545 {approx = true} : vector<128x1xf32> -> vector<128x1xf32>
    %547 = vector.broadcast %546 : vector<128x1xf32> to vector<128x32xf32>
    %548 = arith.mulf %543, %547 : vector<128x32xf32>
    %549 = arith.truncf %548 : vector<128x32xf32> to vector<128x32xbf16>
    %550 = arith.truncf %532 : vector<32x32xf32> to vector<32x32xbf16>
    %cst_195 = arith.constant dense<0.000000e+00> : vector<128x32xf32>
    %551 = tpu.matmul %549, %550, %cst_195 {dimension_numbers = #tpu.dot_dimension_numbers<[1], [0], [0], [1], [0, 0, 1, 1], [], []>} : vector<128x32xbf16>, vector<32x32xbf16>, vector<128x32xf32> -> vector<128x32xf32>
    %552 = arith.mulf %551, %6 : vector<128x32xf32>
    %553 = vector.extract_strided_slice %552 {offsets = [0, 0], sizes = [32, 32], strides = [1, 1]} : vector<128x32xf32> to vector<32x32xf32>
    %554 = vector.extract_strided_slice %552 {offsets = [32, 0], sizes = [32, 32], strides = [1, 1]} : vector<128x32xf32> to vector<32x32xf32>
    %555 = arith.addf %553, %554 : vector<32x32xf32>
    %556 = vector.extract_strided_slice %552 {offsets = [64, 0], sizes = [32, 32], strides = [1, 1]} : vector<128x32xf32> to vector<32x32xf32>
    %557 = arith.addf %555, %556 : vector<32x32xf32>
    %558 = vector.extract_strided_slice %552 {offsets = [96, 0], sizes = [32, 32], strides = [1, 1]} : vector<128x32xf32> to vector<32x32xf32>
    %559 = arith.addf %557, %558 : vector<32x32xf32>
    %560 = arith.truncf %559 : vector<32x32xf32> to vector<32x32xbf16>
    %c4_196 = arith.constant 4 : index
    %c0_197 = arith.constant 0 : index
    %c0_198 = arith.constant 0 : index
    %561 = vector.load %arg5[%c4_196, %c0_197, %c0_198] : memref<5x32x32xbf16, #tpu.memory_space<vmem>>, vector<1x32x32xbf16>
    %562 = vector.shape_cast %561 : vector<1x32x32xbf16> to vector<32x32xbf16>
    %cst_199 = arith.constant dense<0.000000e+00> : vector<32x32xf32>
    %563 = tpu.matmul %560, %562, %cst_199 {dimension_numbers = #tpu.dot_dimension_numbers<[1], [0], [0], [1], [0, 0, 1, 1], [], []>} : vector<32x32xbf16>, vector<32x32xbf16>, vector<32x32xf32> -> vector<32x32xf32>
    %564 = vector.broadcast %494 : vector<1x32xf32> to vector<32x32xf32>
    %565 = arith.addf %563, %564 : vector<32x32xf32>
    %566 = arith.addf %565, %489 : vector<32x32xf32>
    %cst_200 = arith.constant dense<0.000000e+00> : vector<32xf32>
    %567 = vector.multi_reduction <add>, %566, %cst_200 [1] : vector<32x32xf32> to vector<32xf32>
    %568 = vector.shape_cast %567 : vector<32xf32> to vector<32x1xf32>
    %cst_201 = arith.constant 3.200000e+01 : f32
    %569 = vector.broadcast %cst_201 : f32 to vector<32x1xf32>
    %570 = arith.divf %568, %569 : vector<32x1xf32>
    %571 = vector.broadcast %570 : vector<32x1xf32> to vector<32x32xf32>
    %572 = arith.subf %566, %571 : vector<32x32xf32>
    %573 = arith.mulf %572, %572 : vector<32x32xf32>
    %cst_202 = arith.constant dense<0.000000e+00> : vector<32xf32>
    %574 = vector.multi_reduction <add>, %573, %cst_202 [1] : vector<32x32xf32> to vector<32xf32>
    %575 = vector.shape_cast %574 : vector<32xf32> to vector<32x1xf32>
    %cst_203 = arith.constant 3.200000e+01 : f32
    %576 = vector.broadcast %cst_203 : f32 to vector<32x1xf32>
    %577 = arith.divf %575, %576 : vector<32x1xf32>
    %578 = vector.broadcast %570 : vector<32x1xf32> to vector<32x32xf32>
    %579 = arith.subf %566, %578 : vector<32x32xf32>
    %cst_204 = arith.constant 9.99999974E-6 : f32
    %580 = vector.broadcast %cst_204 : f32 to vector<32x1xf32>
    %581 = arith.addf %577, %580 : vector<32x1xf32>
    %582 = math.rsqrt %581 : vector<32x1xf32>
    %583 = vector.broadcast %582 : vector<32x1xf32> to vector<32x32xf32>
    %584 = arith.mulf %579, %583 : vector<32x32xf32>
    %585 = vector.broadcast %495 : vector<1x32xf32> to vector<32x32xf32>
    %586 = arith.mulf %584, %585 : vector<32x32xf32>
    %587 = vector.broadcast %496 : vector<1x32xf32> to vector<32x32xf32>
    %588 = arith.addf %586, %587 : vector<32x32xf32>
    %589 = arith.truncf %588 : vector<32x32xf32> to vector<32x32xbf16>
    %c4_205 = arith.constant 4 : index
    %c0_206 = arith.constant 0 : index
    %c0_207 = arith.constant 0 : index
    %590 = vector.load %arg6[%c4_205, %c0_206, %c0_207] : memref<5x32x96xbf16, #tpu.memory_space<vmem>>, vector<1x32x96xbf16>
    %591 = vector.shape_cast %590 : vector<1x32x96xbf16> to vector<32x96xbf16>
    %cst_208 = arith.constant dense<0.000000e+00> : vector<32x96xf32>
    %592 = tpu.matmul %589, %591, %cst_208 {dimension_numbers = #tpu.dot_dimension_numbers<[1], [0], [0], [1], [0, 0, 1, 1], [], []>} : vector<32x32xbf16>, vector<32x96xbf16>, vector<32x96xf32> -> vector<32x96xf32>
    %593 = vector.broadcast %501 : vector<1x96xf32> to vector<32x96xf32>
    %594 = arith.addf %592, %593 : vector<32x96xf32>
    %cst_209 = arith.constant 5.000000e-01 : f32
    %595 = vector.broadcast %cst_209 : f32 to vector<32x96xf32>
    %596 = arith.mulf %595, %594 : vector<32x96xf32>
    %cst_210 = arith.constant 0.707106769 : f32
    %597 = vector.broadcast %cst_210 : f32 to vector<32x96xf32>
    %598 = arith.mulf %594, %597 : vector<32x96xf32>
    %599 = math.erf %598 : vector<32x96xf32>
    %cst_211 = arith.constant 1.000000e+00 : f32
    %600 = vector.broadcast %cst_211 : f32 to vector<32x96xf32>
    %601 = arith.addf %600, %599 : vector<32x96xf32>
    %602 = arith.mulf %596, %601 : vector<32x96xf32>
    %603 = arith.truncf %602 : vector<32x96xf32> to vector<32x96xbf16>
    %c4_212 = arith.constant 4 : index
    %c0_213 = arith.constant 0 : index
    %c0_214 = arith.constant 0 : index
    %604 = vector.load %arg7[%c4_212, %c0_213, %c0_214] : memref<5x96x32xbf16, #tpu.memory_space<vmem>>, vector<1x96x32xbf16>
    %605 = vector.shape_cast %604 : vector<1x96x32xbf16> to vector<96x32xbf16>
    %cst_215 = arith.constant dense<0.000000e+00> : vector<32x32xf32>
    %606 = tpu.matmul %603, %605, %cst_215 {dimension_numbers = #tpu.dot_dimension_numbers<[1], [0], [0], [1], [0, 0, 1, 1], [], []>} : vector<32x96xbf16>, vector<96x32xbf16>, vector<32x32xf32> -> vector<32x32xf32>
    %607 = vector.broadcast %497 : vector<1x32xf32> to vector<32x32xf32>
    %608 = arith.addf %606, %607 : vector<32x32xf32>
    %609 = arith.addf %608, %566 : vector<32x32xf32>
    %c0_216 = arith.constant 0 : index
    %c0_217 = arith.constant 0 : index
    %610 = vector.load %arg12[%c0_216, %c0_217] : memref<32x32xf32, #tpu.memory_space<vmem>>, vector<32x32xf32>
    tpu.vector_store %arg12[%c0_216, %c0_217], %609 {strides = array<i32>} : memref<32x32xf32, #tpu.memory_space<vmem>>, vector<32x32xf32>,
    return
  }
}

</mosaic_0001>

<bundles_post_ra>
// kernel: tpu_custom_call.1
= control target key start
LH: loop header
LB: loop body
LE: loop exit
PB: predicated region body
PF: predicated region fallthrough
CT: control target
= control target key end

     0   :  { %vm88_vm0 = vcmask 392192   ;;  %s9254_s0 = inlined_call_operand.vmem [shape: bf16[32,48], index: 0, kind: input, shape index: {}]   ;;  %s9255_s1 = inlined_call_operand.vmem [shape: bf16[48,32], index: 1, kind: input, shape index: {}]   ;;  %s9256_s2 = inlined_call_operand.vmem [shape: f32[1,32], index: 2, kind: input, shape index: {}]   ;;  %s9257_s3 = inlined_call_operand.vmem [shape: bf16[5,32,96], index: 3, kind: input, shape index: {}]   ;;  %s9258_s4 = inlined_call_operand.vmem [shape: f32[5,1,96], index: 4, kind: input, shape index: {}]   ;;  %s9259_s5 = inlined_call_operand.vmem [shape: bf16[5,32,32], index: 5, kind: input, shape index: {}]   ;;  %s9260_s6 = inlined_call_operand.vmem [shape: bf16[5,32,96], index: 6, kind: input, shape index: {}]   ;;  %s9261_s7 = inlined_call_operand.vmem [shape: bf16[5,96,32], index: 7, kind: input, shape index: {}]   ;;  %s9262_s8 = inlined_call_operand.vmem [shape: f32[5,6,32], index: 8, kind: input, shape index: {}]   ;;  %s9263_s9 = inlined_call_operand.vmem [shape: f32[5,1,96], index: 9, kind: input, shape index: {}]   ;;  %s9264_s10 = inlined_call_operand.vmem [shape: f32[128,32], index: 10, kind: input, shape index: {}]   ;;  %s9265_s11 = inlined_call_operand.vmem [shape: f32[128,32], index: 11, kind: input, shape index: {}]   ;;  %s9266_s12 = inlined_call_operand.hbm [shape: f32[32,32], index: 12, kind: output, shape index: {}]  }
   0x1   :  { %v6224_v0 = vld [vmem:[%s9255_s1] sm:$0xff]   ;;  %v6225_v1 = vld [vmem:[%s9255_s1 + $0x8] sm:$0xff]   ;;  %v6226_v3 = vld [vmem:[%s9255_s1 + $0x10] sm:$0xff]  }
   0x2   :  { %5799 = vmatprep.subr.bf16.mxu0 %v6224_v0  ;;  %v6227_v2 = vld [vmem:[%s9254_s0] sm:$0xff]   ;;  %v6228_v4 = vld [vmem:[%s9254_s0 + $0x8] sm:$0xff]  }
   0x3   :  { %5800 = vmatpush3.bf16.msra.mxu0 %v6224_v0  ;;  %5805 = vmatprep.mubr.msk.bf16.mxu0 %vm88_vm0, %v6227_v2 }
   0x4   :  { %5801 = vmatprep.subr.bf16.mxu0 %v6225_v1 }
   0x7   :  { %5802 = vmatpush3.bf16.msra.mxu0 %v6225_v1 }
   0x8   :  { %5803 = vmatprep.subr.bf16.mxu0 %v6226_v3 }
   0xb   :  { %5804 = vmatpush3.bf16.msra.mxu0 %v6226_v3 }
   0xe   :  { %5806 = vmatmul.mubr.msk.bf16.vlgmr.msra.gmra.mrb[0].mxu0 %vm88_vm0, %v6228_v4 }
   0xf   :  { %17 = vsyncpa [#allocation3], 0  ;;  %v5288_v5 = vld [vmem:[%s9256_s2] ss:$0 sm:$0xff]  ;;  %vm195_vm1 = vcmask 261120   ;;  %v6230_v39 = vld [vmem:[%s9257_s3 + $0x8] sm:$0xff]   ;;  %v249_v44 = vlaneseq }
  0x10   :  { %v6229_v38 = vld [vmem:[%s9257_s3] sm:$0xff]   ;;  %s6886_s13 = smov 96   ;;  %s6887_s23 = smov 64   ;;  %vm1144_vm2 = vcmask 785408  }
  0x11   :  { %5809 = vmatprep.subr.bf16.mxu0 %v6229_v38  ;;  %v7004_v50 = vshrl.u32 %v249_v44, 7  ;;  %v7012_v55 = vld [vmem:[%s9262_s8] sm:$0x3f]  ;;  %s6888_s28 = smov [#allocation2]  }
  0x12   :  { %5810 = vmatpush3.bf16.msra.mxu0 %v6229_v38  ;;  %v7113_v38 = vld [vmem:[%s9264_s10 + $0x60] sm:$0xff]  ;;  %s5277_s29 = sshll.u32 %s6888_s28, 4  ;;  %s5278_s29 = int_to_ptr.vmem [resolvable:$true] %s5277_s29 }
  0x13   :  { %5811 = vmatprep.subr.bf16.mxu0 %v6230_v39  ;;  %v7007_v54 = vsub.s32 0, %v7004_v50  ;;  %v7017_v59 = vsub.s32 1, %v7004_v50  ;;  %p6867_p1 = scmp.lt.s32.totalorder %s5278_s29, %s5278_s29 }
  0x15   :  { %v252_v57 = vrot.slane %v7012_v55, %v7007_v54  ;;  %v260_v0 = vrot.slane %v7012_v55, %v7017_v59 }
  0x16   :  { %5812 = vmatpush3.bf16.msra.mxu0 %v6230_v39  ;;  %v7118_v39 = vld [vmem:[%s9264_s10 + $0x68] sm:$0xff] }
  0xe1   :  { %v5807_v6 = vpop.f32.mrb[0].mxu0 }
  0xe2   :  { %v6974_v7 = vadd.f32 %v5807_v6, %v5288_v5  ;;  %v129_v8 = vpop.f32.mrb[1].mxu0 }
  0xe3   :  { %v6976_v9 = vadd.f32 %v5288_v5, %v129_v8  ;;  %v5808_v10 = vpop.f32.mrb[2].mxu0 }
  0xe4   :  { %v6978_v11 = vadd.f32 %v5808_v10, %v5288_v5  ;;  %v132_v12 = vpop.f32.mrb[3].mxu0  ;;  %v202_v13 = vsel %vm195_vm1, %v6974_v7, 0.0 }
  0xe5   :  { %v6982_v14 = vadd.f32 %v5288_v5, %v132_v12  ;;  %203 = vadd.xlane.f32.xlu1 %v202_v13  ;;  %v196_v15 = vsel %vm195_vm1, %v6976_v9, 0.0 }
  0xe6   :  { %197 = vadd.xlane.f32.xlu0 %v196_v15  ;;  %v205_v16 = vsel %vm195_vm1, %v6978_v11, 0.0 }
  0xe7   :  { %v199_v17 = vsel %vm195_vm1, %v6982_v14, 0.0 }
  0xe9   :  { %206 = vadd.xlane.f32.xlu1 %v205_v16 }
  0xea   :  { %200 = vadd.xlane.f32.xlu0 %v199_v17  ;;  %v7026_v17 = vld [vmem:[%s9264_s10 + $0x10] sm:$0xff] }
 0x172   :  { %v204_v18 = vpop.xlane.xlu1 %203 }
 0x173   :  { %v211_v19 = vmul.f32 0.03125, %v204_v18  ;;  %v198_v20 = vpop.xlane.xlu0 %197  ;;  %v7031_v18 = vld [vmem:[%s9264_s10 + $0x30] sm:$0xff] }
 0x174   :  { %v209_v21 = vmul.f32 0.03125, %v198_v20  ;;  %v7041_v20 = vld [vmem:[%s9264_s10 + $0x20] sm:$0xff] }
 0x175   :  { %v215_v22 = vsub.f32 %v6974_v7, %v211_v19  ;;  %v7036_v19 = vld [vmem:[%s9264_s10] sm:$0xff] }
 0x176   :  { %v213_v23 = vsub.f32 %v6976_v9, %v209_v21  ;;  %v207_v24 = vpop.xlane.xlu1 %206  ;;  %v7046_v21 = vld [vmem:[%s9264_s10 + $0x18] sm:$0xff] }
 0x177   :  { %v212_v25 = vmul.f32 0.03125, %v207_v24  ;;  %v201_v26 = vpop.xlane.xlu0 %200  ;;  %v219_v32 = vmul.f32 %v215_v22, %v215_v22  ;;  %v7059_v24 = vmul.f32 0.35355338, %v7026_v17 }
 0x178   :  { %v210_v27 = vmul.f32 0.03125, %v201_v26  ;;  %v217_v28 = vmul.f32 %v213_v23, %v213_v23  ;;  %v7067_v26 = vmul.f32 0.35355338, %v7031_v18 }
 0x179   :  { %v216_v29 = vsub.f32 %v6978_v11, %v212_v25  ;;  %v227_v34 = vsel %vm195_vm1, %v219_v32, 0.0  ;;  %v7064_v25 = vld [vmem:[%s9264_s10 + $0x28] sm:$0xff]  ;;  %v7089_v32 = vmul.f32 0.35355338, %v7046_v21 }
 0x17a   :  { %v214_v30 = vsub.f32 %v6982_v14, %v210_v27  ;;  %v221_v31 = vsel %vm195_vm1, %v217_v28, 0.0  ;;  %v5296_v27 = vld [vmem:[%s9258_s4] ss:$0 sm:$0xff]  ;;  %v7073_v28 = vmul.f32 0.35355338, %v7036_v19 }
 0x17b   :  { %222 = vadd.xlane.f32.xlu0 %v221_v31  ;;  %v220_v36 = vmul.f32 %v216_v29, %v216_v29  ;;  %v7086_v31 = vld [vmem:[%s9264_s10 + $0x50] sm:$0xff]  ;;  %9289 = vst [vmem:[#allocation5_spill] sm:$0xff] %v7089_v32 }
 0x17c   :  { %v218_v33 = vmul.f32 %v214_v30, %v214_v30 }
 0x17d   :  { %v230_v37 = vsel %vm195_vm1, %v220_v36, 0.0 }
 0x17e   :  { %v224_v35 = vsel %vm195_vm1, %v218_v33, 0.0 }
 0x17f   :  { %228 = vadd.xlane.f32.xlu0 %v227_v34  ;;  %225 = vadd.xlane.f32.xlu1 %v224_v35  ;;  %v7097_v34 = vld [vmem:[%s9264_s10 + $0x48] sm:$0xff]  ;;  %v7102_v35 = vld [vmem:[%s9264_s10 + $0x58] sm:$0xff] }
 0x183   :  { %231 = vadd.xlane.f32.xlu1 %v230_v37  ;;  %v7108_v37 = vmul.f32 0.35355338, %v7064_v25 }
 0x185   :  { %9292 = vst [vmem:[#allocation8_spill] sm:$0xff] %v7108_v37 }
 0x208   :  { %v223_v40 = vpop.xlane.xlu0 %222 }
 0x209   :  { %v233_v41 = vmul.f32 0.03125, %v223_v40 }
 0x20b   :  { %v237_v42 = vadd.f32 1e-05, %v233_v41  ;;  %v7124_v41 = vmul.f32 0.35355338, %v7086_v31 }
 0x20c   :  { %v226_v43 = vpop.xlane.xlu1 %225  ;;  %v229_v45 = vpop.xlane.xlu0 %228 }
 0x20d   :  { %6289 = vrsqrt.f32 %v237_v42  ;;  %v234_v46 = vmul.f32 0.03125, %v226_v43  ;;  %v235_v47 = vmul.f32 0.03125, %v229_v45  ;;  %v7129_v42 = vld [vmem:[%s9264_s10 + $0x70] sm:$0xff]  ;;  %v7134_v43 = vld [vmem:[%s9264_s10 + $0x78] sm:$0xff]  ;;  %v7137_v45 = vmul.f32 0.35355338, %v7097_v34 }
 0x20f   :  { %v238_v48 = vadd.f32 1e-05, %v234_v46  ;;  %v239_v49 = vadd.f32 1e-05, %v235_v47  ;;  %9294 = vst [vmem:[#allocation10_spill] sm:$0xff] %v7137_v45 }
 0x210   :  { %v232_v51 = vpop.xlane.xlu1 %231  ;;  %v7140_v46 = vmul.f32 0.35355338, %v7102_v35 }
 0x211   :  { %6291 = vrsqrt.f32 %v238_v48  ;;  %v236_v52 = vmul.f32 0.03125, %v232_v51  ;;  %v7146_v51 = vmul.f32 0.35355338, %v7118_v39 }
 0x212   :  { %6293 = vrsqrt.f32 %v239_v49  ;;  %9295 = vst [vmem:[#allocation11_spill] sm:$0xff] %v7140_v46  ;;  %v7143_v49 = vmul.f32 0.35355338, %v7113_v38 }
 0x213   :  { %v240_v53 = vadd.f32 1e-05, %v236_v52  ;;  %9297 = vst [vmem:[#allocation13_spill] sm:$0xff] %v7146_v51 }
 0x214   :  { %9296 = vst [vmem:[#allocation12_spill] sm:$0xff] %v7143_v49 }
 0x215   :  { %6295 = vrsqrt.f32 %v240_v53 }
 0x217   :  { %v6290_v56 = vpop.eup %6289 }
 0x218   :  { %v245_v58 = vmul.f32 %v6290_v56, %v213_v23  ;;  %v7056_v23 = vld [vmem:[%s9264_s10 + $0x8] sm:$0xff]  ;;  %v7149_v56 = vmul.f32 0.35355338, %v7129_v42 }
 0x219   :  { %v7105_v36 = vmul.f32 0.35355338, %v7056_v23 }
 0x21a   :  { %v253_v63 = vmul.f32 %v252_v57, %v245_v58  ;;  %9298 = vst [vmem:[#allocation14_spill] sm:$0xff] %v7149_v56 }
 0x21b   :  { %v6292_v60 = vpop.eup %6291  ;;  %9291 = vst [vmem:[#allocation7_spill] sm:$0xff] %v7105_v36 }
 0x21c   :  { %v6294_v61 = vpop.eup %6293  ;;  %v246_v62 = vmul.f32 %v6292_v60, %v214_v30  ;;  %v261_v6 = vadd.f32 %v260_v0, %v253_v63  ;;  %v7081_v30 = vld [vmem:[%s9264_s10 + $0x40] sm:$0xff] }
 0x21d   :  { %v247_v1 = vmul.f32 %v6294_v61, %v215_v22  ;;  %v7051_v22 = vld [vmem:[%s9264_s10 + $0x38] sm:$0xff]  ;;  %v7121_v40 = vmul.f32 0.35355338, %v7081_v30 }
 0x21e   :  { %v254_v2 = vmul.f32 %v252_v57, %v246_v62  ;;  %v7092_v33 = vmul.f32 0.35355338, %v7051_v22 }
 0x21f   :  { %v6296_v3 = vpop.eup %6295  ;;  %v255_v4 = vmul.f32 %v252_v57, %v247_v1  ;;  %9293 = vst [vmem:[#allocation9_spill] sm:$0xff] %v7121_v40 }
 0x220   :  { %v248_v5 = vmul.f32 %v6296_v3, %v216_v29  ;;  %v262_v8 = vadd.f32 %v260_v0, %v254_v2  ;;  %v7076_v29 = vmul.f32 0.35355338, %v7041_v20  ;;  %9290 = vst [vmem:[#allocation6_spill] sm:$0xff] %v7092_v33 }
 0x221   :  { %v263_v13 = vadd.f32 %v260_v0, %v255_v4 }
 0x222   :  { %v256_v10 = vmul.f32 %v252_v57, %v248_v5  ;;  %v265_v12 = vpack.c.bf16 %v262_v8, %v261_v6  ;;  %v7152_v57 = vmul.f32 0.35355338, %v7134_v43 }
 0x224   :  { %5813 = vmatprep.mubr.msk.bf16.mxu0 %vm195_vm1, %v265_v12  ;;  %v264_v15 = vadd.f32 %v260_v0, %v256_v10  ;;  %9299 = vst [vmem:[#allocation15_spill] sm:$0xff] %v7152_v57 }
 0x226   :  { %v266_v16 = vpack.c.bf16 %v264_v15, %v263_v13 }
 0x228   :  { %5814 = vmatmul.mubr.msk.bf16.vlgmr.msra.gmra.mrb[4].mxu0 %vm195_vm1, %v266_v16 }
 0x2fb   :  { %v5815_v44 = vpop.f32.mrb[4].mxu0 }
 0x2fc   :  { %v338_v47 = vadd.f32 %v5815_v44, %v5296_v27  ;;  %v329_v48 = vpop.f32.mrb[5].mxu0 }
 0x2fd   :  { %v330_v52 = vadd.f32 %v5296_v27, %v329_v48  ;;  %v5816_v53 = vpop.f32.mrb[6].mxu0 }
 0x2fe   :  { %v341_v58 = vadd.f32 %v5816_v53, %v5296_v27  ;;  %v332_v60 = vpop.f32.mrb[7].mxu0  ;;  %v346_v61 = vmul.f32 %v338_v47, %v7059_v24  ;;  %v350_v62 = vmul.f32 %v338_v47, %v7067_v26  ;;  %v354_v63 = vmul.f32 %v338_v47, %v7124_v41 }
 0x2ff   :  { %v333_v0 = vadd.f32 %v5296_v27, %v332_v60  ;;  %v344_v1 = vmul.f32 %v330_v52, %v7073_v28  ;;  %v348_v2 = vmul.f32 %v330_v52, %v7076_v29  ;;  %v352_v3 = vmul.f32 %v330_v52, %v7121_v40 }
 0x300   :  { %v7160_v4 = vpack.c.bf16 %v341_v58, %v338_v47  ;;  %v347_v5 = vmul.f32 %v341_v58, %v7089_v32  ;;  %v351_v6 = vmul.f32 %v341_v58, %v7092_v33  ;;  %v355_v8 = vmul.f32 %v341_v58, %v7140_v46 }
 0x301   :  { %v7165_v10 = vpack.c.bf16 %v333_v0, %v330_v52  ;;  %v345_v12 = vmul.f32 %v333_v0, %v7105_v36  ;;  %v349_v13 = vmul.f32 %v333_v0, %v7108_v37  ;;  %v353_v15 = vmul.f32 %v333_v0, %v7137_v45 }
 0x302   :  { %374 = vrot.lane.b32.xlu1 %v7160_v4, %s6886_s13  ;;  %v361_v16 = vpack.c.bf16 %v347_v5, %v346_v61  ;;  %v363_v27 = vpack.c.bf16 %v351_v6, %v350_v62  ;;  %v365_v44 = vpack.c.bf16 %v355_v8, %v354_v63  ;;  %v356_v48 = vmul.f32 %v330_v52, %v7143_v49 }
 0x303   :  { %372 = vrot.lane.b32.xlu0 %v7165_v10, %s6886_s13  ;;  %v360_v53 = vpack.c.bf16 %v345_v12, %v344_v1  ;;  %v362_v60 = vpack.c.bf16 %v349_v13, %v348_v2  ;;  %v364_v46 = vpack.c.bf16 %v353_v15, %v352_v3  ;;  %v357_v36 = vmul.f32 %v333_v0, %v7146_v51  ;;  %v180_v13 = vld [vmem:[%s9265_s11 + $0x20] sm:$0xff] }
 0x304   :  { %v358_v37 = vmul.f32 %v338_v47, %v7149_v56  ;;  %v359_v45 = vmul.f32 %v341_v58, %v7152_v57  ;;  %v179_v47 = vld [vmem:[%s9265_s11 + $0x18] sm:$0xff] }
 0x305   :  { %5821 = vmatprep.mubr.msk.bf16.mxu1 %vm195_vm1, %v360_v53  ;;  %v366_v33 = vpack.c.bf16 %v357_v36, %v356_v48  ;;  %v176_v36 = vld [vmem:[%s9265_s11] sm:$0xff] }
 0x306   :  { %v367_v61 = vpack.c.bf16 %v359_v45, %v358_v37 }
 0x374   :  { %v375_v63 = vpop.permute.xlu1 %374 }
 0x375   :  { %v373_v62 = vpop.permute.xlu0 %372  ;;  %v404_v1 = vsel %vm195_vm1, %v375_v63, 0 }
 0x376   :  { %6209 = vmatprep.subr.msk.bf16.mxu1 %vm195_vm1, %v373_v62  ;;  %v401_v52 = vsel %vm195_vm1, %v373_v62, 0  ;;  %v183_v62 = vld [vmem:[%s9265_s11 + $0x38] sm:$0xff] }
 0x377   :  { %5818 = vmatpush3.bf16.xpose.msra.mxu1 %v401_v52 }
 0x378   :  { %6210 = vmatprep.subr.msk.bf16.mxu1 %vm195_vm1, %v375_v63 }
 0x37f   :  { %5820 = vmatpush3.bf16.xpose.msra.mxu1 %v404_v1 }
 0x386   :  { %5822 = vmatmul.mubr.msk.bf16.vlgmr.msra.gmra.mrb[0].mxu1 %vm195_vm1, %v361_v16 }
 0x387   :  { %5825 = vmatprep.mubr.msk.bf16.mxu1 %vm195_vm1, %v362_v60 }
 0x38e   :  { %5826 = vmatmul.mubr.msk.bf16.gmra.mrb[4].mxu1 %vm195_vm1, %v363_v27 }
 0x38f   :  { %5829 = vmatprep.mubr.msk.bf16.mxu1 %vm195_vm1, %v364_v46  ;;  %v177_v46 = vld [vmem:[%s9265_s11 + $0x8] sm:$0xff] }
 0x396   :  { %5830 = vmatmul.mubr.msk.bf16.gmra.mrb[8].mxu1 %vm195_vm1, %v365_v44  ;;  %v181_v44 = vld [vmem:[%s9265_s11 + $0x28] sm:$0xff] }
 0x397   :  { %5833 = vmatprep.mubr.msk.bf16.mxu1 %vm195_vm1, %v366_v33  ;;  %v178_v33 = vld [vmem:[%s9265_s11 + $0x10] sm:$0xff] }
 0x39e   :  { %5834 = vmatmul.mubr.msk.bf16.gmra.mrb[12].mxu1 %vm195_vm1, %v367_v61  ;;  %v182_v61 = vld [vmem:[%s9265_s11 + $0x30] sm:$0xff] }
 0x459   :  { %v5823_v37 = vpop.f32.mrb[0].mxu1 }
 0x45a   :  { %v440_v45 = vpop.f32.mrb[1].mxu1  ;;  %v7210_v8 = vadd.f32 %v5823_v37, %v178_v33  ;;  %v185_v33 = vld [vmem:[%s9265_s11 + $0x48] sm:$0xff] }
 0x45b   :  { %v7199_v58 = vadd.f32 %v440_v45, %v176_v36  ;;  %v5824_v0 = vpop.f32.mrb[2].mxu1 }
 0x45c   :  { %v443_v2 = vpop.f32.mrb[3].mxu1  ;;  %v7204_v3 = vadd.f32 %v5824_v0, %v179_v47  ;;  %v509_v60 = vsel %vm195_vm1, %v7210_v8, -inf  ;;  %v184_v47 = vld [vmem:[%s9265_s11 + $0x40] sm:$0xff] }
 0x45d   :  { %v7206_v5 = vadd.f32 %v443_v2, %v177_v46  ;;  %v503_v6 = vsel %vm195_vm1, %v7199_v58, -inf }
 0x45e   :  { %504 = vmax.xlane.f32.xlu1 %v503_v6  ;;  %v512_v16 = vsel %vm195_vm1, %v7204_v3, -inf }
 0x45f   :  { %v506_v12 = vsel %vm195_vm1, %v7206_v5, -inf }
 0x460   :  { %507 = vmax.xlane.f32.xlu0 %v506_v12 }
 0x461   :  { %v5827_v15 = vpop.f32.mrb[4].mxu1 }
 0x462   :  { %v456_v27 = vpop.f32.mrb[5].mxu1  ;;  %513 = vmax.xlane.f32.xlu1 %v512_v16  ;;  %v7234_v1 = vadd.f32 %v5827_v15, %v182_v61  ;;  %v186_v15 = vld [vmem:[%s9265_s11 + $0x50] sm:$0xff]  ;;  %v187_v16 = vld [vmem:[%s9265_s11 + $0x58] sm:$0xff] }
 0x463   :  { %v7222_v48 = vadd.f32 %v456_v27, %v180_v13  ;;  %v5828_v53 = vpop.f32.mrb[6].mxu1 }
 0x464   :  { %v459_v52 = vpop.f32.mrb[7].mxu1  ;;  %510 = vmax.xlane.f32.xlu0 %v509_v60  ;;  %v7236_v36 = vadd.f32 %v5828_v53, %v183_v62  ;;  %v521_v12 = vsel %vm195_vm1, %v7234_v1, -inf }
 0x465   :  { %v7232_v63 = vadd.f32 %v459_v52, %v181_v44  ;;  %v515_v37 = vsel %vm195_vm1, %v7222_v48, -inf  ;;  %v188_v52 = vld [vmem:[%s9265_s11 + $0x60] sm:$0xff] }
 0x466   :  { %v524_v13 = vsel %vm195_vm1, %v7236_v36, -inf }
 0x467   :  { %v518_v45 = vsel %vm195_vm1, %v7232_v63, -inf }
 0x468   :  { %516 = vmax.xlane.f32.xlu0 %v515_v37  ;;  %519 = vmax.xlane.f32.xlu1 %v518_v45 }
 0x469   :  { %v5831_v46 = vpop.f32.mrb[8].mxu1 }
 0x46a   :  { %v472_v0 = vpop.f32.mrb[9].mxu1  ;;  %v7262_v53 = vadd.f32 %v5831_v46, %v186_v15 }
 0x46b   :  { %v7248_v2 = vadd.f32 %v472_v0, %v184_v47  ;;  %v5832_v6 = vpop.f32.mrb[10].mxu1  ;;  %v189_v47 = vld [vmem:[%s9265_s11 + $0x68] sm:$0xff] }
 0x46c   :  { %v475_v27 = vpop.f32.mrb[11].mxu1  ;;  %522 = vmax.xlane.f32.xlu0 %v521_v12  ;;  %525 = vmax.xlane.f32.xlu1 %v524_v13  ;;  %v7264_v60 = vadd.f32 %v5832_v6, %v187_v16  ;;  %v190_v12 = vld [vmem:[%s9265_s11 + $0x70] sm:$0xff]  ;;  %v191_v13 = vld [vmem:[%s9265_s11 + $0x78] sm:$0xff] }
 0x46d   :  { %v7260_v44 = vadd.f32 %v475_v27, %v185_v33  ;;  %v527_v61 = vsel %vm195_vm1, %v7248_v2, -inf  ;;  %v533_v33 = vsel %vm195_vm1, %v7262_v53, -inf }
 0x46e   :  { %v536_v6 = vsel %vm195_vm1, %v7264_v60, -inf }
 0x46f   :  { %v530_v62 = vsel %vm195_vm1, %v7260_v44, -inf }
 0x470   :  { %528 = vmax.xlane.f32.xlu0 %v527_v61  ;;  %531 = vmax.xlane.f32.xlu1 %v530_v62 }
 0x471   :  { %v5835_v37 = vpop.f32.mrb[12].mxu1 }
 0x472   :  { %v488_v45 = vpop.f32.mrb[13].mxu1  ;;  %v7290_v27 = vadd.f32 %v5835_v37, %v190_v12 }
 0x473   :  { %v7276_v46 = vadd.f32 %v488_v45, %v188_v52  ;;  %v5836_v0 = vpop.f32.mrb[14].mxu1 }
 0x474   :  { %v491_v15 = vpop.f32.mrb[15].mxu1  ;;  %534 = vmax.xlane.f32.xlu0 %v533_v33  ;;  %537 = vmax.xlane.f32.xlu1 %v536_v6  ;;  %v7292_v61 = vadd.f32 %v5836_v0, %v191_v13  ;;  %v545_v45 = vsel %vm195_vm1, %v7290_v27, -inf }
 0x475   :  { %v7288_v16 = vadd.f32 %v491_v15, %v189_v47  ;;  %v539_v62 = vsel %vm195_vm1, %v7276_v46, -inf }
 0x476   :  { %v548_v33 = vsel %vm195_vm1, %v7292_v61, -inf }
 0x477   :  { %v542_v52 = vsel %vm195_vm1, %v7288_v16, -inf }
 0x478   :  { %540 = vmax.xlane.f32.xlu0 %v539_v62  ;;  %543 = vmax.xlane.f32.xlu1 %v542_v52 }
 0x47c   :  { %546 = vmax.xlane.f32.xlu0 %v545_v45  ;;  %549 = vmax.xlane.f32.xlu1 %v548_v33 }
 0x4eb   :  { %v505_v37 = vpop.xlane.xlu1 %504 }
 0x4ec   :  { %v551_v12 = vsub.f32 %v7199_v58, %v505_v37 }
 0x4ed   :  { %v508_v47 = vpop.xlane.xlu0 %507 }
 0x4ee   :  { %v552_v0 = vsub.f32 %v7206_v5, %v508_v47  ;;  %v567_v56 = vmul.f32 1.442695, %v551_v12 }
 0x4ef   :  { %v514_v6 = vpop.xlane.xlu1 %513 }
 0x4f0   :  { %v554_v13 = vsub.f32 %v7204_v3, %v514_v6  ;;  %v569_v15 = vmul.f32 1.442695, %v552_v0 }
 0x4f1   :  { %v511_v62 = vpop.xlane.xlu0 %510 }
 0x4f2   :  { %v573_v52 = vmul.f32 1.442695, %v554_v13  ;;  %v553_v57 = vsub.f32 %v7210_v8, %v511_v62 }
 0x4f4   :  { %6297 = vpow2.f32 %v573_v52  ;;  %v571_v51 = vmul.f32 1.442695, %v553_v57 }
 0x4f5   :  { %6299 = vpow2.f32 %v569_v15  ;;  %v517_v45 = vpop.xlane.xlu0 %516  ;;  %v520_v33 = vpop.xlane.xlu1 %519 }
 0x4f6   :  { %6301 = vpow2.f32 %v571_v51  ;;  %v555_v5 = vsub.f32 %v7222_v48, %v517_v45  ;;  %v556_v47 = vsub.f32 %v7232_v63, %v520_v33 }
 0x4f7   :  { %6303 = vpow2.f32 %v567_v56 }
 0x4f8   :  { %v575_v6 = vmul.f32 1.442695, %v555_v5  ;;  %v577_v13 = vmul.f32 1.442695, %v556_v47 }
 0x4f9   :  { %v523_v58 = vpop.xlane.xlu0 %522  ;;  %v526_v37 = vpop.xlane.xlu1 %525 }
 0x4fa   :  { %v557_v3 = vsub.f32 %v7234_v1, %v523_v58  ;;  %v558_v0 = vsub.f32 %v7236_v36, %v526_v37 }
 0x4fc   :  { %v579_v8 = vmul.f32 1.442695, %v557_v3  ;;  %v581_v12 = vmul.f32 1.442695, %v558_v0 }
 0x4fd   :  { %v529_v57 = vpop.xlane.xlu0 %528  ;;  %v532_v15 = vpop.xlane.xlu1 %531 }
 0x4fe   :  { %v7310_v62 = vpop.eup %6297  ;;  %6305 = vpow2.f32 %v579_v8  ;;  %v559_v63 = vsub.f32 %v7248_v2, %v529_v57  ;;  %v560_v1 = vsub.f32 %v7260_v44, %v532_v15 }
 0x4ff   :  { %v7312_v51 = vpop.eup %6299  ;;  %6307 = vpow2.f32 %v581_v12  ;;  %v608_v56 = vsel %vm195_vm1, %v7310_v62, 0.0 }
 0x500   :  { %v7316_v48 = vpop.eup %6301  ;;  %6309 = vpow2.f32 %v575_v6  ;;  %609 = vadd.xlane.f32.xlu1 %v608_v56  ;;  %v602_v58 = vsel %vm195_vm1, %v7312_v51, 0.0  ;;  %v583_v2 = vmul.f32 1.442695, %v559_v63  ;;  %v585_v44 = vmul.f32 1.442695, %v560_v1 }
 0x501   :  { %6311 = vpow2.f32 %v577_v13  ;;  %v535_v36 = vpop.xlane.xlu0 %534  ;;  %v538_v52 = vpop.xlane.xlu1 %537  ;;  %v605_v45 = vsel %vm195_vm1, %v7316_v48, 0.0 }
 0x502   :  { %v7322_v33 = vpop.eup %6303  ;;  %v561_v5 = vsub.f32 %v7262_v53, %v535_v36  ;;  %v562_v47 = vsub.f32 %v7264_v60, %v538_v52  ;;  %606 = vadd.xlane.f32.xlu0 %v605_v45 }
 0x503   :  { %v599_v8 = vsel %vm195_vm1, %v7322_v33, 0.0 }
 0x504   :  { %v587_v37 = vmul.f32 1.442695, %v561_v5  ;;  %v589_v3 = vmul.f32 1.442695, %v562_v47  ;;  %603 = vadd.xlane.f32.xlu1 %v602_v58 }
 0x505   :  { %v541_v0 = vpop.xlane.xlu0 %540  ;;  %v544_v6 = vpop.xlane.xlu1 %543 }
 0x506   :  { %6313 = vpow2.f32 %v587_v37  ;;  %600 = vadd.xlane.f32.xlu0 %v599_v8  ;;  %v563_v12 = vsub.f32 %v7276_v46, %v541_v0 }
 0x507   :  { %6315 = vpow2.f32 %v589_v3 }
 0x508   :  { %v7330_v53 = vpop.eup %6305  ;;  %6317 = vpow2.f32 %v583_v2  ;;  %v591_v45 = vmul.f32 1.442695, %v563_v12  ;;  %v564_v2 = vsub.f32 %v7288_v16, %v544_v6 }
 0x509   :  { %v7332_v60 = vpop.eup %6307  ;;  %6319 = vpow2.f32 %v585_v44  ;;  %v547_v13 = vpop.xlane.xlu0 %546  ;;  %v617_v57 = vsel %vm195_vm1, %v7330_v53, 0.0 }
 0x50a   :  { %v7337_v15 = vpop.eup %6309  ;;  %v565_v56 = vsub.f32 %v7290_v27, %v547_v13  ;;  %v550_v63 = vpop.xlane.xlu1 %549  ;;  %618 = vadd.xlane.f32.xlu0 %v617_v57  ;;  %v620_v1 = vsel %vm195_vm1, %v7332_v60, 0.0  ;;  %v593_v8 = vmul.f32 1.442695, %v564_v2 }
 0x50b   :  { %v7342_v36 = vpop.eup %6311  ;;  %621 = vadd.xlane.f32.xlu1 %v620_v1  ;;  %v566_v46 = vsub.f32 %v7292_v61, %v550_v63  ;;  %v611_v5 = vsel %vm195_vm1, %v7337_v15, 0.0 }
 0x50c   :  { %v595_v52 = vmul.f32 1.442695, %v565_v56  ;;  %v614_v27 = vsel %vm195_vm1, %v7342_v36, 0.0 }
 0x50d   :  { %v597_v37 = vmul.f32 1.442695, %v566_v46 }
 0x50e   :  { %6321 = vpow2.f32 %v595_v52  ;;  %612 = vadd.xlane.f32.xlu0 %v611_v5 }
 0x50f   :  { %615 = vadd.xlane.f32.xlu1 %v614_v27  ;;  %6323 = vpow2.f32 %v591_v45 }
 0x510   :  { %v7349_v47 = vpop.eup %6313  ;;  %6325 = vpow2.f32 %v597_v37 }
 0x511   :  { %v7351_v58 = vpop.eup %6315  ;;  %v629_v61 = vsel %vm195_vm1, %v7349_v47, 0.0  ;;  %6327 = vpow2.f32 %v593_v8 }
 0x512   :  { %v7356_v3 = vpop.eup %6317  ;;  %630 = vadd.xlane.f32.xlu0 %v629_v61  ;;  %v632_v44 = vsel %vm195_vm1, %v7351_v58, 0.0 }
 0x513   :  { %v7360_v0 = vpop.eup %6319  ;;  %633 = vadd.xlane.f32.xlu1 %v632_v44  ;;  %v623_v12 = vsel %vm195_vm1, %v7356_v3, 0.0 }
 0x514   :  { %v626_v16 = vsel %vm195_vm1, %v7360_v0, 0.0 }
 0x516   :  { %624 = vadd.xlane.f32.xlu0 %v623_v12 }
 0x517   :  { %627 = vadd.xlane.f32.xlu1 %v626_v16 }
 0x518   :  { %v7366_v6 = vpop.eup %6321 }
 0x519   :  { %v641_v13 = vsel %vm195_vm1, %v7366_v6, 0.0  ;;  %v7370_v57 = vpop.eup %6323 }
 0x51a   :  { %v635_v56 = vsel %vm195_vm1, %v7370_v57, 0.0  ;;  %v7374_v63 = vpop.eup %6325 }
 0x51b   :  { %642 = vadd.xlane.f32.xlu1 %v641_v13  ;;  %v644_v1 = vsel %vm195_vm1, %v7374_v63, 0.0  ;;  %v7378_v52 = vpop.eup %6327 }
 0x51c   :  { %v638_v45 = vsel %vm195_vm1, %v7378_v52, 0.0 }
 0x51f   :  { %636 = vadd.xlane.f32.xlu1 %v635_v56 }
 0x523   :  { %645 = vadd.xlane.f32.xlu1 %v644_v1 }
 0x527   :  { %639 = vadd.xlane.f32.xlu1 %v638_v45 }
 0x52c   :  { %687 = vrot.lane.b32.xlu0 %v7165_v10, %s6887_s23 }
 0x538   :  { %689 = vrot.lane.b32.xlu1 %v7160_v4, %s6887_s23 }
 0x58d   :  { %v610_v46 = vpop.xlane.xlu1 %609 }
 0x58f   :  { %v607_v5 = vpop.xlane.xlu0 %606 }
 0x591   :  { %v604_v27 = vpop.xlane.xlu1 %603 }
 0x592   :  { %6329 = vrcp.f32 %v604_v27 }
 0x593   :  { %v601_v2 = vpop.xlane.xlu0 %600 }
 0x594   :  { %6331 = vrcp.f32 %v601_v2 }
 0x595   :  { %6333 = vrcp.f32 %v607_v5 }
 0x597   :  { %v619_v37 = vpop.xlane.xlu0 %618 }
 0x598   :  { %v622_v61 = vpop.xlane.xlu1 %621 }
 0x59b   :  { %v613_v44 = vpop.xlane.xlu0 %612 }
 0x59c   :  { %v6330_v8 = vpop.eup %6329  ;;  %v616_v12 = vpop.xlane.xlu1 %615  ;;  %6335 = vrcp.f32 %v613_v44 }
 0x59d   :  { %v664_v10 = vmul.f32 %v6330_v8, %v7312_v51  ;;  %6337 = vrcp.f32 %v616_v12 }
 0x59e   :  { %v6332_v16 = vpop.eup %6331  ;;  %6339 = vrcp.f32 %v610_v46 }
 0x59f   :  { %v631_v13 = vpop.xlane.xlu0 %630  ;;  %v663_v56 = vmul.f32 %v6332_v16, %v7322_v33  ;;  %6341 = vrcp.f32 %v619_v37  ;;  %v6334_v51 = vpop.eup %6333 }
 0x5a0   :  { %v634_v1 = vpop.xlane.xlu1 %633  ;;  %6343 = vrcp.f32 %v622_v61 }
 0x5a1   :  { %v679_v45 = vpack.c.bf16 %v664_v10, %v663_v56  ;;  %v665_v10 = vmul.f32 %v6334_v51, %v7316_v48 }
 0x5a3   :  { %v625_v4 = vpop.xlane.xlu0 %624  ;;  %5841 = vmatprep.mubr.msk.bf16.mxu0 %vm195_vm1, %v679_v45 }
 0x5a4   :  { %v628_v49 = vpop.xlane.xlu1 %627  ;;  %6345 = vrcp.f32 %v625_v4 }
 0x5a5   :  { %6347 = vrcp.f32 %v628_v49 }
 0x5a6   :  { %v6336_v33 = vpop.eup %6335  ;;  %6349 = vrcp.f32 %v631_v13 }
 0x5a7   :  { %v688_v27 = vpop.permute.xlu0 %687  ;;  %v6338_v16 = vpop.eup %6337  ;;  %v667_v5 = vmul.f32 %v6336_v33, %v7337_v15  ;;  %6351 = vrcp.f32 %v634_v1 }
 0x5a8   :  { %v643_v32 = vpop.xlane.xlu1 %642  ;;  %5837 = vmatprep.subr.bf16.mxu0 %v688_v27  ;;  %v6340_v56 = vpop.eup %6339  ;;  %v668_v44 = vmul.f32 %v6338_v16, %v7342_v36 }
 0x5a9   :  { %5838 = vmatpush3.bf16.msra.mxu0 %v688_v27  ;;  %v666_v46 = vmul.f32 %v6340_v56, %v7310_v62  ;;  %v6342_v37 = vpop.eup %6341 }
 0x5aa   :  { %v6344_v61 = vpop.eup %6343  ;;  %v681_v4 = vpack.c.bf16 %v668_v44, %v667_v5  ;;  %v669_v48 = vmul.f32 %v6342_v37, %v7330_v53 }
 0x5ab   :  { %v680_v49 = vpack.c.bf16 %v666_v46, %v665_v10  ;;  %v670_v62 = vmul.f32 %v6344_v61, %v7332_v60 }
 0x5ac   :  { %v637_v2 = vpop.xlane.xlu1 %636 }
 0x5ad   :  { %v682_v1 = vpack.c.bf16 %v670_v62, %v669_v48 }
 0x5ae   :  { %v6346_v12 = vpop.eup %6345 }
 0x5af   :  { %v6348_v27 = vpop.eup %6347  ;;  %v671_v15 = vmul.f32 %v6346_v12, %v7356_v3 }
 0x5b0   :  { %v646_v40 = vpop.xlane.xlu1 %645  ;;  %v672_v36 = vmul.f32 %v6348_v27, %v7360_v0  ;;  %v6350_v13 = vpop.eup %6349 }
 0x5b1   :  { %v6352_v51 = vpop.eup %6351  ;;  %v673_v53 = vmul.f32 %v6350_v13, %v7349_v47  ;;  %v6231_v47 = vld [vmem:[%s9259_s5] sm:$0xff]  }
 0x5b2   :  { %v683_v33 = vpack.c.bf16 %v672_v36, %v671_v15  ;;  %v674_v60 = vmul.f32 %v6352_v51, %v7351_v58  ;;  %5857 = vmatprep.subr.bf16.mxu1 %v6231_v47  ;;  %v6232_v58 = vld [vmem:[%s9259_s5 + $0x8] sm:$0xff]  }
 0x5b3   :  { %5858 = vmatpush3.bf16.msra.mxu1 %v6231_v47 }
 0x5b4   :  { %v640_v8 = vpop.xlane.xlu1 %639  ;;  %5859 = vmatprep.subr.bf16.mxu1 %v6232_v58 }
 0x5b5   :  { %6353 = vrcp.f32 %v640_v8 }
 0x5b6   :  { %6355 = vrcp.f32 %v637_v2 }
 0x5b7   :  { %6357 = vrcp.f32 %v646_v40  ;;  %v684_v40 = vpack.c.bf16 %v674_v60, %v673_v53  ;;  %5860 = vmatpush3.bf16.msra.mxu1 %v6232_v58 }
 0x5b8   :  { %v690_v45 = vpop.permute.xlu1 %689  ;;  %6359 = vrcp.f32 %v643_v32 }
 0x5b9   :  { %5839 = vmatprep.subr.bf16.mxu0 %v690_v45 }
 0x5ba   :  { %5840 = vmatpush3.bf16.msra.mxu0 %v690_v45 }
 0x5bd   :  { %5842 = vmatmul.mubr.msk.bf16.vlgmr.msra.gmra.mrb[8].mxu0 %vm195_vm1, %v680_v49 }
 0x5be   :  { %5845 = vmatprep.mubr.msk.bf16.mxu0 %vm195_vm1, %v681_v4 }
 0x5bf   :  { %v6354_v8 = vpop.eup %6353 }
 0x5c0   :  { %v6356_v2 = vpop.eup %6355  ;;  %v676_v3 = vmul.f32 %v6354_v8, %v7378_v52 }
 0x5c1   :  { %v675_v0 = vmul.f32 %v6356_v2, %v7370_v57  ;;  %v6358_v16 = vpop.eup %6357 }
 0x5c2   :  { %v6360_v32 = vpop.eup %6359  ;;  %v678_v10 = vmul.f32 %v6358_v16, %v7374_v63 }
 0x5c3   :  { %v685_v56 = vpack.c.bf16 %v676_v3, %v675_v0  ;;  %v677_v45 = vmul.f32 %v6360_v32, %v7366_v6 }
 0x5c5   :  { %5846 = vmatmul.mubr.msk.bf16.gmra.mrb[12].mxu0 %vm195_vm1, %v682_v1  ;;  %v686_v5 = vpack.c.bf16 %v678_v10, %v677_v45 }
 0x5c6   :  { %5849 = vmatprep.mubr.msk.bf16.mxu0 %vm195_vm1, %v683_v33 }
 0x5cd   :  { %5850 = vmatmul.mubr.msk.bf16.gmra.mrb[16].mxu0 %vm195_vm1, %v684_v40 }
 0x5ce   :  { %5853 = vmatprep.mubr.msk.bf16.mxu0 %vm195_vm1, %v685_v56 }
 0x5d5   :  { %5854 = vmatmul.mubr.msk.bf16.gmra.mrb[20].mxu0 %vm195_vm1, %v686_v5 }
 0x690   :  { %v5843_v57 = vpop.f32.mrb[8].mxu0 }
 0x691   :  { %v751_v52 = vpop.f32.mrb[9].mxu0  ;;  %v816_v46 = vmul.f32 %v5843_v57, %v7026_v17 }
 0x692   :  { %v5844_v63 = vpop.f32.mrb[10].mxu0  ;;  %v814_v49 = vmul.f32 %v751_v52, %v7036_v19 }
 0x693   :  { %v754_v44 = vpop.f32.mrb[11].mxu0  ;;  %v817_v27 = vmul.f32 %v5844_v63, %v7046_v21 }
 0x694   :  { %v815_v36 = vmul.f32 %v754_v44, %v7056_v23 }
 0x698   :  { %v5847_v6 = vpop.f32.mrb[12].mxu0 }
 0x699   :  { %v820_v37 = vmul.f32 %v5847_v6, %v7031_v18  ;;  %v767_v61 = vpop.f32.mrb[13].mxu0 }
 0x69a   :  { %v818_v12 = vmul.f32 %v767_v61, %v7041_v20  ;;  %v5848_v4 = vpop.f32.mrb[14].mxu0 }
 0x69b   :  { %v832_v48 = vadd.f32 %v820_v37, %v816_v46  ;;  %v821_v62 = vmul.f32 %v5848_v4, %v7051_v22  ;;  %v770_v15 = vpop.f32.mrb[15].mxu0 }
 0x69c   :  { %v830_v13 = vadd.f32 %v818_v12, %v814_v49  ;;  %v819_v1 = vmul.f32 %v770_v15, %v7064_v25 }
 0x69d   :  { %v833_v17 = vadd.f32 %v821_v62, %v817_v27 }
 0x69e   :  { %v831_v51 = vadd.f32 %v819_v1, %v815_v36 }
 0x6a0   :  { %v5851_v18 = vpop.f32.mrb[16].mxu0 }
 0x6a1   :  { %v824_v33 = vmul.f32 %v5851_v18, %v7086_v31  ;;  %v783_v19 = vpop.f32.mrb[17].mxu0 }
 0x6a2   :  { %v822_v20 = vmul.f32 %v783_v19, %v7081_v30  ;;  %v5852_v8 = vpop.f32.mrb[18].mxu0 }
 0x6a3   :  { %v836_v2 = vadd.f32 %v832_v48, %v824_v33  ;;  %v825_v21 = vmul.f32 %v5852_v8, %v7102_v35  ;;  %v786_v53 = vpop.f32.mrb[19].mxu0 }
 0x6a4   :  { %v834_v22 = vadd.f32 %v830_v13, %v822_v20  ;;  %v823_v60 = vmul.f32 %v786_v53, %v7097_v34 }
 0x6a5   :  { %v837_v23 = vadd.f32 %v833_v17, %v825_v21 }
 0x6a6   :  { %v835_v3 = vadd.f32 %v831_v51, %v823_v60  ;;  %v6234_v60 = vld [vmem:[%s9260_s6 + $0x8] sm:$0xff]  }
 0x6a8   :  { %v5855_v0 = vpop.f32.mrb[20].mxu0 }
 0x6a9   :  { %v828_v25 = vmul.f32 %v5855_v0, %v7129_v42  ;;  %v799_v40 = vpop.f32.mrb[21].mxu0  ;;  %v7435_v42 = vsub.s32 2, %v7004_v50 }
 0x6aa   :  { %v826_v16 = vmul.f32 %v799_v40, %v7113_v38  ;;  %v5856_v31 = vpop.f32.mrb[22].mxu0 }
 0x6ab   :  { %v840_v56 = vadd.f32 %v836_v2, %v828_v25  ;;  %v829_v30 = vmul.f32 %v5856_v31, %v7134_v43  ;;  %v802_v32 = vpop.f32.mrb[23].mxu0  ;;  %v851_v38 = vrot.slane %v7012_v55, %v7435_v42 }
 0x6ac   :  { %v838_v10 = vadd.f32 %v834_v22, %v826_v16  ;;  %v827_v35 = vmul.f32 %v802_v32, %v7118_v39  ;;  %v6233_v22 = vld [vmem:[%s9260_s6] sm:$0xff]  }
 0x6ad   :  { %v841_v45 = vadd.f32 %v837_v23, %v829_v30  ;;  %5865 = vmatprep.subr.bf16.mxu1 %v6233_v22  ;;  %v6235_v23 = vld [vmem:[%s9261_s7] sm:$0xff]  }
 0x6ae   :  { %v839_v5 = vadd.f32 %v835_v3, %v827_v35  ;;  %5873 = vmatprep.subr.bf16.mxu0 %v6235_v23 }
 0x6af   :  { %v843_v47 = vpack.c.bf16 %v841_v45, %v840_v56  ;;  %5874 = vmatpush3.bf16.msra.mxu0 %v6235_v23 }
 0x6b0   :  { %v842_v34 = vpack.c.bf16 %v839_v5, %v838_v10  ;;  %v7477_v5 = vsub.s32 3, %v7004_v50 }
 0x6b2   :  { %5861 = vmatprep.mubr.msk.bf16.mxu1 %vm195_vm1, %v842_v34  ;;  %v7482_v34 = vld [vmem:[%s9262_s8] sm:$0x3f] }
 0x6b3   :  { %5862 = vmatmul.mubr.msk.bf16.vlgmr.msra.gmra.mrb[16].mxu1 %vm195_vm1, %v843_v47 }
 0x6b4   :  { %5866 = vmatpush3.bf16.msra.mxu1 %v6233_v22 }
 0x6b5   :  { %5867 = vmatprep.subr.bf16.mxu1 %v6234_v60 }
 0x6b8   :  { %5868 = vmatpush3.bf16.msra.mxu1 %v6234_v60 }
 0x786   :  { %v5863_v58 = vpop.f32.mrb[16].mxu1 }
 0x787   :  { %v904_v43 = vpop.f32.mrb[17].mxu1  ;;  %v913_v57 = vadd.f32 %v5863_v58, %v851_v38 }
 0x788   :  { %v905_v52 = vadd.f32 %v904_v43, %v851_v38  ;;  %v5864_v63 = vpop.f32.mrb[18].mxu1  ;;  %v7487_v43 = vsub.s32 4, %v7004_v50 }
 0x789   :  { %v907_v39 = vpop.f32.mrb[19].mxu1  ;;  %v7443_v46 = vadd.f32 %v913_v57, %v6974_v7  ;;  %v916_v37 = vadd.f32 %v5864_v63, %v851_v38 }
 0x78a   :  { %v7440_v44 = vadd.f32 %v905_v52, %v6976_v9  ;;  %v908_v6 = vadd.f32 %v907_v39, %v851_v38  ;;  %v978_v38 = vrot.slane %v7482_v34, %v7477_v5  ;;  %v986_v39 = vrot.slane %v7482_v34, %v7487_v43 }
 0x78b   :  { %v7453_v12 = vadd.f32 %v916_v37, %v6978_v11  ;;  %v929_v9 = vsel %vm195_vm1, %v7443_v46, 0.0 }
 0x78c   :  { %v7446_v61 = vadd.f32 %v908_v6, %v6982_v14  ;;  %v923_v55 = vsel %vm195_vm1, %v7440_v44, 0.0 }
 0x78d   :  { %924 = vadd.xlane.f32.xlu0 %v923_v55  ;;  %v932_v7 = vsel %vm195_vm1, %v7453_v12, 0.0 }
 0x78e   :  { %v926_v49 = vsel %vm195_vm1, %v7446_v61, 0.0 }
 0x78f   :  { %927 = vadd.xlane.f32.xlu1 %v926_v49 }
 0x791   :  { %930 = vadd.xlane.f32.xlu0 %v929_v9 }
 0x795   :  { %933 = vadd.xlane.f32.xlu0 %v932_v7 }
 0x81a   :  { %v925_v14 = vpop.xlane.xlu0 %924 }
 0x81b   :  { %v935_v4 = vmul.f32 0.03125, %v925_v14 }
 0x81c   :  { %v928_v27 = vpop.xlane.xlu1 %927 }
 0x81d   :  { %v939_v48 = vsub.f32 %v7440_v44, %v935_v4  ;;  %v936_v62 = vmul.f32 0.03125, %v928_v27 }
 0x81e   :  { %v931_v15 = vpop.xlane.xlu0 %930 }
 0x81f   :  { %v940_v36 = vsub.f32 %v7446_v61, %v936_v62  ;;  %v937_v13 = vmul.f32 0.03125, %v931_v15  ;;  %v943_v11 = vmul.f32 %v939_v48, %v939_v48 }
 0x821   :  { %v941_v1 = vsub.f32 %v7443_v46, %v937_v13  ;;  %v947_v17 = vsel %vm195_vm1, %v943_v11, 0.0  ;;  %v944_v51 = vmul.f32 %v940_v36, %v940_v36  ;;  %v6237_v11 = vld [vmem:[%s9261_s7 + $0x10] sm:$0xff]  }
 0x822   :  { %948 = vadd.xlane.f32.xlu0 %v947_v17  ;;  %v934_v18 = vpop.xlane.xlu0 %933  ;;  %v6239_v17 = vld [vmem:[%s9261_s7 + $0x20] sm:$0xff]  }
 0x823   :  { %v938_v33 = vmul.f32 0.03125, %v934_v18  ;;  %v950_v20 = vsel %vm195_vm1, %v944_v51, 0.0  ;;  %v945_v8 = vmul.f32 %v941_v1, %v941_v1  ;;  %v6240_v51 = vld [vmem:[%s9261_s7 + $0x28] sm:$0xff]   ;;  %v5321_v18 = vld [vmem:[%s9263_s9] ss:$0 sm:$0xff] }
 0x825   :  { %v942_v19 = vsub.f32 %v7453_v12, %v938_v33  ;;  %v953_v21 = vsel %vm195_vm1, %v945_v8, 0.0 }
 0x826   :  { %951 = vadd.xlane.f32.xlu0 %v950_v20 }
 0x827   :  { %v946_v2 = vmul.f32 %v942_v19, %v942_v19 }
 0x829   :  { %v956_v53 = vsel %vm195_vm1, %v946_v2, 0.0 }
 0x82a   :  { %954 = vadd.xlane.f32.xlu0 %v953_v21  ;;  %957 = vadd.xlane.f32.xlu1 %v956_v53 }
 0x8af   :  { %v949_v3 = vpop.xlane.xlu0 %948 }
 0x8b0   :  { %v959_v0 = vmul.f32 0.03125, %v949_v3 }
 0x8b2   :  { %v963_v25 = vadd.f32 1e-05, %v959_v0 }
 0x8b3   :  { %v952_v40 = vpop.xlane.xlu0 %951 }
 0x8b4   :  { %6361 = vrsqrt.f32 %v963_v25  ;;  %v960_v16 = vmul.f32 0.03125, %v952_v40 }
 0x8b6   :  { %v964_v31 = vadd.f32 1e-05, %v960_v16 }
 0x8b7   :  { %v958_v56 = vpop.xlane.xlu1 %957  ;;  %v955_v30 = vpop.xlane.xlu0 %954 }
 0x8b8   :  { %6363 = vrsqrt.f32 %v964_v31  ;;  %v962_v32 = vmul.f32 0.03125, %v958_v56  ;;  %v961_v10 = vmul.f32 0.03125, %v955_v30 }
 0x8ba   :  { %v966_v35 = vadd.f32 1e-05, %v962_v32  ;;  %v965_v45 = vadd.f32 1e-05, %v961_v10 }
 0x8bc   :  { %6365 = vrsqrt.f32 %v966_v35 }
 0x8bd   :  { %6367 = vrsqrt.f32 %v965_v45 }
 0x8be   :  { %v6362_v47 = vpop.eup %6361 }
 0x8bf   :  { %v971_v58 = vmul.f32 %v6362_v47, %v939_v48 }
 0x8c1   :  { %v979_v63 = vmul.f32 %v978_v38, %v971_v58 }
 0x8c2   :  { %v6364_v57 = vpop.eup %6363 }
 0x8c3   :  { %v972_v52 = vmul.f32 %v6364_v57, %v940_v36  ;;  %v987_v9 = vadd.f32 %v986_v39, %v979_v63  ;;  %v6236_v36 = vld [vmem:[%s9261_s7 + $0x8] sm:$0xff]  }
 0x8c4   :  { %5875 = vmatprep.subr.bf16.mxu0 %v6236_v36 }
 0x8c5   :  { %v980_v6 = vmul.f32 %v978_v38, %v972_v52  ;;  %5876 = vmatpush3.bf16.msra.mxu0 %v6236_v36 }
 0x8c6   :  { %v6366_v37 = vpop.eup %6365  ;;  %5877 = vmatprep.subr.bf16.mxu0 %v6237_v11 }
 0x8c7   :  { %v6368_v55 = vpop.eup %6367  ;;  %v974_v49 = vmul.f32 %v6366_v37, %v942_v19  ;;  %v988_v7 = vadd.f32 %v986_v39, %v980_v6  ;;  %v7514_v37 = vsub.s32 5, %v7004_v50 }
 0x8c8   :  { %v973_v14 = vmul.f32 %v6368_v55, %v941_v1  ;;  %v6238_v1 = vld [vmem:[%s9261_s7 + $0x18] sm:$0xff]  }
 0x8c9   :  { %v982_v4 = vmul.f32 %v978_v38, %v974_v49  ;;  %v991_v27 = vpack.c.bf16 %v988_v7, %v987_v9  ;;  %5878 = vmatpush3.bf16.msra.mxu0 %v6237_v11  ;;  %v1107_v55 = vrot.slane %v7482_v34, %v7514_v37 }
 0x8ca   :  { %v981_v62 = vmul.f32 %v978_v38, %v973_v14  ;;  %5879 = vmatprep.subr.bf16.mxu0 %v6238_v1 }
 0x8cb   :  { %5869 = vmatprep.mubr.msk.bf16.mxu1 %vm195_vm1, %v991_v27  ;;  %v990_v48 = vadd.f32 %v986_v39, %v982_v4 }
 0x8cc   :  { %v989_v15 = vadd.f32 %v986_v39, %v981_v62 }
 0x8cd   :  { %5880 = vmatpush3.bf16.msra.mxu0 %v6238_v1 }
 0x8ce   :  { %v992_v13 = vpack.c.bf16 %v990_v48, %v989_v15  ;;  %5881 = vmatprep.subr.bf16.mxu0 %v6239_v17 }
 0x8d0   :  { %5870 = vmatmul.mubr.msk.bf16.vlgmr.msra.gmra.mrb[20].mxu1 %vm195_vm1, %v992_v13 }
 0x8d1   :  { %5882 = vmatpush3.bf16.msra.mxu0 %v6239_v17 }
 0x8d2   :  { %5883 = vmatprep.subr.bf16.mxu0 %v6240_v51 }
 0x8d5   :  { %5884 = vmatpush3.bf16.msra.mxu0 %v6240_v51 }
 0x9a3   :  { %v5871_v33 = vpop.f32.mrb[20].mxu1 }
 0x9a4   :  { %v1064_v19 = vadd.f32 %v5871_v33, %v5321_v18  ;;  %v1055_v20 = vpop.f32.mrb[21].mxu1 }
 0x9a5   :  { %v1056_v8 = vadd.f32 %v5321_v18, %v1055_v20  ;;  %v5872_v2 = vpop.f32.mrb[22].mxu1 }
 0x9a6   :  { %v1076_v21 = vmul.f32 0.70710677, %v1064_v19  ;;  %v1067_v53 = vadd.f32 %v5872_v2, %v5321_v18  ;;  %v1058_v22 = vpop.f32.mrb[23].mxu1  ;;  %v1072_v32 = vmul.f32 0.5, %v1064_v19 }
 0x9a7   :  { %v1074_v60 = vmul.f32 0.70710677, %v1056_v8  ;;  %v1059_v23 = vadd.f32 %v5321_v18, %v1058_v22  ;;  %v1070_v45 = vmul.f32 0.5, %v1056_v8 }
 0x9a8   :  { %6369 = verf.f32 %v1076_v21  ;;  %v1077_v3 = vmul.f32 0.70710677, %v1067_v53  ;;  %v1073_v10 = vmul.f32 0.5, %v1067_v53 }
 0x9a9   :  { %6371 = verf.f32 %v1074_v60  ;;  %v1075_v0 = vmul.f32 0.70710677, %v1059_v23  ;;  %v1071_v47 = vmul.f32 0.5, %v1059_v23 }
 0x9aa   :  { %6373 = verf.f32 %v1077_v3 }
 0x9ab   :  { %6375 = verf.f32 %v1075_v0 }
 0x9b2   :  { %v6370_v25 = vpop.eup %6369 }
 0x9b3   :  { %v6372_v40 = vpop.eup %6371  ;;  %v1084_v16 = vadd.f32 1.0, %v6370_v25 }
 0x9b4   :  { %v6374_v31 = vpop.eup %6373  ;;  %v1082_v56 = vadd.f32 1.0, %v6372_v40 }
 0x9b5   :  { %v6376_v30 = vpop.eup %6375  ;;  %v1085_v35 = vadd.f32 1.0, %v6374_v31  ;;  %v1088_v58 = vmul.f32 %v1084_v16, %v1072_v32  ;;  %v6241_v16 = vld [vmem:[%s9257_s3 + $0x10] sm:$0xff]   ;;  %v6242_v31 = vld [vmem:[%s9257_s3 + $0x18] sm:$0xff]  }
 0x9b6   :  { %v1083_v38 = vadd.f32 1.0, %v6376_v30  ;;  %v1086_v52 = vmul.f32 %v1082_v56, %v1070_v45  ;;  %5889 = vmatprep.subr.bf16.mxu1 %v6241_v16 }
 0x9b7   :  { %v1089_v57 = vmul.f32 %v1085_v35, %v1073_v10  ;;  %5890 = vmatpush3.bf16.msra.mxu1 %v6241_v16  ;;  %v9300_v16 = vld [vmem:[#allocation9_spill] sm:$0xff] }
 0x9b8   :  { %v1087_v63 = vmul.f32 %v1083_v38, %v1071_v47  ;;  %5891 = vmatprep.subr.bf16.mxu1 %v6242_v31 }
 0x9b9   :  { %v1091_v39 = vpack.c.bf16 %v1089_v57, %v1088_v58 }
 0x9ba   :  { %v1090_v6 = vpack.c.bf16 %v1087_v63, %v1086_v52 }
 0x9bb   :  { %5892 = vmatpush3.bf16.msra.mxu1 %v6242_v31 }
 0x9bc   :  { %5885 = vmatprep.mubr.msk.bf16.mxu0 %vm1144_vm2, %v1090_v6 }
 0x9bd   :  { %5886 = vmatmul.mubr.msk.bf16.vlgmr.msra.gmra.mrb[24].mxu0 %vm1144_vm2, %v1091_v39  ;;  %v7555_v39 = vld [vmem:[%s9262_s8 + $0x8] sm:$0x3f] }
 0x9be   :  { %v1265_v6 = vrot.slane %v7555_v39, %v7007_v54 }
 0xa90   :  { %v5887_v49 = vpop.f32.mrb[24].mxu0 }
 0xa91   :  { %v1185_v9 = vpop.f32.mrb[25].mxu0  ;;  %v1194_v7 = vadd.f32 %v5887_v49, %v1107_v55 }
 0xa92   :  { %v1186_v14 = vadd.f32 %v1185_v9, %v1107_v55  ;;  %v5888_v4 = vpop.f32.mrb[26].mxu0 }
 0xa93   :  { %v1188_v27 = vpop.f32.mrb[27].mxu0  ;;  %v1197_v48 = vadd.f32 %v5888_v4, %v1107_v55  ;;  %v7522_v13 = vadd.f32 %v1194_v7, %v7443_v46  ;;  %v1273_v4 = vrot.slane %v7555_v39, %v7017_v59 }
 0xa94   :  { %v7519_v62 = vadd.f32 %v1186_v14, %v7440_v44  ;;  %v1189_v15 = vadd.f32 %v1188_v27, %v1107_v55 }
 0xa95   :  { %v7530_v36 = vadd.f32 %v1197_v48, %v7453_v12  ;;  %v1216_v44 = vsel %vm195_vm1, %v7522_v13, 0.0 }
 0xa96   :  { %v7525_v50 = vadd.f32 %v1189_v15, %v7446_v61  ;;  %v1210_v34 = vsel %vm195_vm1, %v7519_v62, 0.0 }
 0xa97   :  { %1211 = vadd.xlane.f32.xlu0 %v1210_v34  ;;  %v1219_v46 = vsel %vm195_vm1, %v7530_v36, 0.0 }
 0xa98   :  { %v1213_v11 = vsel %vm195_vm1, %v7525_v50, 0.0 }
 0xa99   :  { %1214 = vadd.xlane.f32.xlu1 %v1213_v11 }
 0xa9b   :  { %1217 = vadd.xlane.f32.xlu0 %v1216_v44 }
 0xa9d   :  { %1220 = vadd.xlane.f32.xlu1 %v1219_v46 }
 0xb24   :  { %v1212_v61 = vpop.xlane.xlu0 %1211 }
 0xb25   :  { %v1222_v1 = vmul.f32 0.03125, %v1212_v61 }
 0xb26   :  { %v1215_v17 = vpop.xlane.xlu1 %1214 }
 0xb27   :  { %v1226_v51 = vsub.f32 %v7519_v62, %v1222_v1  ;;  %v1223_v18 = vmul.f32 0.03125, %v1215_v17 }
 0xb28   :  { %v1218_v12 = vpop.xlane.xlu0 %1217 }
 0xb29   :  { %v1227_v33 = vsub.f32 %v7525_v50, %v1223_v18  ;;  %v1224_v19 = vmul.f32 0.03125, %v1218_v12  ;;  %v1230_v20 = vmul.f32 %v1226_v51, %v1226_v51 }
 0xb2a   :  { %v1221_v8 = vpop.xlane.xlu1 %1220 }
 0xb2b   :  { %v1228_v2 = vsub.f32 %v7522_v13, %v1224_v19  ;;  %v1225_v21 = vmul.f32 0.03125, %v1221_v8  ;;  %v1234_v53 = vsel %vm195_vm1, %v1230_v20, 0.0  ;;  %v1231_v22 = vmul.f32 %v1227_v33, %v1227_v33 }
 0xb2c   :  { %1235 = vadd.xlane.f32.xlu0 %v1234_v53 }
 0xb2d   :  { %v1229_v60 = vsub.f32 %v7530_v36, %v1225_v21  ;;  %v1237_v23 = vsel %vm195_vm1, %v1231_v22, 0.0  ;;  %v1232_v3 = vmul.f32 %v1228_v2, %v1228_v2 }
 0xb2e   :  { %1238 = vadd.xlane.f32.xlu1 %v1237_v23 }
 0xb2f   :  { %v1240_v0 = vsel %vm195_vm1, %v1232_v3, 0.0  ;;  %v1233_v25 = vmul.f32 %v1229_v60, %v1229_v60 }
 0xb30   :  { %1241 = vadd.xlane.f32.xlu0 %v1240_v0 }
 0xb31   :  { %v1243_v40 = vsel %vm195_vm1, %v1233_v25, 0.0 }
 0xb32   :  { %1244 = vadd.xlane.f32.xlu1 %v1243_v40 }
 0xbb9   :  { %v1236_v56 = vpop.xlane.xlu0 %1235 }
 0xbba   :  { %v1246_v30 = vmul.f32 0.03125, %v1236_v56  ;;  %v9301_v56 = vld [vmem:[#allocation5_spill] sm:$0xff] }
 0xbbb   :  { %v1239_v32 = vpop.xlane.xlu1 %1238 }
 0xbbc   :  { %v1250_v10 = vadd.f32 1e-05, %v1246_v30  ;;  %v1247_v35 = vmul.f32 0.03125, %v1239_v32 }
 0xbbd   :  { %v1242_v45 = vpop.xlane.xlu0 %1241 }
 0xbbe   :  { %6377 = vrsqrt.f32 %v1250_v10  ;;  %v1251_v47 = vadd.f32 1e-05, %v1247_v35  ;;  %v1248_v38 = vmul.f32 0.03125, %v1242_v45  ;;  %v9302_v10 = vld [vmem:[#allocation6_spill] sm:$0xff]  ;;  %v9303_v45 = vld [vmem:[#allocation11_spill] sm:$0xff] }
 0xbbf   :  { %v1245_v58 = vpop.xlane.xlu1 %1244 }
 0xbc0   :  { %6379 = vrsqrt.f32 %v1251_v47  ;;  %v1252_v57 = vadd.f32 1e-05, %v1248_v38  ;;  %v1249_v52 = vmul.f32 0.03125, %v1245_v58  ;;  %v9304_v58 = vld [vmem:[#allocation7_spill] sm:$0xff] }
 0xbc2   :  { %6381 = vrsqrt.f32 %v1252_v57  ;;  %v1253_v63 = vadd.f32 1e-05, %v1249_v52  ;;  %v9305_v52 = vld [vmem:[#allocation8_spill] sm:$0xff] }
 0xbc4   :  { %6383 = vrsqrt.f32 %v1253_v63 }
 0xbc8   :  { %v6378_v55 = vpop.eup %6377 }
 0xbc9   :  { %v1258_v49 = vmul.f32 %v6378_v55, %v1226_v51 }
 0xbca   :  { %v6380_v9 = vpop.eup %6379 }
 0xbcb   :  { %v1259_v7 = vmul.f32 %v6380_v9, %v1227_v33  ;;  %v1266_v14 = vmul.f32 %v1265_v6, %v1258_v49  ;;  %v5341_v33 = vld [vmem:[%s9258_s4 + $0x1] ss:$0 sm:$0xff] }
 0xbcc   :  { %v6382_v27 = vpop.eup %6381 }
 0xbcd   :  { %v1260_v48 = vmul.f32 %v6382_v27, %v1228_v2  ;;  %v1267_v15 = vmul.f32 %v1265_v6, %v1259_v7  ;;  %v1274_v46 = vadd.f32 %v1273_v4, %v1266_v14  ;;  %v9307_v14 = vld [vmem:[#allocation12_spill] sm:$0xff] }
 0xbce   :  { %v6384_v34 = vpop.eup %6383 }
 0xbcf   :  { %v1268_v11 = vmul.f32 %v1265_v6, %v1260_v48  ;;  %v1261_v44 = vmul.f32 %v6384_v34, %v1229_v60  ;;  %v1275_v61 = vadd.f32 %v1273_v4, %v1267_v15  ;;  %v9308_v34 = vld [vmem:[#allocation13_spill] sm:$0xff] }
 0xbd1   :  { %v1269_v1 = vmul.f32 %v1265_v6, %v1261_v44  ;;  %v1278_v17 = vpack.c.bf16 %v1275_v61, %v1274_v46  ;;  %v1276_v18 = vadd.f32 %v1273_v4, %v1268_v11  ;;  %v9306_v6 = vld [vmem:[#allocation10_spill] sm:$0xff]  ;;  %v9310_v61 = vld [vmem:[#allocation15_spill] sm:$0xff] }
 0xbd2   :  { %v9309_v44 = vld [vmem:[#allocation14_spill] sm:$0xff] }
 0xbd3   :  { %5893 = vmatprep.mubr.msk.bf16.mxu1 %vm195_vm1, %v1278_v17  ;;  %v1277_v51 = vadd.f32 %v1273_v4, %v1269_v1 }
 0xbd5   :  { %v1279_v12 = vpack.c.bf16 %v1277_v51, %v1276_v18 }
 0xbd7   :  { %5894 = vmatmul.mubr.msk.bf16.vlgmr.msra.gmra.mrb[24].mxu1 %vm195_vm1, %v1279_v12 }
 0xcaa   :  { %v5895_v19 = vpop.f32.mrb[24].mxu1 }
 0xcab   :  { %v1352_v20 = vadd.f32 %v5895_v19, %v5341_v33  ;;  %v1343_v8 = vpop.f32.mrb[25].mxu1 }
 0xcac   :  { %v1344_v2 = vadd.f32 %v5341_v33, %v1343_v8  ;;  %v5896_v21 = vpop.f32.mrb[26].mxu1 }
 0xcad   :  { %v1360_v53 = vmul.f32 %v1352_v20, %v7059_v24  ;;  %v1355_v22 = vadd.f32 %v5896_v21, %v5341_v33  ;;  %v1346_v60 = vpop.f32.mrb[27].mxu1  ;;  %v1364_v23 = vmul.f32 %v1352_v20, %v7067_v26  ;;  %v1368_v3 = vmul.f32 %v1352_v20, %v7124_v41 }
 0xcae   :  { %v1347_v0 = vadd.f32 %v5341_v33, %v1346_v60  ;;  %v1358_v25 = vmul.f32 %v1344_v2, %v7073_v28  ;;  %v1362_v40 = vmul.f32 %v1344_v2, %v7076_v29  ;;  %v1366_v31 = vmul.f32 %v1344_v2, %v9300_v16  ;;  %v6731_v60 = vld [vmem:[%s9265_s11 + $0x18] sm:$0xff] }
 0xcaf   :  { %v1361_v30 = vmul.f32 %v1355_v22, %v9301_v56  ;;  %v7573_v32 = vpack.c.bf16 %v1355_v22, %v1352_v20  ;;  %v1365_v35 = vmul.f32 %v1355_v22, %v9302_v10  ;;  %v1369_v47 = vmul.f32 %v1355_v22, %v9303_v45 }
 0xcb0   :  { %v7577_v38 = vpack.c.bf16 %v1347_v0, %v1344_v2  ;;  %v1359_v57 = vmul.f32 %v1347_v0, %v9304_v58  ;;  %v1363_v63 = vmul.f32 %v1347_v0, %v9305_v52  ;;  %v1367_v55 = vmul.f32 %v1347_v0, %v9306_v6 }
 0xcb1   :  { %1388 = vrot.lane.b32.xlu1 %v7573_v32, %s6886_s13  ;;  %v1375_v49 = vpack.c.bf16 %v1361_v30, %v1360_v53  ;;  %v1377_v9 = vpack.c.bf16 %v1365_v35, %v1364_v23  ;;  %v1379_v7 = vpack.c.bf16 %v1369_v47, %v1368_v3  ;;  %v1370_v4 = vmul.f32 %v1344_v2, %v9307_v14  ;;  %v6730_v2 = vld [vmem:[%s9265_s11] sm:$0xff]  ;;  %v6732_v3 = vld [vmem:[%s9265_s11 + $0x8] sm:$0xff] }
 0xcb2   :  { %1386 = vrot.lane.b32.xlu0 %v7577_v38, %s6886_s13  ;;  %v1374_v27 = vpack.c.bf16 %v1359_v57, %v1358_v25  ;;  %v1376_v48 = vpack.c.bf16 %v1363_v63, %v1362_v40  ;;  %v1378_v15 = vpack.c.bf16 %v1367_v55, %v1366_v31  ;;  %v1371_v11 = vmul.f32 %v1347_v0, %v9308_v34  ;;  %v6733_v40 = vld [vmem:[%s9265_s11 + $0x10] sm:$0xff]  ;;  %v6734_v63 = vld [vmem:[%s9265_s11 + $0x20] sm:$0xff] }
 0xcb3   :  { %v1372_v46 = vmul.f32 %v1352_v20, %v9309_v44  ;;  %v1373_v1 = vmul.f32 %v1355_v22, %v9310_v61 }
 0xcb4   :  { %5901 = vmatprep.mubr.msk.bf16.mxu1 %vm195_vm1, %v1374_v27  ;;  %v1380_v17 = vpack.c.bf16 %v1371_v11, %v1370_v4  ;;  %v6735_v4 = vld [vmem:[%s9265_s11 + $0x28] sm:$0xff]  ;;  %v6737_v11 = vld [vmem:[%s9265_s11 + $0x38] sm:$0xff] }
 0xcb5   :  { %v1381_v18 = vpack.c.bf16 %v1373_v1, %v1372_v46 }
 0xd23   :  { %v1389_v33 = vpop.permute.xlu1 %1388 }
 0xd24   :  { %v1387_v51 = vpop.permute.xlu0 %1386  ;;  %v1418_v19 = vsel %vm195_vm1, %v1389_v33, 0 }
 0xd25   :  { %6211 = vmatprep.subr.msk.bf16.mxu1 %vm195_vm1, %v1387_v51  ;;  %v1415_v12 = vsel %vm195_vm1, %v1387_v51, 0 }
 0xd26   :  { %5898 = vmatpush3.bf16.xpose.msra.mxu1 %v1415_v12  ;;  %v6738_v12 = vld [vmem:[%s9265_s11 + $0x40] sm:$0xff] }
 0xd27   :  { %6212 = vmatprep.subr.msk.bf16.mxu1 %vm195_vm1, %v1389_v33 }
 0xd2e   :  { %5900 = vmatpush3.bf16.xpose.msra.mxu1 %v1418_v19 }
 0xd35   :  { %5902 = vmatmul.mubr.msk.bf16.vlgmr.msra.gmra.mrb[28].mxu1 %vm195_vm1, %v1375_v49 }
 0xd36   :  { %5905 = vmatprep.mubr.msk.bf16.mxu1 %vm195_vm1, %v1376_v48  ;;  %v6736_v48 = vld [vmem:[%s9265_s11 + $0x30] sm:$0xff] }
 0xd3d   :  { %5906 = vmatmul.mubr.msk.bf16.gmra.mrb[32].mxu1 %vm195_vm1, %v1377_v9 }
 0xd3e   :  { %5909 = vmatprep.mubr.msk.bf16.mxu1 %vm195_vm1, %v1378_v15 }
 0xd45   :  { %5910 = vmatmul.mubr.msk.bf16.gmra.mrb[36].mxu1 %vm195_vm1, %v1379_v7 }
 0xd46   :  { %5913 = vmatprep.mubr.msk.bf16.mxu1 %vm195_vm1, %v1380_v17 }
 0xd4d   :  { %5914 = vmatmul.mubr.msk.bf16.gmra.mrb[40].mxu1 %vm195_vm1, %v1381_v18 }
 0xe08   :  { %v5903_v20 = vpop.f32.mrb[28].mxu1 }
 0xe09   :  { %v1454_v8 = vpop.f32.mrb[29].mxu1  ;;  %v7622_v31 = vadd.f32 %v6733_v40, %v5903_v20 }
 0xe0a   :  { %v7605_v21 = vadd.f32 %v6730_v2, %v1454_v8  ;;  %v5904_v53 = vpop.f32.mrb[30].mxu1 }
 0xe0b   :  { %v1457_v22 = vpop.f32.mrb[31].mxu1  ;;  %v7610_v23 = vadd.f32 %v6731_v60, %v5904_v53  ;;  %v1523_v9 = vsel %vm195_vm1, %v7622_v31, -inf  ;;  %v6739_v53 = vld [vmem:[%s9265_s11 + $0x48] sm:$0xff]  ;;  %v6740_v60 = vld [vmem:[%s9265_s11 + $0x50] sm:$0xff] }
 0xe0c   :  { %v7615_v0 = vadd.f32 %v6732_v3, %v1457_v22  ;;  %v1517_v25 = vsel %vm195_vm1, %v7605_v21, -inf }
 0xe0d   :  { %1518 = vmax.xlane.f32.xlu1 %v1517_v25  ;;  %v1526_v47 = vsel %vm195_vm1, %v7610_v23, -inf  ;;  %v6741_v25 = vld [vmem:[%s9265_s11 + $0x58] sm:$0xff] }
 0xe0e   :  { %v1520_v30 = vsel %vm195_vm1, %v7615_v0, -inf }
 0xe0f   :  { %1521 = vmax.xlane.f32.xlu0 %v1520_v30 }
 0xe10   :  { %v5907_v35 = vpop.f32.mrb[32].mxu1 }
 0xe11   :  { %v1470_v57 = vpop.f32.mrb[33].mxu1  ;;  %1527 = vmax.xlane.f32.xlu1 %v1526_v47  ;;  %v7643_v15 = vadd.f32 %v6736_v48, %v5907_v35 }
 0xe12   :  { %v7631_v55 = vadd.f32 %v6734_v63, %v1470_v57  ;;  %v5908_v49 = vpop.f32.mrb[34].mxu1  ;;  %v6742_v63 = vld [vmem:[%s9265_s11 + $0x60] sm:$0xff] }
 0xe13   :  { %v1473_v7 = vpop.f32.mrb[35].mxu1  ;;  %1524 = vmax.xlane.f32.xlu0 %v1523_v9  ;;  %v7648_v46 = vadd.f32 %v6737_v11, %v5908_v49  ;;  %v1535_v20 = vsel %vm195_vm1, %v7643_v15, -inf  ;;  %v6743_v11 = vld [vmem:[%s9265_s11 + $0x68] sm:$0xff] }
 0xe14   :  { %v7638_v27 = vadd.f32 %v6735_v4, %v1473_v7  ;;  %v1529_v1 = vsel %vm195_vm1, %v7631_v55, -inf }
 0xe15   :  { %v1538_v8 = vsel %vm195_vm1, %v7648_v46, -inf }
 0xe16   :  { %v1532_v17 = vsel %vm195_vm1, %v7638_v27, -inf }
 0xe17   :  { %1530 = vmax.xlane.f32.xlu0 %v1529_v1  ;;  %1533 = vmax.xlane.f32.xlu1 %v1532_v17  ;;  %v6744_v17 = vld [vmem:[%s9265_s11 + $0x70] sm:$0xff] }
 0xe18   :  { %v5911_v18 = vpop.f32.mrb[36].mxu1 }
 0xe19   :  { %v1486_v51 = vpop.f32.mrb[37].mxu1  ;;  %v7671_v3 = vadd.f32 %v6740_v60, %v5911_v18 }
 0xe1a   :  { %v7657_v33 = vadd.f32 %v6738_v12, %v1486_v51  ;;  %v5912_v19 = vpop.f32.mrb[38].mxu1  ;;  %v6745_v51 = vld [vmem:[%s9265_s11 + $0x78] sm:$0xff] }
 0xe1b   :  { %v1489_v2 = vpop.f32.mrb[39].mxu1  ;;  %1536 = vmax.xlane.f32.xlu0 %v1535_v20  ;;  %1539 = vmax.xlane.f32.xlu1 %v1538_v8  ;;  %v7676_v40 = vadd.f32 %v6741_v25, %v5912_v19  ;;  %v1547_v7 = vsel %vm195_vm1, %v7671_v3, -inf }
 0xe1c   :  { %v7666_v22 = vadd.f32 %v6739_v53, %v1489_v2  ;;  %v1541_v30 = vsel %vm195_vm1, %v7657_v33, -inf }
 0xe1d   :  { %v1550_v4 = vsel %vm195_vm1, %v7676_v40, -inf }
 0xe1e   :  { %v1544_v35 = vsel %vm195_vm1, %v7666_v22, -inf }
 0xe1f   :  { %1542 = vmax.xlane.f32.xlu0 %v1541_v30  ;;  %1545 = vmax.xlane.f32.xlu1 %v1544_v35 }
 0xe20   :  { %v5915_v47 = vpop.f32.mrb[40].mxu1 }
 0xe21   :  { %v1502_v57 = vpop.f32.mrb[41].mxu1  ;;  %v7699_v18 = vadd.f32 %v6744_v17, %v5915_v47 }
 0xe22   :  { %v7685_v49 = vadd.f32 %v6742_v63, %v1502_v57  ;;  %v5916_v9 = vpop.f32.mrb[42].mxu1 }
 0xe23   :  { %v1505_v48 = vpop.f32.mrb[43].mxu1  ;;  %1548 = vmax.xlane.f32.xlu0 %v1547_v7  ;;  %1551 = vmax.xlane.f32.xlu1 %v1550_v4  ;;  %v7704_v12 = vadd.f32 %v6745_v51, %v5916_v9  ;;  %v1559_v8 = vsel %vm195_vm1, %v7699_v18, -inf }
 0xe24   :  { %v7694_v1 = vadd.f32 %v6743_v11, %v1505_v48  ;;  %v1553_v19 = vsel %vm195_vm1, %v7685_v49, -inf }
 0xe25   :  { %v1562_v2 = vsel %vm195_vm1, %v7704_v12, -inf }
 0xe26   :  { %v1556_v20 = vsel %vm195_vm1, %v7694_v1, -inf }
 0xe27   :  { %1554 = vmax.xlane.f32.xlu0 %v1553_v19  ;;  %1557 = vmax.xlane.f32.xlu1 %v1556_v20 }
 0xe2b   :  { %1560 = vmax.xlane.f32.xlu0 %v1559_v8  ;;  %1563 = vmax.xlane.f32.xlu1 %v1562_v2 }
 0xe9a   :  { %v1519_v53 = vpop.xlane.xlu1 %1518 }
 0xe9b   :  { %v1565_v35 = vsub.f32 %v7605_v21, %v1519_v53 }
 0xe9c   :  { %v1522_v60 = vpop.xlane.xlu0 %1521 }
 0xe9d   :  { %v1566_v25 = vsub.f32 %v7615_v0, %v1522_v60  ;;  %v1581_v4 = vmul.f32 1.442695, %v1565_v35 }
 0xe9e   :  { %v1528_v30 = vpop.xlane.xlu1 %1527 }
 0xe9f   :  { %v1568_v47 = vsub.f32 %v7610_v23, %v1528_v30  ;;  %v1583_v57 = vmul.f32 1.442695, %v1566_v25 }
 0xea0   :  { %v1525_v63 = vpop.xlane.xlu0 %1524 }
 0xea1   :  { %v1587_v9 = vmul.f32 1.442695, %v1568_v47  ;;  %v1567_v7 = vsub.f32 %v7622_v31, %v1525_v63 }
 0xea3   :  { %6385 = vpow2.f32 %v1587_v9  ;;  %v1585_v48 = vmul.f32 1.442695, %v1567_v7 }
 0xea4   :  { %6387 = vpow2.f32 %v1583_v57  ;;  %v1531_v11 = vpop.xlane.xlu0 %1530  ;;  %v1534_v17 = vpop.xlane.xlu1 %1533 }
 0xea5   :  { %6389 = vpow2.f32 %v1585_v48  ;;  %v1569_v0 = vsub.f32 %v7631_v55, %v1531_v11  ;;  %v1570_v51 = vsub.f32 %v7638_v27, %v1534_v17 }
 0xea6   :  { %6391 = vpow2.f32 %v1581_v4 }
 0xea7   :  { %v1589_v8 = vmul.f32 1.442695, %v1569_v0  ;;  %v1591_v53 = vmul.f32 1.442695, %v1570_v51 }
 0xea8   :  { %v1537_v21 = vpop.xlane.xlu0 %1536  ;;  %v1540_v19 = vpop.xlane.xlu1 %1539 }
 0xea9   :  { %v1571_v23 = vsub.f32 %v7643_v15, %v1537_v21  ;;  %v1572_v20 = vsub.f32 %v7648_v46, %v1540_v19 }
 0xeab   :  { %v1593_v31 = vmul.f32 1.442695, %v1571_v23  ;;  %v1595_v2 = vmul.f32 1.442695, %v1572_v20 }
 0xeac   :  { %v1543_v60 = vpop.xlane.xlu0 %1542  ;;  %v1546_v25 = vpop.xlane.xlu1 %1545 }
 0xead   :  { %v7722_v30 = vpop.eup %6385  ;;  %6393 = vpow2.f32 %v1593_v31  ;;  %v1573_v15 = vsub.f32 %v7657_v33, %v1543_v60  ;;  %v1574_v46 = vsub.f32 %v7666_v22, %v1546_v25 }
 0xeae   :  { %v7724_v35 = vpop.eup %6387  ;;  %6395 = vpow2.f32 %v1595_v2  ;;  %v1622_v55 = vsel %vm195_vm1, %v7722_v30, 0.0 }
 0xeaf   :  { %v7728_v27 = vpop.eup %6389  ;;  %6397 = vpow2.f32 %v1589_v8  ;;  %1623 = vadd.xlane.f32.xlu1 %v1622_v55  ;;  %v1616_v48 = vsel %vm195_vm1, %v7724_v35, 0.0  ;;  %v1597_v33 = vmul.f32 1.442695, %v1573_v15  ;;  %v1599_v22 = vmul.f32 1.442695, %v1574_v46 }
 0xeb0   :  { %6399 = vpow2.f32 %v1591_v53  ;;  %v1549_v47 = vpop.xlane.xlu0 %1548  ;;  %v1552_v57 = vpop.xlane.xlu1 %1551  ;;  %v1619_v63 = vsel %vm195_vm1, %v7728_v27, 0.0 }
 0xeb1   :  { %v7734_v9 = vpop.eup %6391  ;;  %v1575_v7 = vsub.f32 %v7671_v3, %v1549_v47  ;;  %v1576_v4 = vsub.f32 %v7676_v40, %v1552_v57  ;;  %1620 = vadd.xlane.f32.xlu0 %v1619_v63 }
 0xeb2   :  { %v1613_v21 = vsel %vm195_vm1, %v7734_v9, 0.0 }
 0xeb3   :  { %v1601_v11 = vmul.f32 1.442695, %v1575_v7  ;;  %v1603_v17 = vmul.f32 1.442695, %v1576_v4  ;;  %1617 = vadd.xlane.f32.xlu1 %v1616_v48 }
 0xeb4   :  { %v1555_v0 = vpop.xlane.xlu0 %1554  ;;  %v1558_v51 = vpop.xlane.xlu1 %1557 }
 0xeb5   :  { %6401 = vpow2.f32 %v1601_v11  ;;  %1614 = vadd.xlane.f32.xlu0 %v1613_v21  ;;  %v1577_v19 = vsub.f32 %v7685_v49, %v1555_v0  ;;  %v1578_v57 = vsub.f32 %v7694_v1, %v1558_v51 }
 0xeb6   :  { %6403 = vpow2.f32 %v1603_v17 }
 0xeb7   :  { %v7742_v3 = vpop.eup %6393  ;;  %6405 = vpow2.f32 %v1597_v33  ;;  %v1605_v55 = vmul.f32 1.442695, %v1577_v19  ;;  %v1607_v33 = vmul.f32 1.442695, %v1578_v57 }
 0xeb8   :  { %v7744_v40 = vpop.eup %6395  ;;  %6407 = vpow2.f32 %v1599_v22  ;;  %v1561_v23 = vpop.xlane.xlu0 %1560  ;;  %v1631_v20 = vsel %vm195_vm1, %v7742_v3, 0.0 }
 0xeb9   :  { %v7749_v8 = vpop.eup %6397  ;;  %v1579_v31 = vsub.f32 %v7699_v18, %v1561_v23  ;;  %v1564_v2 = vpop.xlane.xlu1 %1563  ;;  %1632 = vadd.xlane.f32.xlu0 %v1631_v20  ;;  %v1634_v53 = vsel %vm195_vm1, %v7744_v40, 0.0 }
 0xeba   :  { %v7754_v60 = vpop.eup %6399  ;;  %1635 = vadd.xlane.f32.xlu1 %v1634_v53  ;;  %v1580_v49 = vsub.f32 %v7704_v12, %v1564_v2  ;;  %v1625_v15 = vsel %vm195_vm1, %v7749_v8, 0.0 }
 0xebb   :  { %v1609_v25 = vmul.f32 1.442695, %v1579_v31  ;;  %v1628_v18 = vsel %vm195_vm1, %v7754_v60, 0.0 }
 0xebc   :  { %v1611_v63 = vmul.f32 1.442695, %v1580_v49 }
 0xebd   :  { %6409 = vpow2.f32 %v1609_v25  ;;  %1626 = vadd.xlane.f32.xlu0 %v1625_v15 }
 0xebe   :  { %1629 = vadd.xlane.f32.xlu1 %v1628_v18  ;;  %6411 = vpow2.f32 %v1605_v55 }
 0xebf   :  { %v7761_v46 = vpop.eup %6401  ;;  %6413 = vpow2.f32 %v1611_v63 }
 0xec0   :  { %v7763_v47 = vpop.eup %6403  ;;  %v1643_v12 = vsel %vm195_vm1, %v7761_v46, 0.0  ;;  %6415 = vpow2.f32 %v1607_v33 }
 0xec1   :  { %v7768_v7 = vpop.eup %6405  ;;  %1644 = vadd.xlane.f32.xlu0 %v1643_v12  ;;  %v1646_v4 = vsel %vm195_vm1, %v7763_v47, 0.0 }
 0xec2   :  { %v7772_v48 = vpop.eup %6407  ;;  %1647 = vadd.xlane.f32.xlu1 %v1646_v4  ;;  %v1637_v11 = vsel %vm195_vm1, %v7768_v7, 0.0 }
 0xec3   :  { %v1640_v1 = vsel %vm195_vm1, %v7772_v48, 0.0 }
 0xec5   :  { %1638 = vadd.xlane.f32.xlu0 %v1637_v11 }
 0xec6   :  { %1641 = vadd.xlane.f32.xlu1 %v1640_v1 }
 0xec7   :  { %v7778_v17 = vpop.eup %6409 }
 0xec8   :  { %v1655_v22 = vsel %vm195_vm1, %v7778_v17, 0.0  ;;  %v7782_v0 = vpop.eup %6411 }
 0xec9   :  { %v1649_v51 = vsel %vm195_vm1, %v7782_v0, 0.0  ;;  %v7786_v21 = vpop.eup %6413 }
 0xeca   :  { %1656 = vadd.xlane.f32.xlu1 %v1655_v22  ;;  %v1658_v19 = vsel %vm195_vm1, %v7786_v21, 0.0  ;;  %v7790_v23 = vpop.eup %6415 }
 0xecb   :  { %v1652_v20 = vsel %vm195_vm1, %v7790_v23, 0.0 }
 0xece   :  { %1650 = vadd.xlane.f32.xlu1 %v1649_v51 }
 0xed2   :  { %1659 = vadd.xlane.f32.xlu1 %v1658_v19 }
 0xed6   :  { %1653 = vadd.xlane.f32.xlu1 %v1652_v20 }
 0xedb   :  { %1701 = vrot.lane.b32.xlu0 %v7577_v38, %s6887_s23 }
 0xee7   :  { %1703 = vrot.lane.b32.xlu1 %v7573_v32, %s6887_s23 }
 0xf3c   :  { %v1624_v31 = vpop.xlane.xlu1 %1623 }
 0xf3e   :  { %v1621_v2 = vpop.xlane.xlu0 %1620 }
 0xf40   :  { %v1618_v53 = vpop.xlane.xlu1 %1617 }
 0xf41   :  { %6417 = vrcp.f32 %v1618_v53 }
 0xf42   :  { %v1615_v25 = vpop.xlane.xlu0 %1614 }
 0xf43   :  { %6419 = vrcp.f32 %v1615_v25 }
 0xf44   :  { %6421 = vrcp.f32 %v1621_v2 }
 0xf46   :  { %v1633_v55 = vpop.xlane.xlu0 %1632 }
 0xf47   :  { %v1636_v49 = vpop.xlane.xlu1 %1635 }
 0xf4a   :  { %v1627_v15 = vpop.xlane.xlu0 %1626 }
 0xf4b   :  { %v6418_v18 = vpop.eup %6417  ;;  %v1630_v57 = vpop.xlane.xlu1 %1629  ;;  %6423 = vrcp.f32 %v1627_v15 }
 0xf4c   :  { %v1678_v38 = vmul.f32 %v6418_v18, %v7724_v35  ;;  %6425 = vrcp.f32 %v1630_v57 }
 0xf4d   :  { %v6420_v63 = vpop.eup %6419  ;;  %6427 = vrcp.f32 %v1624_v31 }
 0xf4e   :  { %v1645_v12 = vpop.xlane.xlu0 %1644  ;;  %v1677_v4 = vmul.f32 %v6420_v63, %v7734_v9  ;;  %6429 = vrcp.f32 %v1633_v55  ;;  %v6422_v35 = vpop.eup %6421 }
 0xf4f   :  { %v1648_v33 = vpop.xlane.xlu1 %1647  ;;  %6431 = vrcp.f32 %v1636_v49  ;;  %v1679_v63 = vmul.f32 %v6422_v35, %v7728_v27 }
 0xf50   :  { %v1693_v11 = vpack.c.bf16 %v1678_v38, %v1677_v4 }
 0xf52   :  { %v1639_v32 = vpop.xlane.xlu0 %1638  ;;  %5921 = vmatprep.mubr.msk.bf16.mxu0 %vm195_vm1, %v1693_v11 }
 0xf53   :  { %v1642_v1 = vpop.xlane.xlu1 %1641  ;;  %6433 = vrcp.f32 %v1639_v32 }
 0xf54   :  { %6435 = vrcp.f32 %v1642_v1 }
 0xf55   :  { %v6424_v9 = vpop.eup %6423  ;;  %6437 = vrcp.f32 %v1645_v12 }
 0xf56   :  { %v1702_v22 = vpop.permute.xlu0 %1701  ;;  %v6426_v25 = vpop.eup %6425  ;;  %v1681_v2 = vmul.f32 %v6424_v9, %v7749_v8  ;;  %6439 = vrcp.f32 %v1648_v33 }
 0xf57   :  { %v1657_v51 = vpop.xlane.xlu1 %1656  ;;  %5917 = vmatprep.subr.bf16.mxu0 %v1702_v22  ;;  %v6428_v18 = vpop.eup %6427  ;;  %v1682_v15 = vmul.f32 %v6426_v25, %v7754_v60 }
 0xf58   :  { %5918 = vmatpush3.bf16.msra.mxu0 %v1702_v22  ;;  %v1680_v31 = vmul.f32 %v6428_v18, %v7722_v30  ;;  %v6430_v55 = vpop.eup %6429 }
 0xf59   :  { %v6432_v49 = vpop.eup %6431  ;;  %v1695_v11 = vpack.c.bf16 %v1682_v15, %v1681_v2  ;;  %v1683_v27 = vmul.f32 %v6430_v55, %v7742_v3  ;;  %v6746_v2 = vld [vmem:[%s9264_s10 + $0x10] sm:$0xff] }
 0xf5a   :  { %v1694_v57 = vpack.c.bf16 %v1680_v31, %v1679_v63  ;;  %v1684_v30 = vmul.f32 %v6432_v49, %v7744_v40  ;;  %v6747_v31 = vld [vmem:[%s9264_s10 + $0x30] sm:$0xff] }
 0xf5b   :  { %v1651_v19 = vpop.xlane.xlu1 %1650 }
 0xf5c   :  { %v1696_v33 = vpack.c.bf16 %v1684_v30, %v1683_v27  ;;  %v6750_v30 = vld [vmem:[%s9264_s10 + $0x18] sm:$0xff] }
 0xf5d   :  { %v6434_v38 = vpop.eup %6433 }
 0xf5e   :  { %v6436_v32 = vpop.eup %6435  ;;  %v1685_v8 = vmul.f32 %v6434_v38, %v7768_v7 }
 0xf5f   :  { %v1660_v20 = vpop.xlane.xlu1 %1659  ;;  %v1686_v60 = vmul.f32 %v6436_v32, %v7772_v48  ;;  %v6438_v12 = vpop.eup %6437 }
 0xf60   :  { %v6440_v1 = vpop.eup %6439  ;;  %v1687_v3 = vmul.f32 %v6438_v12, %v7761_v46  ;;  %v6243_v46 = vld [vmem:[%s9259_s5 + $0x10] sm:$0xff]   ;;  %v6751_v12 = vld [vmem:[%s9264_s10 + $0x38] sm:$0xff] }
 0xf61   :  { %v1697_v22 = vpack.c.bf16 %v1686_v60, %v1685_v8  ;;  %v1688_v40 = vmul.f32 %v6440_v1, %v7763_v47  ;;  %5937 = vmatprep.subr.bf16.mxu1 %v6243_v46  ;;  %v6244_v47 = vld [vmem:[%s9259_s5 + $0x18] sm:$0xff]  }
 0xf62   :  { %5938 = vmatpush3.bf16.msra.mxu1 %v6243_v46 }
 0xf63   :  { %v1654_v53 = vpop.xlane.xlu1 %1653  ;;  %5939 = vmatprep.subr.bf16.mxu1 %v6244_v47 }
 0xf64   :  { %6441 = vrcp.f32 %v1654_v53 }
 0xf65   :  { %6443 = vrcp.f32 %v1651_v19 }
 0xf66   :  { %6445 = vrcp.f32 %v1660_v20  ;;  %v1698_v20 = vpack.c.bf16 %v1688_v40, %v1687_v3  ;;  %5940 = vmatpush3.bf16.msra.mxu1 %v6244_v47  ;;  %v6753_v3 = vld [vmem:[%s9264_s10 + $0x28] sm:$0xff]  ;;  %v6756_v47 = vld [vmem:[%s9264_s10 + $0x58] sm:$0xff] }
 0xf67   :  { %v1704_v4 = vpop.permute.xlu1 %1703  ;;  %6447 = vrcp.f32 %v1657_v51 }
 0xf68   :  { %5919 = vmatprep.subr.bf16.mxu0 %v1704_v4 }
 0xf69   :  { %5920 = vmatpush3.bf16.msra.mxu0 %v1704_v4 }
 0xf6c   :  { %5922 = vmatmul.mubr.msk.bf16.vlgmr.msra.gmra.mrb[28].mxu0 %vm195_vm1, %v1694_v57  ;;  %v6748_v57 = vld [vmem:[%s9264_s10] sm:$0xff] }
 0xf6d   :  { %5925 = vmatprep.mubr.msk.bf16.mxu0 %vm195_vm1, %v1695_v11  ;;  %v6749_v11 = vld [vmem:[%s9264_s10 + $0x20] sm:$0xff] }
 0xf6e   :  { %v6442_v35 = vpop.eup %6441 }
 0xf6f   :  { %v6444_v19 = vpop.eup %6443  ;;  %v1690_v7 = vmul.f32 %v6442_v35, %v7790_v23 }
 0xf70   :  { %v1689_v48 = vmul.f32 %v6444_v19, %v7782_v0  ;;  %v6446_v9 = vpop.eup %6445 }
 0xf71   :  { %v6448_v51 = vpop.eup %6447  ;;  %v1692_v25 = vmul.f32 %v6446_v9, %v7786_v21  ;;  %v6754_v9 = vld [vmem:[%s9264_s10 + $0x50] sm:$0xff] }
 0xf72   :  { %v1699_v53 = vpack.c.bf16 %v1690_v7, %v1689_v48  ;;  %v1691_v18 = vmul.f32 %v6448_v51, %v7778_v17 }
 0xf74   :  { %5926 = vmatmul.mubr.msk.bf16.gmra.mrb[32].mxu0 %vm195_vm1, %v1696_v33  ;;  %v1700_v63 = vpack.c.bf16 %v1692_v25, %v1691_v18  ;;  %v6755_v25 = vld [vmem:[%s9264_s10 + $0x40] sm:$0xff] }
 0xf75   :  { %5929 = vmatprep.mubr.msk.bf16.mxu0 %vm195_vm1, %v1697_v22  ;;  %v6752_v22 = vld [vmem:[%s9264_s10 + $0x8] sm:$0xff] }
 0xf7c   :  { %5930 = vmatmul.mubr.msk.bf16.gmra.mrb[36].mxu0 %vm195_vm1, %v1698_v20 }
 0xf7d   :  { %5933 = vmatprep.mubr.msk.bf16.mxu0 %vm195_vm1, %v1699_v53 }
 0xf84   :  { %5934 = vmatmul.mubr.msk.bf16.gmra.mrb[40].mxu0 %vm195_vm1, %v1700_v63 }
0x103f   :  { %v5923_v0 = vpop.f32.mrb[28].mxu0 }
0x1040   :  { %v1765_v23 = vpop.f32.mrb[29].mxu0  ;;  %v1830_v15 = vmul.f32 %v6746_v2, %v5923_v0 }
0x1041   :  { %v5924_v21 = vpop.f32.mrb[30].mxu0  ;;  %v1828_v38 = vmul.f32 %v6748_v57, %v1765_v23 }
0x1042   :  { %v1768_v4 = vpop.f32.mrb[31].mxu0  ;;  %v1831_v8 = vmul.f32 %v6750_v30, %v5924_v21  ;;  %v6760_v30 = vld [vmem:[%s9264_s10 + $0x78] sm:$0xff] }
0x1043   :  { %v1829_v35 = vmul.f32 %v6752_v22, %v1768_v4  ;;  %v6757_v4 = vld [vmem:[%s9264_s10 + $0x48] sm:$0xff] }
0x1047   :  { %v5927_v17 = vpop.f32.mrb[32].mxu0 }
0x1048   :  { %v1834_v55 = vmul.f32 %v6747_v31, %v5927_v17  ;;  %v1781_v49 = vpop.f32.mrb[33].mxu0 }
0x1049   :  { %v1832_v32 = vmul.f32 %v6749_v11, %v1781_v49  ;;  %v5928_v27 = vpop.f32.mrb[34].mxu0 }
0x104a   :  { %v1846_v60 = vadd.f32 %v1834_v55, %v1830_v15  ;;  %v1835_v33 = vmul.f32 %v6751_v12, %v5928_v27  ;;  %v1784_v1 = vpop.f32.mrb[35].mxu0  ;;  %v6758_v55 = vld [vmem:[%s9264_s10 + $0x70] sm:$0xff] }
0x104b   :  { %v1844_v19 = vadd.f32 %v1832_v32, %v1828_v38  ;;  %v1833_v40 = vmul.f32 %v6753_v3, %v1784_v1  ;;  %v6759_v38 = vld [vmem:[%s9264_s10 + $0x60] sm:$0xff] }
0x104c   :  { %v1847_v7 = vadd.f32 %v1835_v33, %v1831_v8  ;;  %v6761_v33 = vld [vmem:[%s9264_s10 + $0x68] sm:$0xff] }
0x104d   :  { %v1845_v48 = vadd.f32 %v1833_v40, %v1829_v35  ;;  %v1866_v40 = vrot.slane %v7555_v39, %v7435_v42 }
0x104f   :  { %v5931_v20 = vpop.f32.mrb[36].mxu0 }
0x1050   :  { %v1838_v53 = vmul.f32 %v6754_v9, %v5931_v20  ;;  %v1797_v51 = vpop.f32.mrb[37].mxu0 }
0x1051   :  { %v1836_v18 = vmul.f32 %v6755_v25, %v1797_v51  ;;  %v5932_v63 = vpop.f32.mrb[38].mxu0 }
0x1052   :  { %v1850_v46 = vadd.f32 %v1846_v60, %v1838_v53  ;;  %v1839_v0 = vmul.f32 %v6756_v47, %v5932_v63  ;;  %v1800_v23 = vpop.f32.mrb[39].mxu0 }
0x1053   :  { %v1848_v21 = vadd.f32 %v1844_v19, %v1836_v18  ;;  %v1837_v17 = vmul.f32 %v6757_v4, %v1800_v23 }
0x1054   :  { %v1851_v2 = vadd.f32 %v1847_v7, %v1839_v0 }
0x1055   :  { %v1849_v15 = vadd.f32 %v1845_v48, %v1837_v17 }
0x1057   :  { %v5935_v31 = vpop.f32.mrb[40].mxu0 }
0x1058   :  { %v1842_v49 = vmul.f32 %v6758_v55, %v5935_v31  ;;  %v1813_v57 = vpop.f32.mrb[41].mxu0 }
0x1059   :  { %v1840_v11 = vmul.f32 %v6759_v38, %v1813_v57  ;;  %v5936_v32 = vpop.f32.mrb[42].mxu0 }
0x105a   :  { %v1854_v27 = vadd.f32 %v1850_v46, %v1842_v49  ;;  %v1843_v8 = vmul.f32 %v6760_v30, %v5936_v32  ;;  %v1816_v60 = vpop.f32.mrb[43].mxu0 }
0x105b   :  { %v1852_v12 = vadd.f32 %v1848_v21, %v1840_v11  ;;  %v1841_v1 = vmul.f32 %v6761_v33, %v1816_v60 }
0x105c   :  { %v1855_v22 = vadd.f32 %v1851_v2, %v1843_v8 }
0x105d   :  { %v1853_v35 = vadd.f32 %v1849_v15, %v1841_v1 }
0x105e   :  { %v1857_v19 = vpack.c.bf16 %v1855_v22, %v1854_v27 }
0x105f   :  { %v1856_v3 = vpack.c.bf16 %v1853_v35, %v1852_v12  ;;  %v6246_v35 = vld [vmem:[%s9260_s6 + $0x18] sm:$0xff]  }
0x1061   :  { %5941 = vmatprep.mubr.msk.bf16.mxu1 %vm195_vm1, %v1856_v3 }
0x1062   :  { %5942 = vmatmul.mubr.msk.bf16.vlgmr.msra.gmra.mrb[44].mxu1 %vm195_vm1, %v1857_v19 }
0x1135   :  { %v5943_v7 = vpop.f32.mrb[44].mxu1 }
0x1136   :  { %v1919_v48 = vpop.f32.mrb[45].mxu1  ;;  %v1928_v20 = vadd.f32 %v5943_v7, %v1866_v40 }
0x1137   :  { %v1920_v9 = vadd.f32 %v1919_v48, %v1866_v40  ;;  %v5944_v53 = vpop.f32.mrb[46].mxu1 }
0x1138   :  { %v1922_v51 = vpop.f32.mrb[47].mxu1  ;;  %v7884_v63 = vadd.f32 %v1928_v20, %v7522_v13  ;;  %v1931_v46 = vadd.f32 %v5944_v53, %v1866_v40 }
0x1139   :  { %v7881_v25 = vadd.f32 %v1920_v9, %v7519_v62  ;;  %v1923_v18 = vadd.f32 %v1922_v51, %v1866_v40 }
0x113a   :  { %v7894_v21 = vadd.f32 %v1931_v46, %v7530_v36  ;;  %v1944_v62 = vsel %vm195_vm1, %v7884_v63, 0.0 }
0x113b   :  { %v7887_v47 = vadd.f32 %v1923_v18, %v7525_v50  ;;  %v1938_v0 = vsel %vm195_vm1, %v7881_v25, 0.0  ;;  %v6245_v50 = vld [vmem:[%s9260_s6 + $0x10] sm:$0xff]  }
0x113c   :  { %1939 = vadd.xlane.f32.xlu0 %v1938_v0  ;;  %v1947_v13 = vsel %vm195_vm1, %v7894_v21, 0.0  ;;  %5945 = vmatprep.subr.bf16.mxu0 %v6245_v50 }
0x113d   :  { %v1941_v23 = vsel %vm195_vm1, %v7887_v47, 0.0  ;;  %5946 = vmatpush3.bf16.msra.mxu0 %v6245_v50 }
0x113e   :  { %1942 = vadd.xlane.f32.xlu1 %v1941_v23  ;;  %5947 = vmatprep.subr.bf16.mxu0 %v6246_v35 }
0x1140   :  { %1945 = vadd.xlane.f32.xlu0 %v1944_v62  ;;  %v1993_v62 = vrot.slane %v7555_v39, %v7477_v5 }
0x1141   :  { %5948 = vmatpush3.bf16.msra.mxu0 %v6246_v35  ;;  %v6252_v35 = vld [vmem:[%s9261_s7 + $0x58] sm:$0xff]  }
0x1144   :  { %1948 = vadd.xlane.f32.xlu0 %v1947_v13 }
0x11c9   :  { %v1940_v4 = vpop.xlane.xlu0 %1939 }
0x11ca   :  { %v1950_v17 = vmul.f32 0.03125, %v1940_v4 }
0x11cb   :  { %v1943_v2 = vpop.xlane.xlu1 %1942 }
0x11cc   :  { %v1954_v36 = vsub.f32 %v7881_v25, %v1950_v17  ;;  %v1951_v15 = vmul.f32 0.03125, %v1943_v2  ;;  %v2001_v2 = vrot.slane %v7555_v39, %v7487_v43  ;;  %v6247_v39 = vld [vmem:[%s9261_s7 + $0x30] sm:$0xff]  }
0x11cd   :  { %v1946_v31 = vpop.xlane.xlu0 %1945  ;;  %5953 = vmatprep.subr.bf16.mxu1 %v6247_v39 }
0x11ce   :  { %v1955_v55 = vsub.f32 %v7887_v47, %v1951_v15  ;;  %v1952_v49 = vmul.f32 0.03125, %v1946_v31  ;;  %v1958_v57 = vmul.f32 %v1954_v36, %v1954_v36  ;;  %5954 = vmatpush3.bf16.msra.mxu1 %v6247_v39 }
0x11d0   :  { %v1956_v38 = vsub.f32 %v7884_v63, %v1952_v49  ;;  %v1962_v11 = vsel %vm195_vm1, %v1958_v57, 0.0  ;;  %v1959_v32 = vmul.f32 %v1955_v55, %v1955_v55 }
0x11d1   :  { %1963 = vadd.xlane.f32.xlu0 %v1962_v11  ;;  %v1949_v27 = vpop.xlane.xlu0 %1948 }
0x11d2   :  { %v1953_v30 = vmul.f32 0.03125, %v1949_v27  ;;  %v1965_v60 = vsel %vm195_vm1, %v1959_v32, 0.0  ;;  %v1960_v12 = vmul.f32 %v1956_v38, %v1956_v38 }
0x11d4   :  { %v1957_v8 = vsub.f32 %v7894_v21, %v1953_v30  ;;  %v1968_v1 = vsel %vm195_vm1, %v1960_v12, 0.0 }
0x11d5   :  { %1966 = vadd.xlane.f32.xlu0 %v1965_v60 }
0x11d6   :  { %v1961_v33 = vmul.f32 %v1957_v8, %v1957_v8 }
0x11d8   :  { %v1971_v22 = vsel %vm195_vm1, %v1961_v33, 0.0 }
0x11d9   :  { %1969 = vadd.xlane.f32.xlu0 %v1968_v1  ;;  %1972 = vadd.xlane.f32.xlu1 %v1971_v22  ;;  %v6251_v22 = vld [vmem:[%s9261_s7 + $0x50] sm:$0xff]  }
0x125e   :  { %v1964_v19 = vpop.xlane.xlu0 %1963 }
0x125f   :  { %v1974_v3 = vmul.f32 0.03125, %v1964_v19  ;;  %v5374_v19 = vld [vmem:[%s9263_s9 + $0x1] ss:$0 sm:$0xff] }
0x1261   :  { %v1978_v40 = vadd.f32 1e-05, %v1974_v3 }
0x1262   :  { %v1967_v7 = vpop.xlane.xlu0 %1966 }
0x1263   :  { %6449 = vrsqrt.f32 %v1978_v40  ;;  %v1975_v48 = vmul.f32 0.03125, %v1967_v7 }
0x1265   :  { %v1979_v20 = vadd.f32 1e-05, %v1975_v48 }
0x1266   :  { %v1973_v9 = vpop.xlane.xlu1 %1972  ;;  %v1970_v53 = vpop.xlane.xlu0 %1969 }
0x1267   :  { %6451 = vrsqrt.f32 %v1979_v20  ;;  %v1977_v51 = vmul.f32 0.03125, %v1973_v9  ;;  %v1976_v18 = vmul.f32 0.03125, %v1970_v53 }
0x1269   :  { %v1981_v46 = vadd.f32 1e-05, %v1977_v51  ;;  %v1980_v0 = vadd.f32 1e-05, %v1976_v18 }
0x126b   :  { %6453 = vrsqrt.f32 %v1981_v46 }
0x126c   :  { %6455 = vrsqrt.f32 %v1980_v0 }
0x126d   :  { %v6450_v23 = vpop.eup %6449 }
0x126e   :  { %v1986_v13 = vmul.f32 %v6450_v23, %v1954_v36 }
0x1270   :  { %v1994_v17 = vmul.f32 %v1993_v62, %v1986_v13 }
0x1271   :  { %v6452_v50 = vpop.eup %6451 }
0x1272   :  { %v1987_v4 = vmul.f32 %v6452_v50, %v1955_v55  ;;  %v2002_v11 = vadd.f32 %v2001_v2, %v1994_v17  ;;  %v6248_v55 = vld [vmem:[%s9261_s7 + $0x38] sm:$0xff]  }
0x1273   :  { %5955 = vmatprep.subr.bf16.mxu1 %v6248_v55 }
0x1274   :  { %v1995_v15 = vmul.f32 %v1993_v62, %v1987_v4  ;;  %5956 = vmatpush3.bf16.msra.mxu1 %v6248_v55 }
0x1275   :  { %v6454_v31 = vpop.eup %6453 }
0x1276   :  { %v6456_v49 = vpop.eup %6455  ;;  %v1989_v57 = vmul.f32 %v6454_v31, %v1957_v8  ;;  %v2003_v32 = vadd.f32 %v2001_v2, %v1995_v15  ;;  %v6250_v8 = vld [vmem:[%s9261_s7 + $0x48] sm:$0xff]  }
0x1277   :  { %v1988_v27 = vmul.f32 %v6456_v49, %v1956_v38  ;;  %v6249_v38 = vld [vmem:[%s9261_s7 + $0x40] sm:$0xff]  }
0x1278   :  { %v1997_v30 = vmul.f32 %v1993_v62, %v1989_v57  ;;  %v2006_v60 = vpack.c.bf16 %v2003_v32, %v2002_v11  ;;  %5957 = vmatprep.subr.bf16.mxu1 %v6249_v38 }
0x1279   :  { %v1996_v12 = vmul.f32 %v1993_v62, %v1988_v27  ;;  %5958 = vmatpush3.bf16.msra.mxu1 %v6249_v38 }
0x127a   :  { %5949 = vmatprep.mubr.msk.bf16.mxu0 %vm195_vm1, %v2006_v60  ;;  %v2005_v33 = vadd.f32 %v2001_v2, %v1997_v30  ;;  %5959 = vmatprep.subr.bf16.mxu1 %v6250_v8 }
0x127b   :  { %v2004_v36 = vadd.f32 %v2001_v2, %v1996_v12 }
0x127d   :  { %v2007_v1 = vpack.c.bf16 %v2005_v33, %v2004_v36  ;;  %5960 = vmatpush3.bf16.msra.mxu1 %v6250_v8 }
0x127e   :  { %5961 = vmatprep.subr.bf16.mxu1 %v6251_v22 }
0x127f   :  { %5950 = vmatmul.mubr.msk.bf16.vlgmr.msra.gmra.mrb[44].mxu0 %vm195_vm1, %v2007_v1  ;;  %v6762_v1 = vld [vmem:[%s9262_s8 + $0x8] sm:$0x3f] }
0x1280   :  { %v2124_v39 = vrot.slane %v6762_v1, %v7514_v37 }
0x1281   :  { %5962 = vmatpush3.bf16.msra.mxu1 %v6251_v22 }
0x1282   :  { %5963 = vmatprep.subr.bf16.mxu1 %v6252_v35 }
0x1285   :  { %5964 = vmatpush3.bf16.msra.mxu1 %v6252_v35 }
0x1352   :  { %v5951_v3 = vpop.f32.mrb[44].mxu0 }
0x1353   :  { %v2080_v40 = vadd.f32 %v5951_v3, %v5374_v19  ;;  %v2071_v7 = vpop.f32.mrb[45].mxu0 }
0x1354   :  { %v2072_v48 = vadd.f32 %v5374_v19, %v2071_v7  ;;  %v5952_v20 = vpop.f32.mrb[46].mxu0 }
0x1355   :  { %v2092_v9 = vmul.f32 0.70710677, %v2080_v40  ;;  %v2083_v53 = vadd.f32 %v5952_v20, %v5374_v19  ;;  %v2074_v51 = vpop.f32.mrb[47].mxu0  ;;  %v2088_v15 = vmul.f32 0.5, %v2080_v40 }
0x1356   :  { %v2090_v18 = vmul.f32 0.70710677, %v2072_v48  ;;  %v2075_v46 = vadd.f32 %v5374_v19, %v2074_v51  ;;  %v2086_v57 = vmul.f32 0.5, %v2072_v48 }
0x1357   :  { %6457 = verf.f32 %v2092_v9  ;;  %v2093_v0 = vmul.f32 0.70710677, %v2083_v53  ;;  %v2089_v31 = vmul.f32 0.5, %v2083_v53 }
0x1358   :  { %6459 = verf.f32 %v2090_v18  ;;  %v2091_v23 = vmul.f32 0.70710677, %v2075_v46  ;;  %v2087_v11 = vmul.f32 0.5, %v2075_v46 }
0x1359   :  { %6461 = verf.f32 %v2093_v0 }
0x135a   :  { %6463 = verf.f32 %v2091_v23 }
0x1361   :  { %v6458_v62 = vpop.eup %6457 }
0x1362   :  { %v6460_v13 = vpop.eup %6459  ;;  %v2100_v50 = vadd.f32 1.0, %v6458_v62 }
0x1363   :  { %v6462_v4 = vpop.eup %6461  ;;  %v2098_v17 = vadd.f32 1.0, %v6460_v13 }
0x1364   :  { %v6464_v2 = vpop.eup %6463  ;;  %v2101_v49 = vadd.f32 1.0, %v6462_v4  ;;  %v2104_v27 = vmul.f32 %v2100_v50, %v2088_v15 }
0x1365   :  { %v2099_v32 = vadd.f32 1.0, %v6464_v2  ;;  %v2102_v60 = vmul.f32 %v2098_v17, %v2086_v57 }
0x1366   :  { %v2105_v30 = vmul.f32 %v2101_v49, %v2089_v31 }
0x1367   :  { %v2103_v12 = vmul.f32 %v2099_v32, %v2087_v11 }
0x1368   :  { %v2107_v33 = vpack.c.bf16 %v2105_v30, %v2104_v27 }
0x1369   :  { %v2106_v36 = vpack.c.bf16 %v2103_v12, %v2102_v60  ;;  %v6253_v60 = vld [vmem:[%s9257_s3 + $0x20] sm:$0xff]   ;;  %v6254_v12 = vld [vmem:[%s9257_s3 + $0x28] sm:$0xff]  }
0x136a   :  { %5969 = vmatprep.subr.bf16.mxu0 %v6253_v60 }
0x136b   :  { %5965 = vmatprep.mubr.msk.bf16.mxu1 %vm1144_vm2, %v2106_v36  ;;  %5970 = vmatpush3.bf16.msra.mxu0 %v6253_v60 }
0x136c   :  { %5966 = vmatmul.mubr.msk.bf16.vlgmr.msra.gmra.mrb[48].mxu1 %vm1144_vm2, %v2107_v33  ;;  %5971 = vmatprep.subr.bf16.mxu0 %v6254_v12 }
0x136f   :  { %5972 = vmatpush3.bf16.msra.mxu0 %v6254_v12 }
0x143f   :  { %v5967_v55 = vpop.f32.mrb[48].mxu1 }
0x1440   :  { %v2201_v38 = vpop.f32.mrb[49].mxu1  ;;  %v2210_v8 = vadd.f32 %v5967_v55, %v2124_v39 }
0x1441   :  { %v2202_v22 = vadd.f32 %v2201_v38, %v2124_v39  ;;  %v5968_v35 = vpop.f32.mrb[50].mxu1 }
0x1442   :  { %v2204_v19 = vpop.f32.mrb[51].mxu1  ;;  %v2213_v40 = vadd.f32 %v5968_v35, %v2124_v39  ;;  %v7951_v48 = vadd.f32 %v2210_v8, %v7884_v63 }
0x1443   :  { %v7948_v3 = vadd.f32 %v2202_v22, %v7881_v25  ;;  %v2205_v7 = vadd.f32 %v2204_v19, %v2124_v39 }
0x1444   :  { %v7959_v53 = vadd.f32 %v2213_v40, %v7894_v21  ;;  %v2232_v25 = vsel %vm195_vm1, %v7951_v48, 0.0 }
0x1445   :  { %v7954_v20 = vadd.f32 %v2205_v7, %v7887_v47  ;;  %v2226_v9 = vsel %vm195_vm1, %v7948_v3, 0.0 }
0x1446   :  { %2227 = vadd.xlane.f32.xlu0 %v2226_v9  ;;  %v2235_v63 = vsel %vm195_vm1, %v7959_v53, 0.0  ;;  %v7984_v9 = vld [vmem:[%s9262_s8 + $0x10] sm:$0x3f] }
0x1447   :  { %v2229_v51 = vsel %vm195_vm1, %v7954_v20, 0.0 }
0x1448   :  { %2230 = vadd.xlane.f32.xlu1 %v2229_v51  ;;  %v2281_v51 = vrot.slane %v7984_v9, %v7007_v54 }
0x144a   :  { %2233 = vadd.xlane.f32.xlu0 %v2232_v25 }
0x144c   :  { %2236 = vadd.xlane.f32.xlu1 %v2235_v63 }
0x14d3   :  { %v2228_v47 = vpop.xlane.xlu0 %2227 }
0x14d4   :  { %v2238_v18 = vmul.f32 0.03125, %v2228_v47 }
0x14d5   :  { %v2231_v46 = vpop.xlane.xlu1 %2230 }
0x14d6   :  { %v2242_v0 = vsub.f32 %v7948_v3, %v2238_v18  ;;  %v2239_v23 = vmul.f32 0.03125, %v2231_v46 }
0x14d7   :  { %v2234_v21 = vpop.xlane.xlu0 %2233 }
0x14d8   :  { %v2243_v62 = vsub.f32 %v7954_v20, %v2239_v23  ;;  %v2240_v13 = vmul.f32 0.03125, %v2234_v21  ;;  %v2246_v50 = vmul.f32 %v2242_v0, %v2242_v0  ;;  %v2289_v23 = vrot.slane %v7984_v9, %v7017_v59 }
0x14d9   :  { %v2237_v4 = vpop.xlane.xlu1 %2236 }
0x14da   :  { %v2244_v17 = vsub.f32 %v7951_v48, %v2240_v13  ;;  %v2241_v2 = vmul.f32 0.03125, %v2237_v4  ;;  %v2250_v15 = vsel %vm195_vm1, %v2246_v50, 0.0  ;;  %v2247_v31 = vmul.f32 %v2243_v62, %v2243_v62 }
0x14db   :  { %2251 = vadd.xlane.f32.xlu0 %v2250_v15 }
0x14dc   :  { %v2245_v49 = vsub.f32 %v7959_v53, %v2241_v2  ;;  %v2253_v57 = vsel %vm195_vm1, %v2247_v31, 0.0  ;;  %v2248_v11 = vmul.f32 %v2244_v17, %v2244_v17 }
0x14dd   :  { %2254 = vadd.xlane.f32.xlu1 %v2253_v57 }
0x14de   :  { %v2256_v32 = vsel %vm195_vm1, %v2248_v11, 0.0  ;;  %v2249_v27 = vmul.f32 %v2245_v49, %v2245_v49 }
0x14df   :  { %2257 = vadd.xlane.f32.xlu0 %v2256_v32 }
0x14e0   :  { %v2259_v30 = vsel %vm195_vm1, %v2249_v27, 0.0 }
0x14e1   :  { %2260 = vadd.xlane.f32.xlu1 %v2259_v30 }
0x1568   :  { %v2252_v33 = vpop.xlane.xlu0 %2251 }
0x1569   :  { %v2262_v36 = vmul.f32 0.03125, %v2252_v33 }
0x156a   :  { %v2255_v1 = vpop.xlane.xlu1 %2254 }
0x156b   :  { %v2266_v39 = vadd.f32 1e-05, %v2262_v36  ;;  %v2263_v55 = vmul.f32 0.03125, %v2255_v1 }
0x156c   :  { %v2258_v38 = vpop.xlane.xlu0 %2257 }
0x156d   :  { %6465 = vrsqrt.f32 %v2266_v39  ;;  %v2267_v8 = vadd.f32 1e-05, %v2263_v55  ;;  %v2264_v22 = vmul.f32 0.03125, %v2258_v38 }
0x156e   :  { %v2261_v35 = vpop.xlane.xlu1 %2260 }
0x156f   :  { %6467 = vrsqrt.f32 %v2267_v8  ;;  %v2268_v19 = vadd.f32 1e-05, %v2264_v22  ;;  %v2265_v40 = vmul.f32 0.03125, %v2261_v35 }
0x1571   :  { %6469 = vrsqrt.f32 %v2268_v19  ;;  %v2269_v7 = vadd.f32 1e-05, %v2265_v40 }
0x1573   :  { %6471 = vrsqrt.f32 %v2269_v7 }
0x1577   :  { %v6466_v25 = vpop.eup %6465 }
0x1578   :  { %v2274_v63 = vmul.f32 %v6466_v25, %v2242_v0 }
0x1579   :  { %v6468_v47 = vpop.eup %6467 }
0x157a   :  { %v2275_v18 = vmul.f32 %v6468_v47, %v2243_v62  ;;  %v2282_v46 = vmul.f32 %v2281_v51, %v2274_v63  ;;  %v5406_v62 = vld [vmem:[%s9258_s4 + $0x2] ss:$0 sm:$0xff] }
0x157b   :  { %v6470_v21 = vpop.eup %6469 }
0x157c   :  { %v2276_v13 = vmul.f32 %v6470_v21, %v2244_v17  ;;  %v2283_v50 = vmul.f32 %v2281_v51, %v2275_v18  ;;  %v2290_v31 = vadd.f32 %v2289_v23, %v2282_v46 }
0x157d   :  { %v6472_v4 = vpop.eup %6471 }
0x157e   :  { %v2284_v2 = vmul.f32 %v2281_v51, %v2276_v13  ;;  %v2277_v15 = vmul.f32 %v6472_v4, %v2245_v49  ;;  %v2291_v57 = vadd.f32 %v2289_v23, %v2283_v50 }
0x1580   :  { %v2285_v11 = vmul.f32 %v2281_v51, %v2277_v15  ;;  %v2294_v32 = vpack.c.bf16 %v2291_v57, %v2290_v31  ;;  %v2292_v27 = vadd.f32 %v2289_v23, %v2284_v2 }
0x1582   :  { %5973 = vmatprep.mubr.msk.bf16.mxu0 %vm195_vm1, %v2294_v32  ;;  %v2293_v0 = vadd.f32 %v2289_v23, %v2285_v11 }
0x1584   :  { %v2295_v30 = vpack.c.bf16 %v2293_v0, %v2292_v27 }
0x1586   :  { %5974 = vmatmul.mubr.msk.bf16.vlgmr.msra.gmra.mrb[48].mxu0 %vm195_vm1, %v2295_v30 }
0x1659   :  { %v5975_v17 = vpop.f32.mrb[48].mxu0 }
0x165a   :  { %v2368_v60 = vadd.f32 %v5975_v17, %v5406_v62  ;;  %v2359_v12 = vpop.f32.mrb[49].mxu0 }
0x165b   :  { %v2360_v33 = vadd.f32 %v5406_v62, %v2359_v12  ;;  %v5976_v49 = vpop.f32.mrb[50].mxu0 }
0x165c   :  { %v2376_v36 = vmul.f32 %v2368_v60, %v7059_v24  ;;  %v2371_v1 = vadd.f32 %v5976_v49, %v5406_v62  ;;  %v2362_v39 = vpop.f32.mrb[51].mxu0  ;;  %v2380_v55 = vmul.f32 %v2368_v60, %v7067_v26  ;;  %v2384_v38 = vmul.f32 %v2368_v60, %v7124_v41 }
0x165d   :  { %v2363_v8 = vadd.f32 %v5406_v62, %v2362_v39  ;;  %v2374_v22 = vmul.f32 %v2360_v33, %v7073_v28  ;;  %v2378_v35 = vmul.f32 %v2360_v33, %v7076_v29  ;;  %v2382_v19 = vmul.f32 %v2360_v33, %v9300_v16  ;;  %v6764_v39 = vld [vmem:[%s9265_s11 + $0x18] sm:$0xff] }
0x165e   :  { %v2377_v40 = vmul.f32 %v2371_v1, %v9301_v56  ;;  %v8002_v7 = vpack.c.bf16 %v2371_v1, %v2368_v60  ;;  %v2381_v51 = vmul.f32 %v2371_v1, %v9302_v10  ;;  %v2385_v25 = vmul.f32 %v2371_v1, %v9303_v45 }
0x165f   :  { %v8006_v63 = vpack.c.bf16 %v2363_v8, %v2360_v33  ;;  %v2375_v47 = vmul.f32 %v2363_v8, %v9304_v58  ;;  %v2379_v18 = vmul.f32 %v2363_v8, %v9305_v52  ;;  %v2383_v46 = vmul.f32 %v2363_v8, %v9306_v6 }
0x1660   :  { %2404 = vrot.lane.b32.xlu1 %v8002_v7, %s6886_s13  ;;  %v2391_v23 = vpack.c.bf16 %v2377_v40, %v2376_v36  ;;  %v2393_v21 = vpack.c.bf16 %v2381_v51, %v2380_v55  ;;  %v2395_v13 = vpack.c.bf16 %v2385_v25, %v2384_v38  ;;  %v2386_v50 = vmul.f32 %v2360_v33, %v9307_v14  ;;  %v6763_v33 = vld [vmem:[%s9265_s11] sm:$0xff]  ;;  %v6765_v38 = vld [vmem:[%s9265_s11 + $0x8] sm:$0xff] }
0x1661   :  { %2402 = vrot.lane.b32.xlu0 %v8006_v63, %s6886_s13  ;;  %v2390_v4 = vpack.c.bf16 %v2375_v47, %v2374_v22  ;;  %v2392_v2 = vpack.c.bf16 %v2379_v18, %v2378_v35  ;;  %v2394_v15 = vpack.c.bf16 %v2383_v46, %v2382_v19  ;;  %v2387_v31 = vmul.f32 %v2363_v8, %v9308_v34  ;;  %v6766_v35 = vld [vmem:[%s9265_s11 + $0x10] sm:$0xff]  ;;  %v6767_v18 = vld [vmem:[%s9265_s11 + $0x20] sm:$0xff] }
0x1662   :  { %v2388_v57 = vmul.f32 %v2368_v60, %v9309_v44  ;;  %v2389_v11 = vmul.f32 %v2371_v1, %v9310_v61 }
0x1663   :  { %5981 = vmatprep.mubr.msk.bf16.mxu0 %vm195_vm1, %v2390_v4  ;;  %v2396_v32 = vpack.c.bf16 %v2387_v31, %v2386_v50  ;;  %v6768_v50 = vld [vmem:[%s9265_s11 + $0x28] sm:$0xff]  ;;  %v6770_v31 = vld [vmem:[%s9265_s11 + $0x38] sm:$0xff] }
0x1664   :  { %v2397_v27 = vpack.c.bf16 %v2389_v11, %v2388_v57 }
0x16d2   :  { %v2405_v62 = vpop.permute.xlu1 %2404 }
0x16d3   :  { %v2403_v0 = vpop.permute.xlu0 %2402  ;;  %v2434_v17 = vsel %vm195_vm1, %v2405_v62, 0 }
0x16d4   :  { %6213 = vmatprep.subr.msk.bf16.mxu0 %vm195_vm1, %v2403_v0  ;;  %v2431_v30 = vsel %vm195_vm1, %v2403_v0, 0 }
0x16d5   :  { %5978 = vmatpush3.bf16.xpose.msra.mxu0 %v2431_v30  ;;  %v6771_v30 = vld [vmem:[%s9265_s11 + $0x40] sm:$0xff] }
0x16d6   :  { %6214 = vmatprep.subr.msk.bf16.mxu0 %vm195_vm1, %v2405_v62 }
0x16dd   :  { %5980 = vmatpush3.bf16.xpose.msra.mxu0 %v2434_v17 }
0x16e4   :  { %5982 = vmatmul.mubr.msk.bf16.vlgmr.msra.gmra.mrb[52].mxu0 %vm195_vm1, %v2391_v23 }
0x16e5   :  { %5985 = vmatprep.mubr.msk.bf16.mxu0 %vm195_vm1, %v2392_v2  ;;  %v6769_v2 = vld [vmem:[%s9265_s11 + $0x30] sm:$0xff] }
0x16ec   :  { %5986 = vmatmul.mubr.msk.bf16.gmra.mrb[56].mxu0 %vm195_vm1, %v2393_v21 }
0x16ed   :  { %5989 = vmatprep.mubr.msk.bf16.mxu0 %vm195_vm1, %v2394_v15 }
0x16f4   :  { %5990 = vmatmul.mubr.msk.bf16.gmra.mrb[60].mxu0 %vm195_vm1, %v2395_v13 }
0x16f5   :  { %5993 = vmatprep.mubr.msk.bf16.mxu0 %vm195_vm1, %v2396_v32 }
0x16fc   :  { %5994 = vmatmul.mubr.msk.bf16.gmra.mrb[64].mxu0 %vm195_vm1, %v2397_v27 }
0x17b7   :  { %v5983_v60 = vpop.f32.mrb[52].mxu0 }
0x17b8   :  { %v2470_v12 = vpop.f32.mrb[53].mxu0  ;;  %v8051_v19 = vadd.f32 %v6766_v35, %v5983_v60 }
0x17b9   :  { %v8034_v49 = vadd.f32 %v6763_v33, %v2470_v12  ;;  %v5984_v36 = vpop.f32.mrb[54].mxu0 }
0x17ba   :  { %v2473_v1 = vpop.f32.mrb[55].mxu0  ;;  %v8039_v55 = vadd.f32 %v6764_v39, %v5984_v36  ;;  %v2539_v21 = vsel %vm195_vm1, %v8051_v19, -inf  ;;  %v6772_v36 = vld [vmem:[%s9265_s11 + $0x48] sm:$0xff]  ;;  %v6773_v39 = vld [vmem:[%s9265_s11 + $0x50] sm:$0xff] }
0x17bb   :  { %v8044_v8 = vadd.f32 %v6765_v38, %v2473_v1  ;;  %v2533_v22 = vsel %vm195_vm1, %v8034_v49, -inf }
0x17bc   :  { %2534 = vmax.xlane.f32.xlu1 %v2533_v22  ;;  %v2542_v25 = vsel %vm195_vm1, %v8039_v55, -inf  ;;  %v6774_v22 = vld [vmem:[%s9265_s11 + $0x58] sm:$0xff] }
0x17bd   :  { %v2536_v40 = vsel %vm195_vm1, %v8044_v8, -inf }
0x17be   :  { %2537 = vmax.xlane.f32.xlu0 %v2536_v40 }
0x17bf   :  { %v5987_v51 = vpop.f32.mrb[56].mxu0 }
0x17c0   :  { %v2486_v47 = vpop.f32.mrb[57].mxu0  ;;  %2543 = vmax.xlane.f32.xlu1 %v2542_v25  ;;  %v8072_v15 = vadd.f32 %v6769_v2, %v5987_v51 }
0x17c1   :  { %v8060_v46 = vadd.f32 %v6767_v18, %v2486_v47  ;;  %v5988_v23 = vpop.f32.mrb[58].mxu0  ;;  %v6775_v18 = vld [vmem:[%s9265_s11 + $0x60] sm:$0xff] }
0x17c2   :  { %v2489_v13 = vpop.f32.mrb[59].mxu0  ;;  %2540 = vmax.xlane.f32.xlu0 %v2539_v21  ;;  %v8077_v57 = vadd.f32 %v6770_v31, %v5988_v23  ;;  %v2551_v60 = vsel %vm195_vm1, %v8072_v15, -inf  ;;  %v6776_v31 = vld [vmem:[%s9265_s11 + $0x68] sm:$0xff] }
0x17c3   :  { %v8067_v4 = vadd.f32 %v6768_v50, %v2489_v13  ;;  %v2545_v11 = vsel %vm195_vm1, %v8060_v46, -inf }
0x17c4   :  { %v2554_v12 = vsel %vm195_vm1, %v8077_v57, -inf }
0x17c5   :  { %v2548_v32 = vsel %vm195_vm1, %v8067_v4, -inf }
0x17c6   :  { %2546 = vmax.xlane.f32.xlu0 %v2545_v11  ;;  %2549 = vmax.xlane.f32.xlu1 %v2548_v32  ;;  %v6777_v32 = vld [vmem:[%s9265_s11 + $0x70] sm:$0xff] }
0x17c7   :  { %v5991_v27 = vpop.f32.mrb[60].mxu0 }
0x17c8   :  { %v2502_v0 = vpop.f32.mrb[61].mxu0  ;;  %v8100_v38 = vadd.f32 %v6773_v39, %v5991_v27 }
0x17c9   :  { %v8086_v62 = vadd.f32 %v6771_v30, %v2502_v0  ;;  %v5992_v17 = vpop.f32.mrb[62].mxu0  ;;  %v6778_v0 = vld [vmem:[%s9265_s11 + $0x78] sm:$0xff] }
0x17ca   :  { %v2505_v33 = vpop.f32.mrb[63].mxu0  ;;  %2552 = vmax.xlane.f32.xlu0 %v2551_v60  ;;  %2555 = vmax.xlane.f32.xlu1 %v2554_v12  ;;  %v8105_v35 = vadd.f32 %v6774_v22, %v5992_v17  ;;  %v2563_v13 = vsel %vm195_vm1, %v8100_v38, -inf }
0x17cb   :  { %v8095_v1 = vadd.f32 %v6772_v36, %v2505_v33  ;;  %v2557_v40 = vsel %vm195_vm1, %v8086_v62, -inf }
0x17cc   :  { %v2566_v50 = vsel %vm195_vm1, %v8105_v35, -inf }
0x17cd   :  { %v2560_v51 = vsel %vm195_vm1, %v8095_v1, -inf }
0x17ce   :  { %2558 = vmax.xlane.f32.xlu0 %v2557_v40  ;;  %2561 = vmax.xlane.f32.xlu1 %v2560_v51 }
0x17cf   :  { %v5995_v25 = vpop.f32.mrb[64].mxu0 }
0x17d0   :  { %v2518_v47 = vpop.f32.mrb[65].mxu0  ;;  %v8128_v27 = vadd.f32 %v6777_v32, %v5995_v25 }
0x17d1   :  { %v8114_v23 = vadd.f32 %v6775_v18, %v2518_v47  ;;  %v5996_v21 = vpop.f32.mrb[66].mxu0 }
0x17d2   :  { %v2521_v2 = vpop.f32.mrb[67].mxu0  ;;  %2564 = vmax.xlane.f32.xlu0 %v2563_v13  ;;  %2567 = vmax.xlane.f32.xlu1 %v2566_v50  ;;  %v8133_v30 = vadd.f32 %v6778_v0, %v5996_v21  ;;  %v2575_v12 = vsel %vm195_vm1, %v8128_v27, -inf }
0x17d3   :  { %v8123_v11 = vadd.f32 %v6776_v31, %v2521_v2  ;;  %v2569_v17 = vsel %vm195_vm1, %v8114_v23, -inf }
0x17d4   :  { %v2578_v33 = vsel %vm195_vm1, %v8133_v30, -inf }
0x17d5   :  { %v2572_v60 = vsel %vm195_vm1, %v8123_v11, -inf }
0x17d6   :  { %2570 = vmax.xlane.f32.xlu0 %v2569_v17  ;;  %2573 = vmax.xlane.f32.xlu1 %v2572_v60 }
0x17da   :  { %2576 = vmax.xlane.f32.xlu0 %v2575_v12  ;;  %2579 = vmax.xlane.f32.xlu1 %v2578_v33 }
0x1849   :  { %v2535_v36 = vpop.xlane.xlu1 %2534 }
0x184a   :  { %v2581_v51 = vsub.f32 %v8034_v49, %v2535_v36 }
0x184b   :  { %v2538_v39 = vpop.xlane.xlu0 %2537 }
0x184c   :  { %v2582_v22 = vsub.f32 %v8044_v8, %v2538_v39  ;;  %v2597_v50 = vmul.f32 1.442695, %v2581_v51 }
0x184d   :  { %v2544_v40 = vpop.xlane.xlu1 %2543 }
0x184e   :  { %v2584_v25 = vsub.f32 %v8039_v55, %v2544_v40  ;;  %v2599_v47 = vmul.f32 1.442695, %v2582_v22 }
0x184f   :  { %v2541_v18 = vpop.xlane.xlu0 %2540 }
0x1850   :  { %v2603_v21 = vmul.f32 1.442695, %v2584_v25  ;;  %v2583_v13 = vsub.f32 %v8051_v19, %v2541_v18 }
0x1852   :  { %6473 = vpow2.f32 %v2603_v21  ;;  %v2601_v2 = vmul.f32 1.442695, %v2583_v13 }
0x1853   :  { %6475 = vpow2.f32 %v2599_v47  ;;  %v2547_v31 = vpop.xlane.xlu0 %2546  ;;  %v2550_v32 = vpop.xlane.xlu1 %2549 }
0x1854   :  { %6477 = vpow2.f32 %v2601_v2  ;;  %v2585_v8 = vsub.f32 %v8060_v46, %v2547_v31  ;;  %v2586_v0 = vsub.f32 %v8067_v4, %v2550_v32 }
0x1855   :  { %6479 = vpow2.f32 %v2597_v50 }
0x1856   :  { %v2605_v12 = vmul.f32 1.442695, %v2585_v8  ;;  %v2607_v36 = vmul.f32 1.442695, %v2586_v0 }
0x1857   :  { %v2553_v49 = vpop.xlane.xlu0 %2552  ;;  %v2556_v17 = vpop.xlane.xlu1 %2555 }
0x1858   :  { %v2587_v55 = vsub.f32 %v8072_v15, %v2553_v49  ;;  %v2588_v60 = vsub.f32 %v8077_v57, %v2556_v17 }
0x185a   :  { %v2609_v19 = vmul.f32 1.442695, %v2587_v55  ;;  %v2611_v33 = vmul.f32 1.442695, %v2588_v60 }
0x185b   :  { %v2559_v39 = vpop.xlane.xlu0 %2558  ;;  %v2562_v22 = vpop.xlane.xlu1 %2561 }
0x185c   :  { %v8151_v40 = vpop.eup %6473  ;;  %6481 = vpow2.f32 %v2609_v19  ;;  %v2589_v15 = vsub.f32 %v8086_v62, %v2559_v39  ;;  %v2590_v57 = vsub.f32 %v8095_v1, %v2562_v22 }
0x185d   :  { %v8153_v51 = vpop.eup %6475  ;;  %6483 = vpow2.f32 %v2611_v33  ;;  %v2638_v46 = vsel %vm195_vm1, %v8151_v40, 0.0 }
0x185e   :  { %v8157_v4 = vpop.eup %6477  ;;  %6485 = vpow2.f32 %v2605_v12  ;;  %2639 = vadd.xlane.f32.xlu1 %v2638_v46  ;;  %v2632_v2 = vsel %vm195_vm1, %v8153_v51, 0.0  ;;  %v2613_v62 = vmul.f32 1.442695, %v2589_v15  ;;  %v2615_v1 = vmul.f32 1.442695, %v2590_v57 }
0x185f   :  { %6487 = vpow2.f32 %v2607_v36  ;;  %v2565_v25 = vpop.xlane.xlu0 %2564  ;;  %v2568_v47 = vpop.xlane.xlu1 %2567  ;;  %v2635_v18 = vsel %vm195_vm1, %v8157_v4, 0.0 }
0x1860   :  { %v8163_v21 = vpop.eup %6479  ;;  %v2591_v13 = vsub.f32 %v8100_v38, %v2565_v25  ;;  %v2592_v50 = vsub.f32 %v8105_v35, %v2568_v47  ;;  %2636 = vadd.xlane.f32.xlu0 %v2635_v18 }
0x1861   :  { %v2629_v49 = vsel %vm195_vm1, %v8163_v21, 0.0 }
0x1862   :  { %v2617_v31 = vmul.f32 1.442695, %v2591_v13  ;;  %v2619_v32 = vmul.f32 1.442695, %v2592_v50  ;;  %2633 = vadd.xlane.f32.xlu1 %v2632_v2 }
0x1863   :  { %v2571_v8 = vpop.xlane.xlu0 %2570  ;;  %v2574_v0 = vpop.xlane.xlu1 %2573 }
0x1864   :  { %6489 = vpow2.f32 %v2617_v31  ;;  %2630 = vadd.xlane.f32.xlu0 %v2629_v49  ;;  %v2593_v17 = vsub.f32 %v8114_v23, %v2571_v8  ;;  %v2594_v47 = vsub.f32 %v8123_v11, %v2574_v0 }
0x1865   :  { %6491 = vpow2.f32 %v2619_v32 }
0x1866   :  { %v8171_v38 = vpop.eup %6481  ;;  %6493 = vpow2.f32 %v2613_v62  ;;  %v2621_v46 = vmul.f32 1.442695, %v2593_v17  ;;  %v2623_v62 = vmul.f32 1.442695, %v2594_v47 }
0x1867   :  { %v8173_v35 = vpop.eup %6483  ;;  %6495 = vpow2.f32 %v2615_v1  ;;  %v2577_v55 = vpop.xlane.xlu0 %2576  ;;  %v2647_v60 = vsel %vm195_vm1, %v8171_v38, 0.0 }
0x1868   :  { %v8178_v12 = vpop.eup %6485  ;;  %v2595_v19 = vsub.f32 %v8128_v27, %v2577_v55  ;;  %v2580_v33 = vpop.xlane.xlu1 %2579  ;;  %2648 = vadd.xlane.f32.xlu0 %v2647_v60  ;;  %v2650_v36 = vsel %vm195_vm1, %v8173_v35, 0.0 }
0x1869   :  { %v8183_v39 = vpop.eup %6487  ;;  %2651 = vadd.xlane.f32.xlu1 %v2650_v36  ;;  %v2596_v23 = vsub.f32 %v8133_v30, %v2580_v33  ;;  %v2641_v15 = vsel %vm195_vm1, %v8178_v12, 0.0 }
0x186a   :  { %v2625_v22 = vmul.f32 1.442695, %v2595_v19  ;;  %v2644_v27 = vsel %vm195_vm1, %v8183_v39, 0.0 }
0x186b   :  { %v2627_v18 = vmul.f32 1.442695, %v2596_v23 }
0x186c   :  { %6497 = vpow2.f32 %v2625_v22  ;;  %2642 = vadd.xlane.f32.xlu0 %v2641_v15 }
0x186d   :  { %2645 = vadd.xlane.f32.xlu1 %v2644_v27  ;;  %6499 = vpow2.f32 %v2621_v46 }
0x186e   :  { %v8190_v57 = vpop.eup %6489  ;;  %6501 = vpow2.f32 %v2627_v18 }
0x186f   :  { %v8192_v25 = vpop.eup %6491  ;;  %v2659_v30 = vsel %vm195_vm1, %v8190_v57, 0.0  ;;  %6503 = vpow2.f32 %v2623_v62 }
0x1870   :  { %v8197_v13 = vpop.eup %6493  ;;  %2660 = vadd.xlane.f32.xlu0 %v2659_v30  ;;  %v2662_v50 = vsel %vm195_vm1, %v8192_v25, 0.0 }
0x1871   :  { %v8201_v2 = vpop.eup %6495  ;;  %2663 = vadd.xlane.f32.xlu1 %v2662_v50  ;;  %v2653_v31 = vsel %vm195_vm1, %v8197_v13, 0.0 }
0x1872   :  { %v2656_v11 = vsel %vm195_vm1, %v8201_v2, 0.0 }
0x1874   :  { %2654 = vadd.xlane.f32.xlu0 %v2653_v31 }
0x1875   :  { %2657 = vadd.xlane.f32.xlu1 %v2656_v11 }
0x1876   :  { %v8207_v32 = vpop.eup %6497 }
0x1877   :  { %v2671_v1 = vsel %vm195_vm1, %v8207_v32, 0.0  ;;  %v8211_v8 = vpop.eup %6499 }
0x1878   :  { %v2665_v0 = vsel %vm195_vm1, %v8211_v8, 0.0  ;;  %v8215_v49 = vpop.eup %6501 }
0x1879   :  { %2672 = vadd.xlane.f32.xlu1 %v2671_v1  ;;  %v2674_v17 = vsel %vm195_vm1, %v8215_v49, 0.0  ;;  %v8219_v55 = vpop.eup %6503 }
0x187a   :  { %v2668_v60 = vsel %vm195_vm1, %v8219_v55, 0.0 }
0x187d   :  { %2666 = vadd.xlane.f32.xlu1 %v2665_v0 }
0x1881   :  { %2675 = vadd.xlane.f32.xlu1 %v2674_v17 }
0x1885   :  { %2669 = vadd.xlane.f32.xlu1 %v2668_v60 }
0x188a   :  { %2717 = vrot.lane.b32.xlu0 %v8006_v63, %s6887_s23 }
0x1896   :  { %2719 = vrot.lane.b32.xlu1 %v8002_v7, %s6887_s23 }
0x18eb   :  { %v2640_v19 = vpop.xlane.xlu1 %2639 }
0x18ed   :  { %v2637_v33 = vpop.xlane.xlu0 %2636 }
0x18ef   :  { %v2634_v36 = vpop.xlane.xlu1 %2633 }
0x18f0   :  { %6505 = vrcp.f32 %v2634_v36 }
0x18f1   :  { %v2631_v22 = vpop.xlane.xlu0 %2630 }
0x18f2   :  { %6507 = vrcp.f32 %v2631_v22 }
0x18f3   :  { %6509 = vrcp.f32 %v2637_v33 }
0x18f5   :  { %v2649_v46 = vpop.xlane.xlu0 %2648 }
0x18f6   :  { %v2652_v23 = vpop.xlane.xlu1 %2651 }
0x18f9   :  { %v2643_v15 = vpop.xlane.xlu0 %2642 }
0x18fa   :  { %v6506_v27 = vpop.eup %6505  ;;  %v2646_v47 = vpop.xlane.xlu1 %2645  ;;  %6511 = vrcp.f32 %v2643_v15 }
0x18fb   :  { %v2694_v63 = vmul.f32 %v6506_v27, %v8153_v51  ;;  %6513 = vrcp.f32 %v2646_v47 }
0x18fc   :  { %v6508_v18 = vpop.eup %6507  ;;  %6515 = vrcp.f32 %v2640_v19 }
0x18fd   :  { %v2661_v30 = vpop.xlane.xlu0 %2660  ;;  %v2693_v50 = vmul.f32 %v6508_v18, %v8163_v21  ;;  %6517 = vrcp.f32 %v2649_v46  ;;  %v6510_v51 = vpop.eup %6509 }
0x18fe   :  { %v2664_v62 = vpop.xlane.xlu1 %2663  ;;  %6519 = vrcp.f32 %v2652_v23  ;;  %v2695_v18 = vmul.f32 %v6510_v51, %v8157_v4 }
0x18ff   :  { %v2709_v31 = vpack.c.bf16 %v2694_v63, %v2693_v50 }
0x1901   :  { %v2655_v7 = vpop.xlane.xlu0 %2654  ;;  %6001 = vmatprep.mubr.msk.bf16.mxu1 %vm195_vm1, %v2709_v31 }
0x1902   :  { %v2658_v11 = vpop.xlane.xlu1 %2657  ;;  %6521 = vrcp.f32 %v2655_v7 }
0x1903   :  { %6523 = vrcp.f32 %v2658_v11 }
0x1904   :  { %v6512_v21 = vpop.eup %6511  ;;  %6525 = vrcp.f32 %v2661_v30 }
0x1905   :  { %v2718_v1 = vpop.permute.xlu0 %2717  ;;  %v6514_v22 = vpop.eup %6513  ;;  %v2697_v33 = vmul.f32 %v6512_v21, %v8178_v12  ;;  %6527 = vrcp.f32 %v2664_v62 }
0x1906   :  { %v2673_v0 = vpop.xlane.xlu1 %2672  ;;  %5997 = vmatprep.subr.bf16.mxu1 %v2718_v1  ;;  %v6516_v27 = vpop.eup %6515  ;;  %v2698_v15 = vmul.f32 %v6514_v22, %v8183_v39 }
0x1907   :  { %5998 = vmatpush3.bf16.msra.mxu1 %v2718_v1  ;;  %v2696_v19 = vmul.f32 %v6516_v27, %v8151_v40  ;;  %v6518_v46 = vpop.eup %6517 }
0x1908   :  { %v6520_v23 = vpop.eup %6519  ;;  %v2711_v31 = vpack.c.bf16 %v2698_v15, %v2697_v33  ;;  %v2699_v4 = vmul.f32 %v6518_v46, %v8171_v38  ;;  %v6779_v33 = vld [vmem:[%s9264_s10 + $0x10] sm:$0xff] }
0x1909   :  { %v2710_v47 = vpack.c.bf16 %v2696_v19, %v2695_v18  ;;  %v2700_v40 = vmul.f32 %v6520_v23, %v8173_v35  ;;  %v6780_v19 = vld [vmem:[%s9264_s10 + $0x30] sm:$0xff] }
0x190a   :  { %v2667_v17 = vpop.xlane.xlu1 %2666 }
0x190b   :  { %v2712_v62 = vpack.c.bf16 %v2700_v40, %v2699_v4  ;;  %v6783_v40 = vld [vmem:[%s9264_s10 + $0x18] sm:$0xff] }
0x190c   :  { %v6522_v63 = vpop.eup %6521 }
0x190d   :  { %v6524_v7 = vpop.eup %6523  ;;  %v2701_v12 = vmul.f32 %v6522_v63, %v8197_v13 }
0x190e   :  { %v2676_v60 = vpop.xlane.xlu1 %2675  ;;  %v2702_v39 = vmul.f32 %v6524_v7, %v8201_v2  ;;  %v6526_v30 = vpop.eup %6525 }
0x190f   :  { %v6528_v11 = vpop.eup %6527  ;;  %v2703_v38 = vmul.f32 %v6526_v30, %v8190_v57  ;;  %v6255_v57 = vld [vmem:[%s9259_s5 + $0x20] sm:$0xff]   ;;  %v6784_v30 = vld [vmem:[%s9264_s10 + $0x38] sm:$0xff] }
0x1910   :  { %v2713_v1 = vpack.c.bf16 %v2702_v39, %v2701_v12  ;;  %v2704_v35 = vmul.f32 %v6528_v11, %v8192_v25  ;;  %6017 = vmatprep.subr.bf16.mxu0 %v6255_v57  ;;  %v6256_v25 = vld [vmem:[%s9259_s5 + $0x28] sm:$0xff]  }
0x1911   :  { %6018 = vmatpush3.bf16.msra.mxu0 %v6255_v57 }
0x1912   :  { %v2670_v36 = vpop.xlane.xlu1 %2669  ;;  %6019 = vmatprep.subr.bf16.mxu0 %v6256_v25 }
0x1913   :  { %6529 = vrcp.f32 %v2670_v36 }
0x1914   :  { %6531 = vrcp.f32 %v2667_v17 }
0x1915   :  { %6533 = vrcp.f32 %v2676_v60  ;;  %v2714_v60 = vpack.c.bf16 %v2704_v35, %v2703_v38  ;;  %6020 = vmatpush3.bf16.msra.mxu0 %v6256_v25  ;;  %v6786_v38 = vld [vmem:[%s9264_s10 + $0x28] sm:$0xff]  ;;  %v6789_v25 = vld [vmem:[%s9264_s10 + $0x58] sm:$0xff] }
0x1916   :  { %v2720_v50 = vpop.permute.xlu1 %2719  ;;  %6535 = vrcp.f32 %v2673_v0 }
0x1917   :  { %5999 = vmatprep.subr.bf16.mxu1 %v2720_v50 }
0x1918   :  { %6000 = vmatpush3.bf16.msra.mxu1 %v2720_v50 }
0x191b   :  { %6002 = vmatmul.mubr.msk.bf16.vlgmr.msra.gmra.mrb[52].mxu1 %vm195_vm1, %v2710_v47  ;;  %v6781_v47 = vld [vmem:[%s9264_s10] sm:$0xff] }
0x191c   :  { %6005 = vmatprep.mubr.msk.bf16.mxu1 %vm195_vm1, %v2711_v31  ;;  %v6782_v31 = vld [vmem:[%s9264_s10 + $0x20] sm:$0xff] }
0x191d   :  { %v6530_v51 = vpop.eup %6529 }
0x191e   :  { %v6532_v17 = vpop.eup %6531  ;;  %v2706_v13 = vmul.f32 %v6530_v51, %v8219_v55 }
0x191f   :  { %v2705_v2 = vmul.f32 %v6532_v17, %v8211_v8  ;;  %v6534_v21 = vpop.eup %6533 }
0x1920   :  { %v6536_v0 = vpop.eup %6535  ;;  %v2708_v22 = vmul.f32 %v6534_v21, %v8215_v49  ;;  %v6787_v21 = vld [vmem:[%s9264_s10 + $0x50] sm:$0xff] }
0x1921   :  { %v2715_v36 = vpack.c.bf16 %v2706_v13, %v2705_v2  ;;  %v2707_v27 = vmul.f32 %v6536_v0, %v8207_v32 }
0x1923   :  { %6006 = vmatmul.mubr.msk.bf16.gmra.mrb[56].mxu1 %vm195_vm1, %v2712_v62  ;;  %v2716_v18 = vpack.c.bf16 %v2708_v22, %v2707_v27  ;;  %v6788_v22 = vld [vmem:[%s9264_s10 + $0x40] sm:$0xff] }
0x1924   :  { %6009 = vmatprep.mubr.msk.bf16.mxu1 %vm195_vm1, %v2713_v1  ;;  %v6785_v1 = vld [vmem:[%s9264_s10 + $0x8] sm:$0xff] }
0x192b   :  { %6010 = vmatmul.mubr.msk.bf16.gmra.mrb[60].mxu1 %vm195_vm1, %v2714_v60 }
0x192c   :  { %6013 = vmatprep.mubr.msk.bf16.mxu1 %vm195_vm1, %v2715_v36 }
0x1933   :  { %6014 = vmatmul.mubr.msk.bf16.gmra.mrb[64].mxu1 %vm195_vm1, %v2716_v18 }
0x19ee   :  { %v6003_v8 = vpop.f32.mrb[52].mxu1 }
0x19ef   :  { %v2781_v55 = vpop.f32.mrb[53].mxu1  ;;  %v2846_v15 = vmul.f32 %v6779_v33, %v6003_v8 }
0x19f0   :  { %v6004_v49 = vpop.f32.mrb[54].mxu1  ;;  %v2844_v63 = vmul.f32 %v6781_v47, %v2781_v55 }
0x19f1   :  { %v2784_v50 = vpop.f32.mrb[55].mxu1  ;;  %v2847_v12 = vmul.f32 %v6783_v40, %v6004_v49  ;;  %v6793_v40 = vld [vmem:[%s9264_s10 + $0x78] sm:$0xff] }
0x19f2   :  { %v2845_v51 = vmul.f32 %v6785_v1, %v2784_v50  ;;  %v6790_v50 = vld [vmem:[%s9264_s10 + $0x48] sm:$0xff] }
0x19f6   :  { %v6007_v32 = vpop.f32.mrb[56].mxu1 }
0x19f7   :  { %v2850_v46 = vmul.f32 %v6780_v19, %v6007_v32  ;;  %v2797_v23 = vpop.f32.mrb[57].mxu1 }
0x19f8   :  { %v2848_v7 = vmul.f32 %v6782_v31, %v2797_v23  ;;  %v6008_v4 = vpop.f32.mrb[58].mxu1 }
0x19f9   :  { %v2862_v39 = vadd.f32 %v2850_v46, %v2846_v15  ;;  %v2851_v62 = vmul.f32 %v6784_v30, %v6008_v4  ;;  %v2800_v11 = vpop.f32.mrb[59].mxu1  ;;  %v6791_v46 = vld [vmem:[%s9264_s10 + $0x70] sm:$0xff] }
0x19fa   :  { %v2860_v17 = vadd.f32 %v2848_v7, %v2844_v63  ;;  %v2849_v35 = vmul.f32 %v6786_v38, %v2800_v11  ;;  %v6792_v63 = vld [vmem:[%s9264_s10 + $0x60] sm:$0xff] }
0x19fb   :  { %v2863_v13 = vadd.f32 %v2851_v62, %v2847_v12  ;;  %v6794_v62 = vld [vmem:[%s9264_s10 + $0x68] sm:$0xff] }
0x19fc   :  { %v2861_v2 = vadd.f32 %v2849_v35, %v2845_v51  ;;  %v2882_v35 = vrot.slane %v7984_v9, %v7435_v42 }
0x19fe   :  { %v6011_v60 = vpop.f32.mrb[60].mxu1 }
0x19ff   :  { %v2854_v36 = vmul.f32 %v6787_v21, %v6011_v60  ;;  %v2813_v0 = vpop.f32.mrb[61].mxu1 }
0x1a00   :  { %v2852_v27 = vmul.f32 %v6788_v22, %v2813_v0  ;;  %v6012_v18 = vpop.f32.mrb[62].mxu1 }
0x1a01   :  { %v2866_v57 = vadd.f32 %v2862_v39, %v2854_v36  ;;  %v2855_v8 = vmul.f32 %v6789_v25, %v6012_v18  ;;  %v2816_v55 = vpop.f32.mrb[63].mxu1 }
0x1a02   :  { %v2864_v49 = vadd.f32 %v2860_v17, %v2852_v27  ;;  %v2853_v32 = vmul.f32 %v6790_v50, %v2816_v55 }
0x1a03   :  { %v2867_v33 = vadd.f32 %v2863_v13, %v2855_v8 }
0x1a04   :  { %v2865_v15 = vadd.f32 %v2861_v2, %v2853_v32 }
0x1a06   :  { %v6015_v19 = vpop.f32.mrb[64].mxu1 }
0x1a07   :  { %v2858_v23 = vmul.f32 %v6791_v46, %v6015_v19  ;;  %v2829_v47 = vpop.f32.mrb[65].mxu1 }
0x1a08   :  { %v2856_v31 = vmul.f32 %v6792_v63, %v2829_v47  ;;  %v6016_v7 = vpop.f32.mrb[66].mxu1 }
0x1a09   :  { %v2870_v4 = vadd.f32 %v2866_v57, %v2858_v23  ;;  %v2859_v12 = vmul.f32 %v6793_v40, %v6016_v7  ;;  %v2832_v39 = vpop.f32.mrb[67].mxu1 }
0x1a0a   :  { %v2868_v30 = vadd.f32 %v2864_v49, %v2856_v31  ;;  %v2857_v11 = vmul.f32 %v6794_v62, %v2832_v39 }
0x1a0b   :  { %v2871_v1 = vadd.f32 %v2867_v33, %v2859_v12 }
0x1a0c   :  { %v2869_v51 = vadd.f32 %v2865_v15, %v2857_v11 }
0x1a0d   :  { %v2873_v17 = vpack.c.bf16 %v2871_v1, %v2870_v4 }
0x1a0e   :  { %v2872_v38 = vpack.c.bf16 %v2869_v51, %v2868_v30  ;;  %v6258_v51 = vld [vmem:[%s9260_s6 + $0x28] sm:$0xff]  }
0x1a10   :  { %6021 = vmatprep.mubr.msk.bf16.mxu0 %vm195_vm1, %v2872_v38 }
0x1a11   :  { %6022 = vmatmul.mubr.msk.bf16.vlgmr.msra.gmra.mrb[68].mxu0 %vm195_vm1, %v2873_v17 }
0x1ae4   :  { %v6023_v13 = vpop.f32.mrb[68].mxu0 }
0x1ae5   :  { %v2935_v2 = vpop.f32.mrb[69].mxu0  ;;  %v2944_v60 = vadd.f32 %v6023_v13, %v2882_v35 }
0x1ae6   :  { %v2936_v21 = vadd.f32 %v2935_v2, %v2882_v35  ;;  %v6024_v36 = vpop.f32.mrb[70].mxu0 }
0x1ae7   :  { %v2938_v0 = vpop.f32.mrb[71].mxu0  ;;  %v8313_v18 = vadd.f32 %v2944_v60, %v7951_v48  ;;  %v2947_v57 = vadd.f32 %v6024_v36, %v2882_v35 }
0x1ae8   :  { %v8310_v22 = vadd.f32 %v2936_v21, %v7948_v3  ;;  %v2939_v27 = vadd.f32 %v2938_v0, %v2882_v35 }
0x1ae9   :  { %v8323_v49 = vadd.f32 %v2947_v57, %v7959_v53  ;;  %v2960_v3 = vsel %vm195_vm1, %v8313_v18, 0.0 }
0x1aea   :  { %v8316_v25 = vadd.f32 %v2939_v27, %v7954_v20  ;;  %v2954_v8 = vsel %vm195_vm1, %v8310_v22, 0.0  ;;  %v6257_v20 = vld [vmem:[%s9260_s6 + $0x20] sm:$0xff]  }
0x1aeb   :  { %2955 = vadd.xlane.f32.xlu0 %v2954_v8  ;;  %v2963_v48 = vsel %vm195_vm1, %v8323_v49, 0.0  ;;  %6025 = vmatprep.subr.bf16.mxu1 %v6257_v20 }
0x1aec   :  { %v2957_v55 = vsel %vm195_vm1, %v8316_v25, 0.0  ;;  %6026 = vmatpush3.bf16.msra.mxu1 %v6257_v20 }
0x1aed   :  { %2958 = vadd.xlane.f32.xlu1 %v2957_v55  ;;  %6027 = vmatprep.subr.bf16.mxu1 %v6258_v51 }
0x1aef   :  { %2961 = vadd.xlane.f32.xlu0 %v2960_v3  ;;  %v3009_v3 = vrot.slane %v7984_v9, %v7477_v5 }
0x1af0   :  { %6028 = vmatpush3.bf16.msra.mxu1 %v6258_v51  ;;  %v6264_v51 = vld [vmem:[%s9261_s7 + $0x88] sm:$0xff]  }
0x1af3   :  { %2964 = vadd.xlane.f32.xlu0 %v2963_v48 }
0x1b78   :  { %v2956_v50 = vpop.xlane.xlu0 %2955 }
0x1b79   :  { %v2966_v32 = vmul.f32 0.03125, %v2956_v50 }
0x1b7a   :  { %v2959_v33 = vpop.xlane.xlu1 %2958 }
0x1b7b   :  { %v2970_v53 = vsub.f32 %v8310_v22, %v2966_v32  ;;  %v2967_v15 = vmul.f32 0.03125, %v2959_v33  ;;  %v3017_v33 = vrot.slane %v7984_v9, %v7487_v43  ;;  %v6259_v9 = vld [vmem:[%s9261_s7 + $0x60] sm:$0xff]  }
0x1b7c   :  { %v2962_v19 = vpop.xlane.xlu0 %2961  ;;  %6033 = vmatprep.subr.bf16.mxu0 %v6259_v9 }
0x1b7d   :  { %v2971_v46 = vsub.f32 %v8316_v25, %v2967_v15  ;;  %v2968_v23 = vmul.f32 0.03125, %v2962_v19  ;;  %v2974_v47 = vmul.f32 %v2970_v53, %v2970_v53  ;;  %6034 = vmatpush3.bf16.msra.mxu0 %v6259_v9 }
0x1b7f   :  { %v2972_v63 = vsub.f32 %v8313_v18, %v2968_v23  ;;  %v2978_v31 = vsel %vm195_vm1, %v2974_v47, 0.0  ;;  %v2975_v7 = vmul.f32 %v2971_v46, %v2971_v46 }
0x1b80   :  { %2979 = vadd.xlane.f32.xlu0 %v2978_v31  ;;  %v2965_v4 = vpop.xlane.xlu0 %2964 }
0x1b81   :  { %v2969_v40 = vmul.f32 0.03125, %v2965_v4  ;;  %v2981_v39 = vsel %vm195_vm1, %v2975_v7, 0.0  ;;  %v2976_v30 = vmul.f32 %v2972_v63, %v2972_v63 }
0x1b83   :  { %v2973_v12 = vsub.f32 %v8323_v49, %v2969_v40  ;;  %v2984_v11 = vsel %vm195_vm1, %v2976_v30, 0.0 }
0x1b84   :  { %2982 = vadd.xlane.f32.xlu0 %v2981_v39 }
0x1b85   :  { %v2977_v62 = vmul.f32 %v2973_v12, %v2973_v12 }
0x1b87   :  { %v2987_v1 = vsel %vm195_vm1, %v2977_v62, 0.0 }
0x1b88   :  { %2985 = vadd.xlane.f32.xlu0 %v2984_v11  ;;  %2988 = vadd.xlane.f32.xlu1 %v2987_v1  ;;  %v6263_v1 = vld [vmem:[%s9261_s7 + $0x80] sm:$0xff]  }
0x1c0d   :  { %v2980_v17 = vpop.xlane.xlu0 %2979 }
0x1c0e   :  { %v2990_v38 = vmul.f32 0.03125, %v2980_v17  ;;  %v5439_v17 = vld [vmem:[%s9263_s9 + $0x2] ss:$0 sm:$0xff] }
0x1c10   :  { %v2994_v35 = vadd.f32 1e-05, %v2990_v38 }
0x1c11   :  { %v2983_v13 = vpop.xlane.xlu0 %2982 }
0x1c12   :  { %6537 = vrsqrt.f32 %v2994_v35  ;;  %v2991_v2 = vmul.f32 0.03125, %v2983_v13 }
0x1c14   :  { %v2995_v60 = vadd.f32 1e-05, %v2991_v2 }
0x1c15   :  { %v2989_v21 = vpop.xlane.xlu1 %2988  ;;  %v2986_v36 = vpop.xlane.xlu0 %2985 }
0x1c16   :  { %6539 = vrsqrt.f32 %v2995_v60  ;;  %v2993_v0 = vmul.f32 0.03125, %v2989_v21  ;;  %v2992_v27 = vmul.f32 0.03125, %v2986_v36 }
0x1c18   :  { %v2997_v57 = vadd.f32 1e-05, %v2993_v0  ;;  %v2996_v8 = vadd.f32 1e-05, %v2992_v27 }
0x1c1a   :  { %6541 = vrsqrt.f32 %v2997_v57 }
0x1c1b   :  { %6543 = vrsqrt.f32 %v2996_v8 }
0x1c1c   :  { %v6538_v55 = vpop.eup %6537 }
0x1c1d   :  { %v3002_v48 = vmul.f32 %v6538_v55, %v2970_v53 }
0x1c1f   :  { %v3010_v32 = vmul.f32 %v3009_v3, %v3002_v48 }
0x1c20   :  { %v6540_v20 = vpop.eup %6539 }
0x1c21   :  { %v3003_v50 = vmul.f32 %v6540_v20, %v2971_v46  ;;  %v3018_v31 = vadd.f32 %v3017_v33, %v3010_v32  ;;  %v6260_v46 = vld [vmem:[%s9261_s7 + $0x68] sm:$0xff]  }
0x1c22   :  { %6035 = vmatprep.subr.bf16.mxu0 %v6260_v46 }
0x1c23   :  { %v3011_v15 = vmul.f32 %v3009_v3, %v3003_v50  ;;  %6036 = vmatpush3.bf16.msra.mxu0 %v6260_v46 }
0x1c24   :  { %v6542_v19 = vpop.eup %6541 }
0x1c25   :  { %v6544_v23 = vpop.eup %6543  ;;  %v3005_v47 = vmul.f32 %v6542_v19, %v2973_v12  ;;  %v3019_v7 = vadd.f32 %v3017_v33, %v3011_v15  ;;  %v6262_v12 = vld [vmem:[%s9261_s7 + $0x78] sm:$0xff]  }
0x1c26   :  { %v3004_v4 = vmul.f32 %v6544_v23, %v2972_v63  ;;  %v6261_v63 = vld [vmem:[%s9261_s7 + $0x70] sm:$0xff]  }
0x1c27   :  { %v3013_v40 = vmul.f32 %v3009_v3, %v3005_v47  ;;  %v3022_v39 = vpack.c.bf16 %v3019_v7, %v3018_v31  ;;  %6037 = vmatprep.subr.bf16.mxu0 %v6261_v63 }
0x1c28   :  { %v3012_v30 = vmul.f32 %v3009_v3, %v3004_v4  ;;  %6038 = vmatpush3.bf16.msra.mxu0 %v6261_v63 }
0x1c29   :  { %6029 = vmatprep.mubr.msk.bf16.mxu1 %vm195_vm1, %v3022_v39  ;;  %v3021_v62 = vadd.f32 %v3017_v33, %v3013_v40  ;;  %6039 = vmatprep.subr.bf16.mxu0 %v6262_v12 }
0x1c2a   :  { %v3020_v53 = vadd.f32 %v3017_v33, %v3012_v30 }
0x1c2c   :  { %v3023_v11 = vpack.c.bf16 %v3021_v62, %v3020_v53  ;;  %6040 = vmatpush3.bf16.msra.mxu0 %v6262_v12 }
0x1c2d   :  { %6041 = vmatprep.subr.bf16.mxu0 %v6263_v1 }
0x1c2e   :  { %6030 = vmatmul.mubr.msk.bf16.vlgmr.msra.gmra.mrb[68].mxu1 %vm195_vm1, %v3023_v11  ;;  %v6795_v11 = vld [vmem:[%s9262_s8 + $0x10] sm:$0x3f] }
0x1c2f   :  { %v3140_v9 = vrot.slane %v6795_v11, %v7514_v37 }
0x1c30   :  { %6042 = vmatpush3.bf16.msra.mxu0 %v6263_v1 }
0x1c31   :  { %6043 = vmatprep.subr.bf16.mxu0 %v6264_v51 }
0x1c34   :  { %6044 = vmatpush3.bf16.msra.mxu0 %v6264_v51 }
0x1d01   :  { %v6031_v38 = vpop.f32.mrb[68].mxu1 }
0x1d02   :  { %v3096_v35 = vadd.f32 %v6031_v38, %v5439_v17  ;;  %v3087_v13 = vpop.f32.mrb[69].mxu1 }
0x1d03   :  { %v3088_v2 = vadd.f32 %v5439_v17, %v3087_v13  ;;  %v6032_v60 = vpop.f32.mrb[70].mxu1 }
0x1d04   :  { %v3108_v21 = vmul.f32 0.70710677, %v3096_v35  ;;  %v3099_v36 = vadd.f32 %v6032_v60, %v5439_v17  ;;  %v3090_v0 = vpop.f32.mrb[71].mxu1  ;;  %v3104_v15 = vmul.f32 0.5, %v3096_v35 }
0x1d05   :  { %v3106_v27 = vmul.f32 0.70710677, %v3088_v2  ;;  %v3091_v57 = vadd.f32 %v5439_v17, %v3090_v0  ;;  %v3102_v47 = vmul.f32 0.5, %v3088_v2 }
0x1d06   :  { %6545 = verf.f32 %v3108_v21  ;;  %v3109_v8 = vmul.f32 0.70710677, %v3099_v36  ;;  %v3105_v19 = vmul.f32 0.5, %v3099_v36 }
0x1d07   :  { %6547 = verf.f32 %v3106_v27  ;;  %v3107_v55 = vmul.f32 0.70710677, %v3091_v57  ;;  %v3103_v31 = vmul.f32 0.5, %v3091_v57 }
0x1d08   :  { %6549 = verf.f32 %v3109_v8 }
0x1d09   :  { %6551 = verf.f32 %v3107_v55 }
0x1d10   :  { %v6546_v3 = vpop.eup %6545 }
0x1d11   :  { %v6548_v48 = vpop.eup %6547  ;;  %v3116_v20 = vadd.f32 1.0, %v6546_v3 }
0x1d12   :  { %v6550_v50 = vpop.eup %6549  ;;  %v3114_v32 = vadd.f32 1.0, %v6548_v48 }
0x1d13   :  { %v6552_v33 = vpop.eup %6551  ;;  %v3117_v23 = vadd.f32 1.0, %v6550_v50  ;;  %v3120_v4 = vmul.f32 %v3116_v20, %v3104_v15 }
0x1d14   :  { %v3115_v7 = vadd.f32 1.0, %v6552_v33  ;;  %v3118_v39 = vmul.f32 %v3114_v32, %v3102_v47 }
0x1d15   :  { %v3121_v40 = vmul.f32 %v3117_v23, %v3105_v19 }
0x1d16   :  { %v3119_v30 = vmul.f32 %v3115_v7, %v3103_v31 }
0x1d17   :  { %v3123_v62 = vpack.c.bf16 %v3121_v40, %v3120_v4 }
0x1d18   :  { %v3122_v53 = vpack.c.bf16 %v3119_v30, %v3118_v39  ;;  %v6265_v39 = vld [vmem:[%s9257_s3 + $0x30] sm:$0xff]   ;;  %v6266_v30 = vld [vmem:[%s9257_s3 + $0x38] sm:$0xff]  }
0x1d19   :  { %6049 = vmatprep.subr.bf16.mxu1 %v6265_v39 }
0x1d1a   :  { %6045 = vmatprep.mubr.msk.bf16.mxu0 %vm1144_vm2, %v3122_v53  ;;  %6050 = vmatpush3.bf16.msra.mxu1 %v6265_v39 }
0x1d1b   :  { %6046 = vmatmul.mubr.msk.bf16.vlgmr.msra.gmra.mrb[72].mxu0 %vm1144_vm2, %v3123_v62  ;;  %6051 = vmatprep.subr.bf16.mxu1 %v6266_v30 }
0x1d1e   :  { %6052 = vmatpush3.bf16.msra.mxu1 %v6266_v30 }
0x1dee   :  { %v6047_v46 = vpop.f32.mrb[72].mxu0 }
0x1def   :  { %v3217_v63 = vpop.f32.mrb[73].mxu0  ;;  %v3226_v12 = vadd.f32 %v6047_v46, %v3140_v9 }
0x1df0   :  { %v3218_v1 = vadd.f32 %v3217_v63, %v3140_v9  ;;  %v6048_v51 = vpop.f32.mrb[74].mxu0 }
0x1df1   :  { %v3220_v17 = vpop.f32.mrb[75].mxu0  ;;  %v3229_v35 = vadd.f32 %v6048_v51, %v3140_v9  ;;  %v8380_v2 = vadd.f32 %v3226_v12, %v8313_v18 }
0x1df2   :  { %v8377_v38 = vadd.f32 %v3218_v1, %v8310_v22  ;;  %v3221_v13 = vadd.f32 %v3220_v17, %v3140_v9 }
0x1df3   :  { %v8388_v36 = vadd.f32 %v3229_v35, %v8323_v49  ;;  %v3248_v22 = vsel %vm195_vm1, %v8380_v2, 0.0 }
0x1df4   :  { %v8383_v60 = vadd.f32 %v3221_v13, %v8316_v25  ;;  %v3242_v21 = vsel %vm195_vm1, %v8377_v38, 0.0 }
0x1df5   :  { %3243 = vadd.xlane.f32.xlu0 %v3242_v21  ;;  %v3251_v18 = vsel %vm195_vm1, %v8388_v36, 0.0  ;;  %v8413_v21 = vld [vmem:[%s9262_s8 + $0x18] sm:$0x3f] }
0x1df6   :  { %v3245_v0 = vsel %vm195_vm1, %v8383_v60, 0.0 }
0x1df7   :  { %3246 = vadd.xlane.f32.xlu1 %v3245_v0  ;;  %v3297_v0 = vrot.slane %v8413_v21, %v7007_v54 }
0x1df9   :  { %3249 = vadd.xlane.f32.xlu0 %v3248_v22 }
0x1dfb   :  { %3252 = vadd.xlane.f32.xlu1 %v3251_v18 }
0x1e82   :  { %v3244_v25 = vpop.xlane.xlu0 %3243 }
0x1e83   :  { %v3254_v27 = vmul.f32 0.03125, %v3244_v25 }
0x1e84   :  { %v3247_v57 = vpop.xlane.xlu1 %3246 }
0x1e85   :  { %v3258_v8 = vsub.f32 %v8377_v38, %v3254_v27  ;;  %v3255_v55 = vmul.f32 0.03125, %v3247_v57 }
0x1e86   :  { %v3250_v49 = vpop.xlane.xlu0 %3249 }
0x1e87   :  { %v3259_v3 = vsub.f32 %v8383_v60, %v3255_v55  ;;  %v3256_v48 = vmul.f32 0.03125, %v3250_v49  ;;  %v3262_v20 = vmul.f32 %v3258_v8, %v3258_v8  ;;  %v3305_v55 = vrot.slane %v8413_v21, %v7017_v59 }
0x1e88   :  { %v3253_v50 = vpop.xlane.xlu1 %3252 }
0x1e89   :  { %v3260_v32 = vsub.f32 %v8380_v2, %v3256_v48  ;;  %v3257_v33 = vmul.f32 0.03125, %v3253_v50  ;;  %v3266_v15 = vsel %vm195_vm1, %v3262_v20, 0.0  ;;  %v3263_v19 = vmul.f32 %v3259_v3, %v3259_v3 }
0x1e8a   :  { %3267 = vadd.xlane.f32.xlu0 %v3266_v15 }
0x1e8b   :  { %v3261_v23 = vsub.f32 %v8388_v36, %v3257_v33  ;;  %v3269_v47 = vsel %vm195_vm1, %v3263_v19, 0.0  ;;  %v3264_v31 = vmul.f32 %v3260_v32, %v3260_v32 }
0x1e8c   :  { %3270 = vadd.xlane.f32.xlu1 %v3269_v47 }
0x1e8d   :  { %v3272_v7 = vsel %vm195_vm1, %v3264_v31, 0.0  ;;  %v3265_v4 = vmul.f32 %v3261_v23, %v3261_v23 }
0x1e8e   :  { %3273 = vadd.xlane.f32.xlu0 %v3272_v7 }
0x1e8f   :  { %v3275_v40 = vsel %vm195_vm1, %v3265_v4, 0.0 }
0x1e90   :  { %3276 = vadd.xlane.f32.xlu1 %v3275_v40 }
0x1f17   :  { %v3268_v62 = vpop.xlane.xlu0 %3267 }
0x1f18   :  { %v3278_v53 = vmul.f32 0.03125, %v3268_v62 }
0x1f19   :  { %v3271_v11 = vpop.xlane.xlu1 %3270 }
0x1f1a   :  { %v3282_v9 = vadd.f32 1e-05, %v3278_v53  ;;  %v3279_v46 = vmul.f32 0.03125, %v3271_v11 }
0x1f1b   :  { %v3274_v63 = vpop.xlane.xlu0 %3273 }
0x1f1c   :  { %6553 = vrsqrt.f32 %v3282_v9  ;;  %v3283_v12 = vadd.f32 1e-05, %v3279_v46  ;;  %v3280_v1 = vmul.f32 0.03125, %v3274_v63 }
0x1f1d   :  { %v3277_v51 = vpop.xlane.xlu1 %3276 }
0x1f1e   :  { %6555 = vrsqrt.f32 %v3283_v12  ;;  %v3284_v17 = vadd.f32 1e-05, %v3280_v1  ;;  %v3281_v35 = vmul.f32 0.03125, %v3277_v51 }
0x1f20   :  { %6557 = vrsqrt.f32 %v3284_v17  ;;  %v3285_v13 = vadd.f32 1e-05, %v3281_v35 }
0x1f22   :  { %6559 = vrsqrt.f32 %v3285_v13 }
0x1f26   :  { %v6554_v22 = vpop.eup %6553 }
0x1f27   :  { %v3290_v18 = vmul.f32 %v6554_v22, %v3258_v8 }
0x1f28   :  { %v6556_v25 = vpop.eup %6555 }
0x1f29   :  { %v3291_v27 = vmul.f32 %v6556_v25, %v3259_v3  ;;  %v3298_v57 = vmul.f32 %v3297_v0, %v3290_v18  ;;  %v5471_v3 = vld [vmem:[%s9258_s4 + $0x3] ss:$0 sm:$0xff] }
0x1f2a   :  { %v6558_v49 = vpop.eup %6557 }
0x1f2b   :  { %v3292_v48 = vmul.f32 %v6558_v49, %v3260_v32  ;;  %v3299_v20 = vmul.f32 %v3297_v0, %v3291_v27  ;;  %v3306_v19 = vadd.f32 %v3305_v55, %v3298_v57 }
0x1f2c   :  { %v6560_v50 = vpop.eup %6559 }
0x1f2d   :  { %v3300_v33 = vmul.f32 %v3297_v0, %v3292_v48  ;;  %v3293_v15 = vmul.f32 %v6560_v50, %v3261_v23  ;;  %v3307_v47 = vadd.f32 %v3305_v55, %v3299_v20 }
0x1f2f   :  { %v3301_v31 = vmul.f32 %v3297_v0, %v3293_v15  ;;  %v3310_v7 = vpack.c.bf16 %v3307_v47, %v3306_v19  ;;  %v3308_v4 = vadd.f32 %v3305_v55, %v3300_v33 }
0x1f31   :  { %6053 = vmatprep.mubr.msk.bf16.mxu1 %vm195_vm1, %v3310_v7  ;;  %v3309_v8 = vadd.f32 %v3305_v55, %v3301_v31 }
0x1f33   :  { %v3311_v40 = vpack.c.bf16 %v3309_v8, %v3308_v4 }
0x1f35   :  { %6054 = vmatmul.mubr.msk.bf16.vlgmr.msra.gmra.mrb[72].mxu1 %vm195_vm1, %v3311_v40 }
0x2008   :  { %v6055_v32 = vpop.f32.mrb[72].mxu1 }
0x2009   :  { %v3384_v39 = vadd.f32 %v6055_v32, %v5471_v3  ;;  %v3375_v30 = vpop.f32.mrb[73].mxu1 }
0x200a   :  { %v3376_v62 = vadd.f32 %v5471_v3, %v3375_v30  ;;  %v6056_v23 = vpop.f32.mrb[74].mxu1 }
0x200b   :  { %v3392_v53 = vmul.f32 %v3384_v39, %v7059_v24  ;;  %v3387_v11 = vadd.f32 %v6056_v23, %v5471_v3  ;;  %v3378_v9 = vpop.f32.mrb[75].mxu1  ;;  %v3396_v46 = vmul.f32 %v3384_v39, %v7067_v26  ;;  %v3400_v63 = vmul.f32 %v3384_v39, %v7124_v41 }
0x200c   :  { %v3379_v12 = vadd.f32 %v5471_v3, %v3378_v9  ;;  %v3390_v1 = vmul.f32 %v3376_v62, %v7073_v28  ;;  %v3394_v51 = vmul.f32 %v3376_v62, %v7076_v29  ;;  %v3398_v17 = vmul.f32 %v3376_v62, %v9300_v16  ;;  %v6797_v9 = vld [vmem:[%s9265_s11 + $0x18] sm:$0xff] }
0x200d   :  { %v3393_v35 = vmul.f32 %v3387_v11, %v9301_v56  ;;  %v8431_v13 = vpack.c.bf16 %v3387_v11, %v3384_v39  ;;  %v3397_v0 = vmul.f32 %v3387_v11, %v9302_v10  ;;  %v3401_v22 = vmul.f32 %v3387_v11, %v9303_v45 }
0x200e   :  { %v8435_v18 = vpack.c.bf16 %v3379_v12, %v3376_v62  ;;  %v3391_v25 = vmul.f32 %v3379_v12, %v9304_v58  ;;  %v3395_v27 = vmul.f32 %v3379_v12, %v9305_v52  ;;  %v3399_v57 = vmul.f32 %v3379_v12, %v9306_v6 }
0x200f   :  { %3420 = vrot.lane.b32.xlu1 %v8431_v13, %s6886_s13  ;;  %v3407_v55 = vpack.c.bf16 %v3393_v35, %v3392_v53  ;;  %v3409_v49 = vpack.c.bf16 %v3397_v0, %v3396_v46  ;;  %v3411_v48 = vpack.c.bf16 %v3401_v22, %v3400_v63  ;;  %v3402_v20 = vmul.f32 %v3376_v62, %v9307_v14  ;;  %v6796_v62 = vld [vmem:[%s9265_s11] sm:$0xff]  ;;  %v6798_v63 = vld [vmem:[%s9265_s11 + $0x8] sm:$0xff] }
0x2010   :  { %3418 = vrot.lane.b32.xlu0 %v8435_v18, %s6886_s13  ;;  %v3406_v50 = vpack.c.bf16 %v3391_v25, %v3390_v1  ;;  %v3408_v33 = vpack.c.bf16 %v3395_v27, %v3394_v51  ;;  %v3410_v15 = vpack.c.bf16 %v3399_v57, %v3398_v17  ;;  %v3403_v19 = vmul.f32 %v3379_v12, %v9308_v34  ;;  %v6799_v51 = vld [vmem:[%s9265_s11 + $0x10] sm:$0xff]  ;;  %v6800_v27 = vld [vmem:[%s9265_s11 + $0x20] sm:$0xff] }
0x2011   :  { %v3404_v47 = vmul.f32 %v3384_v39, %v9309_v44  ;;  %v3405_v31 = vmul.f32 %v3387_v11, %v9310_v61 }
0x2012   :  { %6061 = vmatprep.mubr.msk.bf16.mxu1 %vm195_vm1, %v3406_v50  ;;  %v3412_v7 = vpack.c.bf16 %v3403_v19, %v3402_v20  ;;  %v6801_v20 = vld [vmem:[%s9265_s11 + $0x28] sm:$0xff]  ;;  %v6803_v19 = vld [vmem:[%s9265_s11 + $0x38] sm:$0xff] }
0x2013   :  { %v3413_v4 = vpack.c.bf16 %v3405_v31, %v3404_v47 }
0x2081   :  { %v3421_v3 = vpop.permute.xlu1 %3420 }
0x2082   :  { %v3419_v8 = vpop.permute.xlu0 %3418  ;;  %v3450_v32 = vsel %vm195_vm1, %v3421_v3, 0 }
0x2083   :  { %v3447_v40 = vsel %vm195_vm1, %v3419_v8, 0  ;;  %6215 = vmatprep.subr.msk.bf16.mxu1 %vm195_vm1, %v3419_v8 }
0x2084   :  { %6058 = vmatpush3.bf16.xpose.msra.mxu1 %v3447_v40  ;;  %v6804_v40 = vld [vmem:[%s9265_s11 + $0x40] sm:$0xff] }
0x2085   :  { %6216 = vmatprep.subr.msk.bf16.mxu1 %vm195_vm1, %v3421_v3 }
0x208c   :  { %6060 = vmatpush3.bf16.xpose.msra.mxu1 %v3450_v32 }
0x2093   :  { %6062 = vmatmul.mubr.msk.bf16.vlgmr.msra.gmra.mrb[76].mxu1 %vm195_vm1, %v3407_v55 }
0x2094   :  { %6065 = vmatprep.mubr.msk.bf16.mxu1 %vm195_vm1, %v3408_v33  ;;  %v6802_v33 = vld [vmem:[%s9265_s11 + $0x30] sm:$0xff] }
0x209b   :  { %6066 = vmatmul.mubr.msk.bf16.gmra.mrb[80].mxu1 %vm195_vm1, %v3409_v49 }
0x209c   :  { %6069 = vmatprep.mubr.msk.bf16.mxu1 %vm195_vm1, %v3410_v15 }
0x20a3   :  { %6070 = vmatmul.mubr.msk.bf16.gmra.mrb[84].mxu1 %vm195_vm1, %v3411_v48 }
0x20a4   :  { %6073 = vmatprep.mubr.msk.bf16.mxu1 %vm195_vm1, %v3412_v7 }
0x20ab   :  { %6074 = vmatmul.mubr.msk.bf16.gmra.mrb[88].mxu1 %vm195_vm1, %v3413_v4 }
0x2166   :  { %v6063_v39 = vpop.f32.mrb[76].mxu1 }
0x2167   :  { %v3486_v30 = vpop.f32.mrb[77].mxu1  ;;  %v8480_v17 = vadd.f32 %v6799_v51, %v6063_v39 }
0x2168   :  { %v8463_v23 = vadd.f32 %v6796_v62, %v3486_v30  ;;  %v6064_v53 = vpop.f32.mrb[78].mxu1 }
0x2169   :  { %v3489_v11 = vpop.f32.mrb[79].mxu1  ;;  %v8468_v46 = vadd.f32 %v6797_v9, %v6064_v53  ;;  %v3555_v49 = vsel %vm195_vm1, %v8480_v17, -inf  ;;  %v6805_v53 = vld [vmem:[%s9265_s11 + $0x48] sm:$0xff]  ;;  %v6806_v9 = vld [vmem:[%s9265_s11 + $0x50] sm:$0xff] }
0x216a   :  { %v8473_v12 = vadd.f32 %v6798_v63, %v3489_v11  ;;  %v3549_v1 = vsel %vm195_vm1, %v8463_v23, -inf }
0x216b   :  { %3550 = vmax.xlane.f32.xlu1 %v3549_v1  ;;  %v3558_v22 = vsel %vm195_vm1, %v8468_v46, -inf  ;;  %v6807_v1 = vld [vmem:[%s9265_s11 + $0x58] sm:$0xff] }
0x216c   :  { %v3552_v35 = vsel %vm195_vm1, %v8473_v12, -inf }
0x216d   :  { %3553 = vmax.xlane.f32.xlu0 %v3552_v35 }
0x216e   :  { %v6067_v0 = vpop.f32.mrb[80].mxu1 }
0x216f   :  { %v3502_v25 = vpop.f32.mrb[81].mxu1  ;;  %3559 = vmax.xlane.f32.xlu1 %v3558_v22  ;;  %v8501_v15 = vadd.f32 %v6802_v33, %v6067_v0 }
0x2170   :  { %v8489_v57 = vadd.f32 %v6800_v27, %v3502_v25  ;;  %v6068_v55 = vpop.f32.mrb[82].mxu1  ;;  %v6808_v27 = vld [vmem:[%s9265_s11 + $0x60] sm:$0xff] }
0x2171   :  { %v3505_v48 = vpop.f32.mrb[83].mxu1  ;;  %3556 = vmax.xlane.f32.xlu0 %v3555_v49  ;;  %v8506_v47 = vadd.f32 %v6803_v19, %v6068_v55  ;;  %v3567_v39 = vsel %vm195_vm1, %v8501_v15, -inf  ;;  %v6809_v19 = vld [vmem:[%s9265_s11 + $0x68] sm:$0xff] }
0x2172   :  { %v8496_v50 = vadd.f32 %v6801_v20, %v3505_v48  ;;  %v3561_v31 = vsel %vm195_vm1, %v8489_v57, -inf }
0x2173   :  { %v3570_v30 = vsel %vm195_vm1, %v8506_v47, -inf }
0x2174   :  { %v3564_v7 = vsel %vm195_vm1, %v8496_v50, -inf }
0x2175   :  { %3562 = vmax.xlane.f32.xlu0 %v3561_v31  ;;  %3565 = vmax.xlane.f32.xlu1 %v3564_v7  ;;  %v6810_v7 = vld [vmem:[%s9265_s11 + $0x70] sm:$0xff] }
0x2176   :  { %v6071_v4 = vpop.f32.mrb[84].mxu1 }
0x2177   :  { %v3518_v8 = vpop.f32.mrb[85].mxu1  ;;  %v8529_v63 = vadd.f32 %v6806_v9, %v6071_v4 }
0x2178   :  { %v8515_v3 = vadd.f32 %v6804_v40, %v3518_v8  ;;  %v6072_v32 = vpop.f32.mrb[86].mxu1  ;;  %v6811_v8 = vld [vmem:[%s9265_s11 + $0x78] sm:$0xff] }
0x2179   :  { %v3521_v62 = vpop.f32.mrb[87].mxu1  ;;  %3568 = vmax.xlane.f32.xlu0 %v3567_v39  ;;  %3571 = vmax.xlane.f32.xlu1 %v3570_v30  ;;  %v8534_v51 = vadd.f32 %v6807_v1, %v6072_v32  ;;  %v3579_v48 = vsel %vm195_vm1, %v8529_v63, -inf }
0x217a   :  { %v8524_v11 = vadd.f32 %v6805_v53, %v3521_v62  ;;  %v3573_v35 = vsel %vm195_vm1, %v8515_v3, -inf }
0x217b   :  { %v3582_v20 = vsel %vm195_vm1, %v8534_v51, -inf }
0x217c   :  { %v3576_v0 = vsel %vm195_vm1, %v8524_v11, -inf }
0x217d   :  { %3574 = vmax.xlane.f32.xlu0 %v3573_v35  ;;  %3577 = vmax.xlane.f32.xlu1 %v3576_v0 }
0x217e   :  { %v6075_v22 = vpop.f32.mrb[88].mxu1 }
0x217f   :  { %v3534_v25 = vpop.f32.mrb[89].mxu1  ;;  %v8557_v4 = vadd.f32 %v6810_v7, %v6075_v22 }
0x2180   :  { %v8543_v55 = vadd.f32 %v6808_v27, %v3534_v25  ;;  %v6076_v49 = vpop.f32.mrb[90].mxu1 }
0x2181   :  { %v3537_v33 = vpop.f32.mrb[91].mxu1  ;;  %3580 = vmax.xlane.f32.xlu0 %v3579_v48  ;;  %3583 = vmax.xlane.f32.xlu1 %v3582_v20  ;;  %v8562_v40 = vadd.f32 %v6811_v8, %v6076_v49  ;;  %v3591_v30 = vsel %vm195_vm1, %v8557_v4, -inf }
0x2182   :  { %v8552_v31 = vadd.f32 %v6809_v19, %v3537_v33  ;;  %v3585_v32 = vsel %vm195_vm1, %v8543_v55, -inf }
0x2183   :  { %v3594_v62 = vsel %vm195_vm1, %v8562_v40, -inf }
0x2184   :  { %v3588_v39 = vsel %vm195_vm1, %v8552_v31, -inf }
0x2185   :  { %3586 = vmax.xlane.f32.xlu0 %v3585_v32  ;;  %3589 = vmax.xlane.f32.xlu1 %v3588_v39 }
0x2189   :  { %3592 = vmax.xlane.f32.xlu0 %v3591_v30  ;;  %3595 = vmax.xlane.f32.xlu1 %v3594_v62 }
0x21f8   :  { %v3551_v53 = vpop.xlane.xlu1 %3550 }
0x21f9   :  { %v3597_v0 = vsub.f32 %v8463_v23, %v3551_v53 }
0x21fa   :  { %v3554_v9 = vpop.xlane.xlu0 %3553 }
0x21fb   :  { %v3598_v1 = vsub.f32 %v8473_v12, %v3554_v9  ;;  %v3613_v20 = vmul.f32 1.442695, %v3597_v0 }
0x21fc   :  { %v3560_v35 = vpop.xlane.xlu1 %3559 }
0x21fd   :  { %v3600_v22 = vsub.f32 %v8468_v46, %v3560_v35  ;;  %v3615_v25 = vmul.f32 1.442695, %v3598_v1 }
0x21fe   :  { %v3557_v27 = vpop.xlane.xlu0 %3556 }
0x21ff   :  { %v3619_v49 = vmul.f32 1.442695, %v3600_v22  ;;  %v3599_v48 = vsub.f32 %v8480_v17, %v3557_v27 }
0x2201   :  { %6561 = vpow2.f32 %v3619_v49  ;;  %v3617_v33 = vmul.f32 1.442695, %v3599_v48 }
0x2202   :  { %6563 = vpow2.f32 %v3615_v25  ;;  %v3563_v19 = vpop.xlane.xlu0 %3562  ;;  %v3566_v7 = vpop.xlane.xlu1 %3565 }
0x2203   :  { %6565 = vpow2.f32 %v3617_v33  ;;  %v3601_v12 = vsub.f32 %v8489_v57, %v3563_v19  ;;  %v3602_v8 = vsub.f32 %v8496_v50, %v3566_v7 }
0x2204   :  { %6567 = vpow2.f32 %v3613_v20 }
0x2205   :  { %v3621_v30 = vmul.f32 1.442695, %v3601_v12  ;;  %v3623_v53 = vmul.f32 1.442695, %v3602_v8 }
0x2206   :  { %v3569_v23 = vpop.xlane.xlu0 %3568  ;;  %v3572_v32 = vpop.xlane.xlu1 %3571 }
0x2207   :  { %v3603_v46 = vsub.f32 %v8501_v15, %v3569_v23  ;;  %v3604_v39 = vsub.f32 %v8506_v47, %v3572_v32 }
0x2209   :  { %v3625_v17 = vmul.f32 1.442695, %v3603_v46  ;;  %v3627_v62 = vmul.f32 1.442695, %v3604_v39 }
0x220a   :  { %v3575_v9 = vpop.xlane.xlu0 %3574  ;;  %v3578_v1 = vpop.xlane.xlu1 %3577 }
0x220b   :  { %v8580_v35 = vpop.eup %6561  ;;  %6569 = vpow2.f32 %v3625_v17  ;;  %v3605_v15 = vsub.f32 %v8515_v3, %v3575_v9  ;;  %v3606_v47 = vsub.f32 %v8524_v11, %v3578_v1 }
0x220c   :  { %v8582_v0 = vpop.eup %6563  ;;  %6571 = vpow2.f32 %v3627_v62  ;;  %v3654_v57 = vsel %vm195_vm1, %v8580_v35, 0.0 }
0x220d   :  { %v8586_v50 = vpop.eup %6565  ;;  %6573 = vpow2.f32 %v3621_v30  ;;  %3655 = vadd.xlane.f32.xlu1 %v3654_v57  ;;  %v3648_v33 = vsel %vm195_vm1, %v8582_v0, 0.0  ;;  %v3629_v3 = vmul.f32 1.442695, %v3605_v15  ;;  %v3631_v11 = vmul.f32 1.442695, %v3606_v47 }
0x220e   :  { %6575 = vpow2.f32 %v3623_v53  ;;  %v3581_v22 = vpop.xlane.xlu0 %3580  ;;  %v3584_v25 = vpop.xlane.xlu1 %3583  ;;  %v3651_v27 = vsel %vm195_vm1, %v8586_v50, 0.0 }
0x220f   :  { %v8592_v49 = vpop.eup %6567  ;;  %v3607_v48 = vsub.f32 %v8529_v63, %v3581_v22  ;;  %v3608_v20 = vsub.f32 %v8534_v51, %v3584_v25  ;;  %3652 = vadd.xlane.f32.xlu0 %v3651_v27 }
0x2210   :  { %v3645_v23 = vsel %vm195_vm1, %v8592_v49, 0.0 }
0x2211   :  { %v3633_v19 = vmul.f32 1.442695, %v3607_v48  ;;  %v3635_v7 = vmul.f32 1.442695, %v3608_v20  ;;  %3649 = vadd.xlane.f32.xlu1 %v3648_v33 }
0x2212   :  { %v3587_v12 = vpop.xlane.xlu0 %3586  ;;  %v3590_v8 = vpop.xlane.xlu1 %3589 }
0x2213   :  { %6577 = vpow2.f32 %v3633_v19  ;;  %3646 = vadd.xlane.f32.xlu0 %v3645_v23  ;;  %v3609_v32 = vsub.f32 %v8543_v55, %v3587_v12  ;;  %v3610_v25 = vsub.f32 %v8552_v31, %v3590_v8 }
0x2214   :  { %6579 = vpow2.f32 %v3635_v7 }
0x2215   :  { %v8600_v63 = vpop.eup %6569  ;;  %6581 = vpow2.f32 %v3629_v3  ;;  %v3637_v57 = vmul.f32 1.442695, %v3609_v32  ;;  %v3639_v3 = vmul.f32 1.442695, %v3610_v25 }
0x2216   :  { %v8602_v51 = vpop.eup %6571  ;;  %6583 = vpow2.f32 %v3631_v11  ;;  %v3593_v46 = vpop.xlane.xlu0 %3592  ;;  %v3663_v39 = vsel %vm195_vm1, %v8600_v63, 0.0 }
0x2217   :  { %v8607_v30 = vpop.eup %6573  ;;  %v3611_v17 = vsub.f32 %v8557_v4, %v3593_v46  ;;  %v3596_v62 = vpop.xlane.xlu1 %3595  ;;  %3664 = vadd.xlane.f32.xlu0 %v3663_v39  ;;  %v3666_v53 = vsel %vm195_vm1, %v8602_v51, 0.0 }
0x2218   :  { %v8612_v9 = vpop.eup %6575  ;;  %3667 = vadd.xlane.f32.xlu1 %v3666_v53  ;;  %v3612_v55 = vsub.f32 %v8562_v40, %v3596_v62  ;;  %v3657_v15 = vsel %vm195_vm1, %v8607_v30, 0.0 }
0x2219   :  { %v3641_v1 = vmul.f32 1.442695, %v3611_v17  ;;  %v3660_v4 = vsel %vm195_vm1, %v8612_v9, 0.0 }
0x221a   :  { %v3643_v27 = vmul.f32 1.442695, %v3612_v55 }
0x221b   :  { %6585 = vpow2.f32 %v3641_v1  ;;  %3658 = vadd.xlane.f32.xlu0 %v3657_v15 }
0x221c   :  { %3661 = vadd.xlane.f32.xlu1 %v3660_v4  ;;  %6587 = vpow2.f32 %v3637_v57 }
0x221d   :  { %v8619_v47 = vpop.eup %6577  ;;  %6589 = vpow2.f32 %v3643_v27 }
0x221e   :  { %v8621_v22 = vpop.eup %6579  ;;  %v3675_v40 = vsel %vm195_vm1, %v8619_v47, 0.0  ;;  %6591 = vpow2.f32 %v3639_v3 }
0x221f   :  { %v8626_v48 = vpop.eup %6581  ;;  %3676 = vadd.xlane.f32.xlu0 %v3675_v40  ;;  %v3678_v20 = vsel %vm195_vm1, %v8621_v22, 0.0 }
0x2220   :  { %v8630_v33 = vpop.eup %6583  ;;  %3679 = vadd.xlane.f32.xlu1 %v3678_v20  ;;  %v3669_v19 = vsel %vm195_vm1, %v8626_v48, 0.0 }
0x2221   :  { %v3672_v31 = vsel %vm195_vm1, %v8630_v33, 0.0 }
0x2223   :  { %3670 = vadd.xlane.f32.xlu0 %v3669_v19 }
0x2224   :  { %3673 = vadd.xlane.f32.xlu1 %v3672_v31 }
0x2225   :  { %v8636_v7 = vpop.eup %6585 }
0x2226   :  { %v3687_v11 = vsel %vm195_vm1, %v8636_v7, 0.0  ;;  %v8640_v12 = vpop.eup %6587 }
0x2227   :  { %v3681_v8 = vsel %vm195_vm1, %v8640_v12, 0.0  ;;  %v8644_v23 = vpop.eup %6589 }
0x2228   :  { %3688 = vadd.xlane.f32.xlu1 %v3687_v11  ;;  %v3690_v32 = vsel %vm195_vm1, %v8644_v23, 0.0  ;;  %v8648_v46 = vpop.eup %6591 }
0x2229   :  { %v3684_v39 = vsel %vm195_vm1, %v8648_v46, 0.0 }
0x222c   :  { %3682 = vadd.xlane.f32.xlu1 %v3681_v8 }
0x2230   :  { %3691 = vadd.xlane.f32.xlu1 %v3690_v32 }
0x2234   :  { %3685 = vadd.xlane.f32.xlu1 %v3684_v39 }
0x2239   :  { %3733 = vrot.lane.b32.xlu0 %v8435_v18, %s6887_s23 }
0x2245   :  { %3735 = vrot.lane.b32.xlu1 %v8431_v13, %s6887_s23 }
0x229a   :  { %v3656_v17 = vpop.xlane.xlu1 %3655 }
0x229c   :  { %v3653_v62 = vpop.xlane.xlu0 %3652 }
0x229e   :  { %v3650_v53 = vpop.xlane.xlu1 %3649 }
0x229f   :  { %6593 = vrcp.f32 %v3650_v53 }
0x22a0   :  { %v3647_v1 = vpop.xlane.xlu0 %3646 }
0x22a1   :  { %6595 = vrcp.f32 %v3647_v1 }
0x22a2   :  { %6597 = vrcp.f32 %v3653_v62 }
0x22a4   :  { %v3665_v57 = vpop.xlane.xlu0 %3664 }
0x22a5   :  { %v3668_v55 = vpop.xlane.xlu1 %3667 }
0x22a8   :  { %v3659_v15 = vpop.xlane.xlu0 %3658 }
0x22a9   :  { %v6594_v4 = vpop.eup %6593  ;;  %v3662_v25 = vpop.xlane.xlu1 %3661  ;;  %6599 = vrcp.f32 %v3659_v15 }
0x22aa   :  { %v3710_v18 = vmul.f32 %v6594_v4, %v8582_v0  ;;  %6601 = vrcp.f32 %v3662_v25 }
0x22ab   :  { %v6596_v27 = vpop.eup %6595  ;;  %6603 = vrcp.f32 %v3656_v17 }
0x22ac   :  { %v3677_v40 = vpop.xlane.xlu0 %3676  ;;  %v3709_v20 = vmul.f32 %v6596_v27, %v8592_v49  ;;  %6605 = vrcp.f32 %v3665_v57  ;;  %v6598_v0 = vpop.eup %6597 }
0x22ad   :  { %v3680_v3 = vpop.xlane.xlu1 %3679  ;;  %6607 = vrcp.f32 %v3668_v55  ;;  %v3711_v27 = vmul.f32 %v6598_v0, %v8586_v50 }
0x22ae   :  { %v3725_v19 = vpack.c.bf16 %v3710_v18, %v3709_v20 }
0x22b0   :  { %v3671_v13 = vpop.xlane.xlu0 %3670  ;;  %6081 = vmatprep.mubr.msk.bf16.mxu0 %vm195_vm1, %v3725_v19 }
0x22b1   :  { %v3674_v31 = vpop.xlane.xlu1 %3673  ;;  %6609 = vrcp.f32 %v3671_v13 }
0x22b2   :  { %6611 = vrcp.f32 %v3674_v31 }
0x22b3   :  { %v6600_v49 = vpop.eup %6599  ;;  %6613 = vrcp.f32 %v3677_v40 }
0x22b4   :  { %v3734_v11 = vpop.permute.xlu0 %3733  ;;  %v6602_v1 = vpop.eup %6601  ;;  %v3713_v62 = vmul.f32 %v6600_v49, %v8607_v30  ;;  %6615 = vrcp.f32 %v3680_v3 }
0x22b5   :  { %v3689_v8 = vpop.xlane.xlu1 %3688  ;;  %6077 = vmatprep.subr.bf16.mxu0 %v3734_v11  ;;  %v6604_v4 = vpop.eup %6603  ;;  %v3714_v15 = vmul.f32 %v6602_v1, %v8612_v9 }
0x22b6   :  { %6078 = vmatpush3.bf16.msra.mxu0 %v3734_v11  ;;  %v3712_v17 = vmul.f32 %v6604_v4, %v8580_v35  ;;  %v6606_v57 = vpop.eup %6605 }
0x22b7   :  { %v6608_v55 = vpop.eup %6607  ;;  %v3727_v19 = vpack.c.bf16 %v3714_v15, %v3713_v62  ;;  %v3715_v50 = vmul.f32 %v6606_v57, %v8600_v63  ;;  %v6812_v62 = vld [vmem:[%s9264_s10 + $0x10] sm:$0xff] }
0x22b8   :  { %v3726_v25 = vpack.c.bf16 %v3712_v17, %v3711_v27  ;;  %v3716_v35 = vmul.f32 %v6608_v55, %v8602_v51  ;;  %v6813_v17 = vld [vmem:[%s9264_s10 + $0x30] sm:$0xff] }
0x22b9   :  { %v3683_v32 = vpop.xlane.xlu1 %3682 }
0x22ba   :  { %v3728_v3 = vpack.c.bf16 %v3716_v35, %v3715_v50  ;;  %v6816_v35 = vld [vmem:[%s9264_s10 + $0x18] sm:$0xff] }
0x22bb   :  { %v6610_v18 = vpop.eup %6609 }
0x22bc   :  { %v6612_v13 = vpop.eup %6611  ;;  %v3717_v30 = vmul.f32 %v6610_v18, %v8626_v48 }
0x22bd   :  { %v3692_v39 = vpop.xlane.xlu1 %3691  ;;  %v3718_v9 = vmul.f32 %v6612_v13, %v8630_v33  ;;  %v6614_v40 = vpop.eup %6613 }
0x22be   :  { %v6616_v31 = vpop.eup %6615  ;;  %v3719_v63 = vmul.f32 %v6614_v40, %v8619_v47  ;;  %v6267_v47 = vld [vmem:[%s9259_s5 + $0x30] sm:$0xff]   ;;  %v6817_v40 = vld [vmem:[%s9264_s10 + $0x38] sm:$0xff] }
0x22bf   :  { %v3729_v11 = vpack.c.bf16 %v3718_v9, %v3717_v30  ;;  %v3720_v51 = vmul.f32 %v6616_v31, %v8621_v22  ;;  %6097 = vmatprep.subr.bf16.mxu1 %v6267_v47  ;;  %v6268_v22 = vld [vmem:[%s9259_s5 + $0x38] sm:$0xff]  }
0x22c0   :  { %6098 = vmatpush3.bf16.msra.mxu1 %v6267_v47 }
0x22c1   :  { %v3686_v53 = vpop.xlane.xlu1 %3685  ;;  %6099 = vmatprep.subr.bf16.mxu1 %v6268_v22 }
0x22c2   :  { %6617 = vrcp.f32 %v3686_v53 }
0x22c3   :  { %6619 = vrcp.f32 %v3683_v32 }
0x22c4   :  { %6621 = vrcp.f32 %v3692_v39  ;;  %v3730_v39 = vpack.c.bf16 %v3720_v51, %v3719_v63  ;;  %6100 = vmatpush3.bf16.msra.mxu1 %v6268_v22  ;;  %v6819_v63 = vld [vmem:[%s9264_s10 + $0x28] sm:$0xff]  ;;  %v6822_v22 = vld [vmem:[%s9264_s10 + $0x58] sm:$0xff] }
0x22c5   :  { %v3736_v20 = vpop.permute.xlu1 %3735  ;;  %6623 = vrcp.f32 %v3689_v8 }
0x22c6   :  { %6079 = vmatprep.subr.bf16.mxu0 %v3736_v20 }
0x22c7   :  { %6080 = vmatpush3.bf16.msra.mxu0 %v3736_v20 }
0x22ca   :  { %6082 = vmatmul.mubr.msk.bf16.vlgmr.msra.gmra.mrb[76].mxu0 %vm195_vm1, %v3726_v25  ;;  %v6814_v25 = vld [vmem:[%s9264_s10] sm:$0xff] }
0x22cb   :  { %6085 = vmatprep.mubr.msk.bf16.mxu0 %vm195_vm1, %v3727_v19  ;;  %v6815_v19 = vld [vmem:[%s9264_s10 + $0x20] sm:$0xff] }
0x22cc   :  { %v6618_v0 = vpop.eup %6617 }
0x22cd   :  { %v6620_v32 = vpop.eup %6619  ;;  %v3722_v48 = vmul.f32 %v6618_v0, %v8648_v46 }
0x22ce   :  { %v3721_v33 = vmul.f32 %v6620_v32, %v8640_v12  ;;  %v6622_v49 = vpop.eup %6621 }
0x22cf   :  { %v6624_v8 = vpop.eup %6623  ;;  %v3724_v1 = vmul.f32 %v6622_v49, %v8644_v23  ;;  %v6820_v49 = vld [vmem:[%s9264_s10 + $0x50] sm:$0xff] }
0x22d0   :  { %v3731_v53 = vpack.c.bf16 %v3722_v48, %v3721_v33  ;;  %v3723_v4 = vmul.f32 %v6624_v8, %v8636_v7 }
0x22d2   :  { %6086 = vmatmul.mubr.msk.bf16.gmra.mrb[80].mxu0 %vm195_vm1, %v3728_v3  ;;  %v3732_v27 = vpack.c.bf16 %v3724_v1, %v3723_v4  ;;  %v6821_v1 = vld [vmem:[%s9264_s10 + $0x40] sm:$0xff] }
0x22d3   :  { %6089 = vmatprep.mubr.msk.bf16.mxu0 %vm195_vm1, %v3729_v11  ;;  %v6818_v11 = vld [vmem:[%s9264_s10 + $0x8] sm:$0xff] }
0x22da   :  { %6090 = vmatmul.mubr.msk.bf16.gmra.mrb[84].mxu0 %vm195_vm1, %v3730_v39 }
0x22db   :  { %6093 = vmatprep.mubr.msk.bf16.mxu0 %vm195_vm1, %v3731_v53 }
0x22e2   :  { %6094 = vmatmul.mubr.msk.bf16.gmra.mrb[88].mxu0 %vm195_vm1, %v3732_v27 }
0x239d   :  { %v6083_v12 = vpop.f32.mrb[76].mxu0 }
0x239e   :  { %v3797_v46 = vpop.f32.mrb[77].mxu0  ;;  %v3862_v15 = vmul.f32 %v6812_v62, %v6083_v12 }
0x239f   :  { %v6084_v23 = vpop.f32.mrb[78].mxu0  ;;  %v3860_v18 = vmul.f32 %v6814_v25, %v3797_v46 }
0x23a0   :  { %v3800_v20 = vpop.f32.mrb[79].mxu0  ;;  %v3863_v30 = vmul.f32 %v6816_v35, %v6084_v23  ;;  %v6826_v35 = vld [vmem:[%s9264_s10 + $0x78] sm:$0xff] }
0x23a1   :  { %v3861_v0 = vmul.f32 %v6818_v11, %v3800_v20  ;;  %v6823_v20 = vld [vmem:[%s9264_s10 + $0x48] sm:$0xff] }
0x23a5   :  { %v6087_v7 = vpop.f32.mrb[80].mxu0 }
0x23a6   :  { %v3866_v57 = vmul.f32 %v6813_v17, %v6087_v7  ;;  %v3813_v55 = vpop.f32.mrb[81].mxu0 }
0x23a7   :  { %v3864_v13 = vmul.f32 %v6815_v19, %v3813_v55  ;;  %v6088_v50 = vpop.f32.mrb[82].mxu0 }
0x23a8   :  { %v3878_v9 = vadd.f32 %v3866_v57, %v3862_v15  ;;  %v3867_v3 = vmul.f32 %v6817_v40, %v6088_v50  ;;  %v3816_v31 = vpop.f32.mrb[83].mxu0  ;;  %v6824_v57 = vld [vmem:[%s9264_s10 + $0x70] sm:$0xff] }
0x23a9   :  { %v3876_v32 = vadd.f32 %v3864_v13, %v3860_v18  ;;  %v3865_v51 = vmul.f32 %v6819_v63, %v3816_v31  ;;  %v6825_v18 = vld [vmem:[%s9264_s10 + $0x60] sm:$0xff] }
0x23aa   :  { %v3879_v48 = vadd.f32 %v3867_v3, %v3863_v30  ;;  %v6827_v3 = vld [vmem:[%s9264_s10 + $0x68] sm:$0xff] }
0x23ab   :  { %v3877_v33 = vadd.f32 %v3865_v51, %v3861_v0  ;;  %v3898_v51 = vrot.slane %v8413_v21, %v7435_v42 }
0x23ad   :  { %v6091_v39 = vpop.f32.mrb[84].mxu0 }
0x23ae   :  { %v3870_v53 = vmul.f32 %v6820_v49, %v6091_v39  ;;  %v3829_v8 = vpop.f32.mrb[85].mxu0 }
0x23af   :  { %v3868_v4 = vmul.f32 %v6821_v1, %v3829_v8  ;;  %v6092_v27 = vpop.f32.mrb[86].mxu0 }
0x23b0   :  { %v3882_v47 = vadd.f32 %v3878_v9, %v3870_v53  ;;  %v3871_v12 = vmul.f32 %v6822_v22, %v6092_v27  ;;  %v3832_v46 = vpop.f32.mrb[87].mxu0 }
0x23b1   :  { %v3880_v23 = vadd.f32 %v3876_v32, %v3868_v4  ;;  %v3869_v7 = vmul.f32 %v6823_v20, %v3832_v46 }
0x23b2   :  { %v3883_v62 = vadd.f32 %v3879_v48, %v3871_v12 }
0x23b3   :  { %v3881_v15 = vadd.f32 %v3877_v33, %v3869_v7 }
0x23b5   :  { %v6095_v17 = vpop.f32.mrb[88].mxu0 }
0x23b6   :  { %v3874_v55 = vmul.f32 %v6824_v57, %v6095_v17  ;;  %v3845_v25 = vpop.f32.mrb[89].mxu0 }
0x23b7   :  { %v3872_v19 = vmul.f32 %v6825_v18, %v3845_v25  ;;  %v6096_v13 = vpop.f32.mrb[90].mxu0 }
0x23b8   :  { %v3886_v50 = vadd.f32 %v3882_v47, %v3874_v55  ;;  %v3875_v30 = vmul.f32 %v6826_v35, %v6096_v13  ;;  %v3848_v9 = vpop.f32.mrb[91].mxu0 }
0x23b9   :  { %v3884_v40 = vadd.f32 %v3880_v23, %v3872_v19  ;;  %v3873_v31 = vmul.f32 %v6827_v3, %v3848_v9 }
0x23ba   :  { %v3887_v11 = vadd.f32 %v3883_v62, %v3875_v30 }
0x23bb   :  { %v3885_v0 = vadd.f32 %v3881_v15, %v3873_v31 }
0x23bc   :  { %v3889_v32 = vpack.c.bf16 %v3887_v11, %v3886_v50 }
0x23bd   :  { %v3888_v63 = vpack.c.bf16 %v3885_v0, %v3884_v40  ;;  %v6270_v0 = vld [vmem:[%s9260_s6 + $0x38] sm:$0xff]  }
0x23bf   :  { %6101 = vmatprep.mubr.msk.bf16.mxu1 %vm195_vm1, %v3888_v63 }
0x23c0   :  { %6102 = vmatmul.mubr.msk.bf16.vlgmr.msra.gmra.mrb[92].mxu1 %vm195_vm1, %v3889_v32 }
0x2493   :  { %v6103_v48 = vpop.f32.mrb[92].mxu1 }
0x2494   :  { %v3951_v33 = vpop.f32.mrb[93].mxu1  ;;  %v3960_v39 = vadd.f32 %v6103_v48, %v3898_v51 }
0x2495   :  { %v3952_v49 = vadd.f32 %v3951_v33, %v3898_v51  ;;  %v6104_v53 = vpop.f32.mrb[94].mxu1 }
0x2496   :  { %v3954_v8 = vpop.f32.mrb[95].mxu1  ;;  %v8742_v27 = vadd.f32 %v3960_v39, %v8380_v2  ;;  %v3963_v47 = vadd.f32 %v6104_v53, %v3898_v51 }
0x2497   :  { %v8739_v1 = vadd.f32 %v3952_v49, %v8377_v38  ;;  %v3955_v4 = vadd.f32 %v3954_v8, %v3898_v51 }
0x2498   :  { %v8752_v23 = vadd.f32 %v3963_v47, %v8388_v36  ;;  %v3976_v38 = vsel %vm195_vm1, %v8742_v27, 0.0 }
0x2499   :  { %v8745_v22 = vadd.f32 %v3955_v4, %v8383_v60  ;;  %v3970_v12 = vsel %vm195_vm1, %v8739_v1, 0.0  ;;  %v6269_v60 = vld [vmem:[%s9260_s6 + $0x30] sm:$0xff]  }
0x249a   :  { %3971 = vadd.xlane.f32.xlu0 %v3970_v12  ;;  %v3979_v2 = vsel %vm195_vm1, %v8752_v23, 0.0  ;;  %6105 = vmatprep.subr.bf16.mxu0 %v6269_v60 }
0x249b   :  { %v3973_v46 = vsel %vm195_vm1, %v8745_v22, 0.0  ;;  %6106 = vmatpush3.bf16.msra.mxu0 %v6269_v60 }
0x249c   :  { %3974 = vadd.xlane.f32.xlu1 %v3973_v46  ;;  %6107 = vmatprep.subr.bf16.mxu0 %v6270_v0 }
0x249e   :  { %3977 = vadd.xlane.f32.xlu0 %v3976_v38 }
0x249f   :  { %6108 = vmatpush3.bf16.msra.mxu0 %v6270_v0  ;;  %v6276_v0 = vld [vmem:[%s9261_s7 + $0xb8] sm:$0xff]  }
0x24a2   :  { %3980 = vadd.xlane.f32.xlu0 %v3979_v2  ;;  %v4025_v2 = vrot.slane %v8413_v21, %v7477_v5 }
0x2527   :  { %v3972_v20 = vpop.xlane.xlu0 %3971 }
0x2528   :  { %v3982_v7 = vmul.f32 0.03125, %v3972_v20 }
0x2529   :  { %v3975_v62 = vpop.xlane.xlu1 %3974 }
0x252a   :  { %v3986_v36 = vsub.f32 %v8739_v1, %v3982_v7  ;;  %v3983_v15 = vmul.f32 0.03125, %v3975_v62  ;;  %v4033_v7 = vrot.slane %v8413_v21, %v7487_v43  ;;  %v6271_v21 = vld [vmem:[%s9261_s7 + $0x90] sm:$0xff]  }
0x252b   :  { %v3978_v17 = vpop.xlane.xlu0 %3977  ;;  %6113 = vmatprep.subr.bf16.mxu1 %v6271_v21 }
0x252c   :  { %v3987_v57 = vsub.f32 %v8745_v22, %v3983_v15  ;;  %v3984_v55 = vmul.f32 0.03125, %v3978_v17  ;;  %v3990_v25 = vmul.f32 %v3986_v36, %v3986_v36  ;;  %6114 = vmatpush3.bf16.msra.mxu1 %v6271_v21 }
0x252e   :  { %v3988_v18 = vsub.f32 %v8742_v27, %v3984_v55  ;;  %v3994_v19 = vsel %vm195_vm1, %v3990_v25, 0.0  ;;  %v3991_v13 = vmul.f32 %v3987_v57, %v3987_v57 }
0x252f   :  { %3995 = vadd.xlane.f32.xlu0 %v3994_v19  ;;  %v3981_v50 = vpop.xlane.xlu0 %3980 }
0x2530   :  { %v3985_v35 = vmul.f32 0.03125, %v3981_v50  ;;  %v3997_v9 = vsel %vm195_vm1, %v3991_v13, 0.0  ;;  %v3992_v40 = vmul.f32 %v3988_v18, %v3988_v18 }
0x2532   :  { %v3989_v30 = vsub.f32 %v8752_v23, %v3985_v35  ;;  %v4000_v31 = vsel %vm195_vm1, %v3992_v40, 0.0 }
0x2533   :  { %3998 = vadd.xlane.f32.xlu0 %v3997_v9 }
0x2534   :  { %v3993_v3 = vmul.f32 %v3989_v30, %v3989_v30 }
0x2536   :  { %v4003_v11 = vsel %vm195_vm1, %v3993_v3, 0.0 }
0x2537   :  { %4001 = vadd.xlane.f32.xlu0 %v4000_v31  ;;  %4004 = vadd.xlane.f32.xlu1 %v4003_v11  ;;  %v6275_v11 = vld [vmem:[%s9261_s7 + $0xb0] sm:$0xff]  }
0x25bc   :  { %v3996_v32 = vpop.xlane.xlu0 %3995 }
0x25bd   :  { %v4006_v63 = vmul.f32 0.03125, %v3996_v32  ;;  %v5504_v32 = vld [vmem:[%s9263_s9 + $0x3] ss:$0 sm:$0xff] }
0x25bf   :  { %v4010_v51 = vadd.f32 1e-05, %v4006_v63 }
0x25c0   :  { %v3999_v48 = vpop.xlane.xlu0 %3998 }
0x25c1   :  { %6625 = vrsqrt.f32 %v4010_v51  ;;  %v4007_v33 = vmul.f32 0.03125, %v3999_v48 }
0x25c3   :  { %v4011_v39 = vadd.f32 1e-05, %v4007_v33 }
0x25c4   :  { %v4005_v49 = vpop.xlane.xlu1 %4004  ;;  %v4002_v53 = vpop.xlane.xlu0 %4001 }
0x25c5   :  { %6627 = vrsqrt.f32 %v4011_v39  ;;  %v4009_v8 = vmul.f32 0.03125, %v4005_v49  ;;  %v4008_v4 = vmul.f32 0.03125, %v4002_v53 }
0x25c7   :  { %v4013_v47 = vadd.f32 1e-05, %v4009_v8  ;;  %v4012_v12 = vadd.f32 1e-05, %v4008_v4 }
0x25c9   :  { %6629 = vrsqrt.f32 %v4013_v47 }
0x25ca   :  { %6631 = vrsqrt.f32 %v4012_v12 }
0x25cb   :  { %v6626_v46 = vpop.eup %6625 }
0x25cc   :  { %v4018_v38 = vmul.f32 %v6626_v46, %v3986_v36 }
0x25ce   :  { %v4026_v62 = vmul.f32 %v4025_v2, %v4018_v38 }
0x25cf   :  { %v6628_v60 = vpop.eup %6627 }
0x25d0   :  { %v4019_v20 = vmul.f32 %v6628_v60, %v3987_v57  ;;  %v4034_v19 = vadd.f32 %v4033_v7, %v4026_v62  ;;  %v6272_v57 = vld [vmem:[%s9261_s7 + $0x98] sm:$0xff]  }
0x25d1   :  { %6115 = vmatprep.subr.bf16.mxu1 %v6272_v57 }
0x25d2   :  { %v4027_v15 = vmul.f32 %v4025_v2, %v4019_v20  ;;  %6116 = vmatpush3.bf16.msra.mxu1 %v6272_v57 }
0x25d3   :  { %v6630_v17 = vpop.eup %6629 }
0x25d4   :  { %v6632_v55 = vpop.eup %6631  ;;  %v4021_v25 = vmul.f32 %v6630_v17, %v3989_v30  ;;  %v4035_v13 = vadd.f32 %v4033_v7, %v4027_v15  ;;  %v6274_v30 = vld [vmem:[%s9261_s7 + $0xa8] sm:$0xff]  }
0x25d5   :  { %v4020_v50 = vmul.f32 %v6632_v55, %v3988_v18  ;;  %v6273_v18 = vld [vmem:[%s9261_s7 + $0xa0] sm:$0xff]  }
0x25d6   :  { %v4029_v35 = vmul.f32 %v4025_v2, %v4021_v25  ;;  %v4038_v9 = vpack.c.bf16 %v4035_v13, %v4034_v19  ;;  %6117 = vmatprep.subr.bf16.mxu1 %v6273_v18 }
0x25d7   :  { %v4028_v40 = vmul.f32 %v4025_v2, %v4020_v50  ;;  %6118 = vmatpush3.bf16.msra.mxu1 %v6273_v18 }
0x25d8   :  { %v4037_v36 = vadd.f32 %v4033_v7, %v4029_v35  ;;  %6109 = vmatprep.mubr.msk.bf16.mxu0 %vm195_vm1, %v4038_v9  ;;  %6119 = vmatprep.subr.bf16.mxu1 %v6274_v30 }
0x25d9   :  { %v4036_v3 = vadd.f32 %v4033_v7, %v4028_v40 }
0x25db   :  { %v4039_v31 = vpack.c.bf16 %v4037_v36, %v4036_v3  ;;  %6120 = vmatpush3.bf16.msra.mxu1 %v6274_v30 }
0x25dc   :  { %6121 = vmatprep.subr.bf16.mxu1 %v6275_v11 }
0x25dd   :  { %6110 = vmatmul.mubr.msk.bf16.vlgmr.msra.gmra.mrb[92].mxu0 %vm195_vm1, %v4039_v31  ;;  %v6828_v31 = vld [vmem:[%s9262_s8 + $0x18] sm:$0x3f] }
0x25de   :  { %v4156_v21 = vrot.slane %v6828_v31, %v7514_v37 }
0x25df   :  { %6122 = vmatpush3.bf16.msra.mxu1 %v6275_v11 }
0x25e0   :  { %6123 = vmatprep.subr.bf16.mxu1 %v6276_v0 }
0x25e3   :  { %6124 = vmatpush3.bf16.msra.mxu1 %v6276_v0 }
0x26b0   :  { %v6111_v63 = vpop.f32.mrb[92].mxu0 }
0x26b1   :  { %v4112_v51 = vadd.f32 %v6111_v63, %v5504_v32  ;;  %v4103_v48 = vpop.f32.mrb[93].mxu0 }
0x26b2   :  { %v4104_v33 = vadd.f32 %v5504_v32, %v4103_v48  ;;  %v6112_v39 = vpop.f32.mrb[94].mxu0 }
0x26b3   :  { %v4124_v49 = vmul.f32 0.70710677, %v4112_v51  ;;  %v4115_v53 = vadd.f32 %v6112_v39, %v5504_v32  ;;  %v4106_v8 = vpop.f32.mrb[95].mxu0  ;;  %v4120_v15 = vmul.f32 0.5, %v4112_v51 }
0x26b4   :  { %v4122_v4 = vmul.f32 0.70710677, %v4104_v33  ;;  %v4107_v47 = vadd.f32 %v5504_v32, %v4106_v8  ;;  %v4118_v25 = vmul.f32 0.5, %v4104_v33 }
0x26b5   :  { %6633 = verf.f32 %v4124_v49  ;;  %v4125_v12 = vmul.f32 0.70710677, %v4115_v53  ;;  %v4121_v17 = vmul.f32 0.5, %v4115_v53 }
0x26b6   :  { %6635 = verf.f32 %v4122_v4  ;;  %v4123_v46 = vmul.f32 0.70710677, %v4107_v47  ;;  %v4119_v19 = vmul.f32 0.5, %v4107_v47 }
0x26b7   :  { %6637 = verf.f32 %v4125_v12 }
0x26b8   :  { %6639 = verf.f32 %v4123_v46 }
0x26bf   :  { %v6634_v38 = vpop.eup %6633 }
0x26c0   :  { %v6636_v2 = vpop.eup %6635  ;;  %v4132_v60 = vadd.f32 1.0, %v6634_v38 }
0x26c1   :  { %v6638_v20 = vpop.eup %6637  ;;  %v4130_v7 = vadd.f32 1.0, %v6636_v2 }
0x26c2   :  { %v6640_v62 = vpop.eup %6639  ;;  %v4133_v55 = vadd.f32 1.0, %v6638_v20  ;;  %v4136_v50 = vmul.f32 %v4132_v60, %v4120_v15 }
0x26c3   :  { %v4131_v13 = vadd.f32 1.0, %v6640_v62  ;;  %v4134_v9 = vmul.f32 %v4130_v7, %v4118_v25 }
0x26c4   :  { %v4137_v35 = vmul.f32 %v4133_v55, %v4121_v17 }
0x26c5   :  { %v4135_v40 = vmul.f32 %v4131_v13, %v4119_v19 }
0x26c6   :  { %v4139_v36 = vpack.c.bf16 %v4137_v35, %v4136_v50 }
0x26c7   :  { %v4138_v3 = vpack.c.bf16 %v4135_v40, %v4134_v9  ;;  %v6277_v9 = vld [vmem:[%s9257_s3 + $0x40] sm:$0xff]   ;;  %v6278_v40 = vld [vmem:[%s9257_s3 + $0x48] sm:$0xff]  }
0x26c8   :  { %6129 = vmatprep.subr.bf16.mxu0 %v6277_v9 }
0x26c9   :  { %6125 = vmatprep.mubr.msk.bf16.mxu1 %vm1144_vm2, %v4138_v3  ;;  %6130 = vmatpush3.bf16.msra.mxu0 %v6277_v9 }
0x26ca   :  { %6126 = vmatmul.mubr.msk.bf16.vlgmr.msra.gmra.mrb[96].mxu1 %vm1144_vm2, %v4139_v36  ;;  %6131 = vmatprep.subr.bf16.mxu0 %v6278_v40 }
0x26cd   :  { %6132 = vmatpush3.bf16.msra.mxu0 %v6278_v40 }
0x279d   :  { %v6127_v57 = vpop.f32.mrb[96].mxu1 }
0x279e   :  { %v4233_v18 = vpop.f32.mrb[97].mxu1  ;;  %v4242_v30 = vadd.f32 %v6127_v57, %v4156_v21 }
0x279f   :  { %v4234_v11 = vadd.f32 %v4233_v18, %v4156_v21  ;;  %v6128_v0 = vpop.f32.mrb[98].mxu1 }
0x27a0   :  { %v4236_v32 = vpop.f32.mrb[99].mxu1  ;;  %v4245_v51 = vadd.f32 %v6128_v0, %v4156_v21  ;;  %v8809_v33 = vadd.f32 %v4242_v30, %v8742_v27 }
0x27a1   :  { %v8806_v63 = vadd.f32 %v4234_v11, %v8739_v1  ;;  %v4237_v48 = vadd.f32 %v4236_v32, %v4156_v21 }
0x27a2   :  { %v8817_v53 = vadd.f32 %v4245_v51, %v8752_v23  ;;  %v4264_v1 = vsel %vm195_vm1, %v8809_v33, 0.0 }
0x27a3   :  { %v8812_v39 = vadd.f32 %v4237_v48, %v8745_v22  ;;  %v4258_v49 = vsel %vm195_vm1, %v8806_v63, 0.0 }
0x27a4   :  { %4259 = vadd.xlane.f32.xlu0 %v4258_v49  ;;  %v4267_v27 = vsel %vm195_vm1, %v8817_v53, 0.0  ;;  %v8842_v49 = vld [vmem:[%s9262_s8 + $0x20] sm:$0x3f] }
0x27a5   :  { %v4261_v8 = vsel %vm195_vm1, %v8812_v39, 0.0 }
0x27a6   :  { %4262 = vadd.xlane.f32.xlu1 %v4261_v8  ;;  %v4313_v8 = vrot.slane %v8842_v49, %v7007_v54 }
0x27a8   :  { %4265 = vadd.xlane.f32.xlu0 %v4264_v1 }
0x27aa   :  { %4268 = vadd.xlane.f32.xlu1 %v4267_v27 }
0x2831   :  { %v4260_v22 = vpop.xlane.xlu0 %4259 }
0x2832   :  { %v4270_v4 = vmul.f32 0.03125, %v4260_v22 }
0x2833   :  { %v4263_v47 = vpop.xlane.xlu1 %4262 }
0x2834   :  { %v4274_v12 = vsub.f32 %v8806_v63, %v4270_v4  ;;  %v4271_v46 = vmul.f32 0.03125, %v4263_v47 }
0x2835   :  { %v4266_v23 = vpop.xlane.xlu0 %4265 }
0x2836   :  { %v4275_v38 = vsub.f32 %v8812_v39, %v4271_v46  ;;  %v4272_v2 = vmul.f32 0.03125, %v4266_v23  ;;  %v4278_v60 = vmul.f32 %v4274_v12, %v4274_v12  ;;  %v4321_v46 = vrot.slane %v8842_v49, %v7017_v59  ;;  %v5536_v59 = vld [vmem:[%s9258_s4 + $0x4] ss:$0 sm:$0xff] }
0x2837   :  { %v4269_v20 = vpop.xlane.xlu1 %4268 }
0x2838   :  { %v4276_v7 = vsub.f32 %v8809_v33, %v4272_v2  ;;  %v4273_v62 = vmul.f32 0.03125, %v4269_v20  ;;  %v4282_v15 = vsel %vm195_vm1, %v4278_v60, 0.0  ;;  %v4279_v17 = vmul.f32 %v4275_v38, %v4275_v38 }
0x2839   :  { %4283 = vadd.xlane.f32.xlu0 %v4282_v15 }
0x283a   :  { %v4277_v55 = vsub.f32 %v8817_v53, %v4273_v62  ;;  %v4285_v25 = vsel %vm195_vm1, %v4279_v17, 0.0  ;;  %v4280_v19 = vmul.f32 %v4276_v7, %v4276_v7 }
0x283b   :  { %4286 = vadd.xlane.f32.xlu1 %v4285_v25 }
0x283c   :  { %v4288_v13 = vsel %vm195_vm1, %v4280_v19, 0.0  ;;  %v4281_v50 = vmul.f32 %v4277_v55, %v4277_v55 }
0x283d   :  { %4289 = vadd.xlane.f32.xlu0 %v4288_v13 }
0x283e   :  { %v4291_v35 = vsel %vm195_vm1, %v4281_v50, 0.0 }
0x283f   :  { %4292 = vadd.xlane.f32.xlu1 %v4291_v35 }
0x28c6   :  { %v4284_v36 = vpop.xlane.xlu0 %4283 }
0x28c7   :  { %v4294_v3 = vmul.f32 0.03125, %v4284_v36 }
0x28c8   :  { %v4287_v31 = vpop.xlane.xlu1 %4286 }
0x28c9   :  { %v4298_v21 = vadd.f32 1e-05, %v4294_v3  ;;  %v4295_v57 = vmul.f32 0.03125, %v4287_v31 }
0x28ca   :  { %v4290_v18 = vpop.xlane.xlu0 %4289 }
0x28cb   :  { %6641 = vrsqrt.f32 %v4298_v21  ;;  %v4299_v30 = vadd.f32 1e-05, %v4295_v57  ;;  %v4296_v11 = vmul.f32 0.03125, %v4290_v18 }
0x28cc   :  { %v4293_v0 = vpop.xlane.xlu1 %4292 }
0x28cd   :  { %6643 = vrsqrt.f32 %v4299_v30  ;;  %v4300_v32 = vadd.f32 1e-05, %v4296_v11  ;;  %v4297_v51 = vmul.f32 0.03125, %v4293_v0 }
0x28cf   :  { %6645 = vrsqrt.f32 %v4300_v32  ;;  %v4301_v48 = vadd.f32 1e-05, %v4297_v51 }
0x28d1   :  { %6647 = vrsqrt.f32 %v4301_v48 }
0x28d5   :  { %v6642_v1 = vpop.eup %6641 }
0x28d6   :  { %v4306_v27 = vmul.f32 %v6642_v1, %v4274_v12 }
0x28d7   :  { %v6644_v22 = vpop.eup %6643 }
0x28d8   :  { %v4307_v4 = vmul.f32 %v6644_v22, %v4275_v38  ;;  %v4314_v47 = vmul.f32 %v4313_v8, %v4306_v27 }
0x28d9   :  { %v6646_v23 = vpop.eup %6645 }
0x28da   :  { %v4308_v2 = vmul.f32 %v6646_v23, %v4276_v7  ;;  %v4315_v60 = vmul.f32 %v4313_v8, %v4307_v4  ;;  %v4322_v17 = vadd.f32 %v4321_v46, %v4314_v47 }
0x28db   :  { %v6648_v20 = vpop.eup %6647 }
0x28dc   :  { %v4316_v62 = vmul.f32 %v4313_v8, %v4308_v2  ;;  %v4309_v15 = vmul.f32 %v6648_v20, %v4277_v55  ;;  %v4323_v25 = vadd.f32 %v4321_v46, %v4315_v60  ;;  %v6830_v20 = vld [vmem:[%s9265_s11 + $0x18] sm:$0xff] }
0x28de   :  { %v4317_v19 = vmul.f32 %v4313_v8, %v4309_v15  ;;  %v4326_v13 = vpack.c.bf16 %v4323_v25, %v4322_v17  ;;  %v4324_v54 = vadd.f32 %v4321_v46, %v4316_v62  ;;  %v6831_v15 = vld [vmem:[%s9265_s11 + $0x8] sm:$0xff] }
0x28e0   :  { %6133 = vmatprep.mubr.msk.bf16.mxu0 %vm195_vm1, %v4326_v13  ;;  %v4325_v12 = vadd.f32 %v4321_v46, %v4317_v19  ;;  %v6832_v19 = vld [vmem:[%s9265_s11 + $0x10] sm:$0xff] }
0x28e2   :  { %v4327_v50 = vpack.c.bf16 %v4325_v12, %v4324_v54 }
0x28e4   :  { %6134 = vmatmul.mubr.msk.bf16.vlgmr.msra.gmra.mrb[96].mxu0 %vm195_vm1, %v4327_v50 }
0x29b7   :  { %v6135_v38 = vpop.f32.mrb[96].mxu0 }
0x29b8   :  { %v4400_v7 = vadd.f32 %v6135_v38, %v5536_v59  ;;  %v4391_v35 = vpop.f32.mrb[97].mxu0  ;;  %v6833_v38 = vld [vmem:[%s9265_s11 + $0x20] sm:$0xff] }
0x29b9   :  { %v4392_v9 = vadd.f32 %v5536_v59, %v4391_v35  ;;  %v6136_v55 = vpop.f32.mrb[98].mxu0 }
0x29ba   :  { %v4408_v40 = vmul.f32 %v4400_v7, %v7059_v24  ;;  %v4403_v36 = vadd.f32 %v6136_v55, %v5536_v59  ;;  %v4394_v3 = vpop.f32.mrb[99].mxu0  ;;  %v4412_v31 = vmul.f32 %v4400_v7, %v7067_v26  ;;  %v4416_v21 = vmul.f32 %v4400_v7, %v7124_v41 }
0x29bb   :  { %v4395_v57 = vadd.f32 %v5536_v59, %v4394_v3  ;;  %v4406_v18 = vmul.f32 %v4392_v9, %v7073_v28  ;;  %v4410_v30 = vmul.f32 %v4392_v9, %v7076_v29  ;;  %v4414_v11 = vmul.f32 %v4392_v9, %v9300_v16  ;;  %v6835_v3 = vld [vmem:[%s9265_s11 + $0x30] sm:$0xff] }
0x29bc   :  { %v4409_v0 = vmul.f32 %v4403_v36, %v9301_v56  ;;  %v8860_v32 = vpack.c.bf16 %v4403_v36, %v4400_v7  ;;  %v4413_v51 = vmul.f32 %v4403_v36, %v9302_v10  ;;  %v4417_v24 = vmul.f32 %v4403_v36, %v9303_v45 }
0x29bd   :  { %v8864_v48 = vpack.c.bf16 %v4395_v57, %v4392_v9  ;;  %v4407_v26 = vmul.f32 %v4395_v57, %v9304_v58  ;;  %v4411_v41 = vmul.f32 %v4395_v57, %v9305_v52  ;;  %v4415_v28 = vmul.f32 %v4395_v57, %v9306_v6 }
0x29be   :  { %4436 = vrot.lane.b32.xlu1 %v8860_v32, %s6886_s13  ;;  %v4423_v29 = vpack.c.bf16 %v4409_v0, %v4408_v40  ;;  %v4425_v16 = vpack.c.bf16 %v4413_v51, %v4412_v31  ;;  %v4427_v56 = vpack.c.bf16 %v4417_v24, %v4416_v21  ;;  %v4418_v8 = vmul.f32 %v4392_v9, %v9307_v14  ;;  %v6834_v40 = vld [vmem:[%s9265_s11 + $0x28] sm:$0xff]  ;;  %v6836_v21 = vld [vmem:[%s9265_s11 + $0x38] sm:$0xff]  ;;  %v6837_v51 = vld [vmem:[%s9265_s11 + $0x40] sm:$0xff] }
0x29bf   :  { %4434 = vrot.lane.b32.xlu0 %v8864_v48, %s6886_s13  ;;  %v4422_v10 = vpack.c.bf16 %v4407_v26, %v4406_v18  ;;  %v4424_v45 = vpack.c.bf16 %v4411_v41, %v4410_v30  ;;  %v4426_v1 = vpack.c.bf16 %v4415_v28, %v4414_v11  ;;  %v4419_v58 = vmul.f32 %v4395_v57, %v9308_v34 }
0x29c0   :  { %v4420_v52 = vmul.f32 %v4400_v7, %v9309_v44  ;;  %v4421_v6 = vmul.f32 %v4403_v36, %v9310_v61  ;;  %v6829_v61 = vld [vmem:[%s9265_s11] sm:$0xff] }
0x29c1   :  { %6141 = vmatprep.mubr.msk.bf16.mxu0 %vm195_vm1, %v4422_v10  ;;  %v4428_v27 = vpack.c.bf16 %v4419_v58, %v4418_v8  ;;  %v6839_v8 = vld [vmem:[%s9265_s11 + $0x50] sm:$0xff] }
0x29c2   :  { %v4429_v22 = vpack.c.bf16 %v4421_v6, %v4420_v52 }
0x2a30   :  { %v4437_v14 = vpop.permute.xlu1 %4436 }
0x2a31   :  { %v4435_v4 = vpop.permute.xlu0 %4434  ;;  %v4466_v46 = vsel %vm195_vm1, %v4437_v14, 0 }
0x2a32   :  { %v4463_v47 = vsel %vm195_vm1, %v4435_v4, 0  ;;  %6217 = vmatprep.subr.msk.bf16.mxu0 %vm195_vm1, %v4435_v4 }
0x2a33   :  { %6138 = vmatpush3.bf16.xpose.msra.mxu0 %v4463_v47 }
0x2a34   :  { %6218 = vmatprep.subr.msk.bf16.mxu0 %vm195_vm1, %v4437_v14 }
0x2a3b   :  { %6140 = vmatpush3.bf16.xpose.msra.mxu0 %v4466_v46 }
0x2a42   :  { %6142 = vmatmul.mubr.msk.bf16.vlgmr.msra.gmra.mrb[100].mxu0 %vm195_vm1, %v4423_v29 }
0x2a43   :  { %6145 = vmatprep.mubr.msk.bf16.mxu0 %vm195_vm1, %v4424_v45  ;;  %v6840_v45 = vld [vmem:[%s9265_s11 + $0x58] sm:$0xff] }
0x2a4a   :  { %6146 = vmatmul.mubr.msk.bf16.gmra.mrb[104].mxu0 %vm195_vm1, %v4425_v16  ;;  %v6838_v16 = vld [vmem:[%s9265_s11 + $0x48] sm:$0xff] }
0x2a4b   :  { %6149 = vmatprep.mubr.msk.bf16.mxu0 %vm195_vm1, %v4426_v1 }
0x2a52   :  { %6150 = vmatmul.mubr.msk.bf16.gmra.mrb[108].mxu0 %vm195_vm1, %v4427_v56 }
0x2a53   :  { %6153 = vmatprep.mubr.msk.bf16.mxu0 %vm195_vm1, %v4428_v27 }
0x2a5a   :  { %6154 = vmatmul.mubr.msk.bf16.gmra.mrb[112].mxu0 %vm195_vm1, %v4429_v22  ;;  %v6841_v22 = vld [vmem:[%s9265_s11 + $0x60] sm:$0xff] }
0x2b15   :  { %v6143_v34 = vpop.f32.mrb[100].mxu0 }
0x2b16   :  { %v4502_v44 = vpop.f32.mrb[101].mxu0  ;;  %v8909_v13 = vadd.f32 %v6832_v19, %v6143_v34 }
0x2b17   :  { %v8892_v23 = vadd.f32 %v6829_v61, %v4502_v44  ;;  %v6144_v2 = vpop.f32.mrb[102].mxu0  ;;  %v6842_v44 = vld [vmem:[%s9265_s11 + $0x68] sm:$0xff] }
0x2b18   :  { %v4505_v60 = vpop.f32.mrb[103].mxu0  ;;  %v8897_v62 = vadd.f32 %v6830_v20, %v6144_v2  ;;  %v4571_v9 = vsel %vm195_vm1, %v8909_v13, -inf  ;;  %v6843_v2 = vld [vmem:[%s9265_s11 + $0x70] sm:$0xff]  ;;  %v6844_v20 = vld [vmem:[%s9265_s11 + $0x78] sm:$0xff] }
0x2b19   :  { %v8902_v17 = vadd.f32 %v6831_v15, %v4505_v60  ;;  %v4565_v25 = vsel %vm195_vm1, %v8892_v23, -inf }
0x2b1a   :  { %4566 = vmax.xlane.f32.xlu1 %v4565_v25  ;;  %v4574_v50 = vsel %vm195_vm1, %v8897_v62, -inf }
0x2b1b   :  { %v4568_v54 = vsel %vm195_vm1, %v8902_v17, -inf }
0x2b1c   :  { %4569 = vmax.xlane.f32.xlu0 %v4568_v54 }
0x2b1d   :  { %v6147_v12 = vpop.f32.mrb[104].mxu0 }
0x2b1e   :  { %v4518_v59 = vpop.f32.mrb[105].mxu0  ;;  %4575 = vmax.xlane.f32.xlu1 %v4574_v50  ;;  %v8930_v31 = vadd.f32 %v6835_v3, %v6147_v12 }
0x2b1f   :  { %v8918_v7 = vadd.f32 %v6833_v38, %v4518_v59  ;;  %v6148_v35 = vpop.f32.mrb[106].mxu0 }
0x2b20   :  { %v4521_v55 = vpop.f32.mrb[107].mxu0  ;;  %4572 = vmax.xlane.f32.xlu0 %v4571_v9  ;;  %v8935_v57 = vadd.f32 %v6836_v21, %v6148_v35  ;;  %v4583_v41 = vsel %vm195_vm1, %v8930_v31, -inf }
0x2b21   :  { %v8925_v36 = vadd.f32 %v6834_v40, %v4521_v55  ;;  %v4577_v18 = vsel %vm195_vm1, %v8918_v7, -inf }
0x2b22   :  { %v4586_v28 = vsel %vm195_vm1, %v8935_v57, -inf }
0x2b23   :  { %v4580_v30 = vsel %vm195_vm1, %v8925_v36, -inf }
0x2b24   :  { %4578 = vmax.xlane.f32.xlu0 %v4577_v18  ;;  %4581 = vmax.xlane.f32.xlu1 %v4580_v30 }
0x2b25   :  { %v6151_v11 = vpop.f32.mrb[108].mxu0 }
0x2b26   :  { %v4534_v0 = vpop.f32.mrb[109].mxu0  ;;  %v8958_v10 = vadd.f32 %v6839_v8, %v6151_v11 }
0x2b27   :  { %v8944_v24 = vadd.f32 %v6837_v51, %v4534_v0  ;;  %v6152_v26 = vpop.f32.mrb[110].mxu0 }
0x2b28   :  { %v4537_v29 = vpop.f32.mrb[111].mxu0  ;;  %4584 = vmax.xlane.f32.xlu0 %v4583_v41  ;;  %4587 = vmax.xlane.f32.xlu1 %v4586_v28  ;;  %v8963_v1 = vadd.f32 %v6840_v45, %v6152_v26  ;;  %v4595_v14 = vsel %vm195_vm1, %v8958_v10, -inf }
0x2b29   :  { %v8953_v56 = vadd.f32 %v6838_v16, %v4537_v29  ;;  %v4589_v58 = vsel %vm195_vm1, %v8944_v24, -inf }
0x2b2a   :  { %v4598_v46 = vsel %vm195_vm1, %v8963_v1, -inf }
0x2b2b   :  { %v4592_v52 = vsel %vm195_vm1, %v8953_v56, -inf }
0x2b2c   :  { %4590 = vmax.xlane.f32.xlu0 %v4589_v58  ;;  %4593 = vmax.xlane.f32.xlu1 %v4592_v52 }
0x2b2d   :  { %v6155_v6 = vpop.f32.mrb[112].mxu0 }
0x2b2e   :  { %v4550_v27 = vpop.f32.mrb[113].mxu0  ;;  %v8986_v60 = vadd.f32 %v6843_v2, %v6155_v6 }
0x2b2f   :  { %v8972_v4 = vadd.f32 %v6841_v22, %v4550_v27  ;;  %v6156_v47 = vpop.f32.mrb[114].mxu0 }
0x2b30   :  { %v4553_v34 = vpop.f32.mrb[115].mxu0  ;;  %4596 = vmax.xlane.f32.xlu0 %v4595_v14  ;;  %4599 = vmax.xlane.f32.xlu1 %v4598_v46  ;;  %v8991_v15 = vadd.f32 %v6844_v20, %v6156_v47  ;;  %v4607_v54 = vsel %vm195_vm1, %v8986_v60, -inf }
0x2b31   :  { %v8981_v61 = vadd.f32 %v6842_v44, %v4553_v34  ;;  %v4601_v25 = vsel %vm195_vm1, %v8972_v4, -inf }
0x2b32   :  { %v4610_v12 = vsel %vm195_vm1, %v8991_v15, -inf }
0x2b33   :  { %v4604_v19 = vsel %vm195_vm1, %v8981_v61, -inf }
0x2b34   :  { %4602 = vmax.xlane.f32.xlu0 %v4601_v25  ;;  %4605 = vmax.xlane.f32.xlu1 %v4604_v19 }
0x2b38   :  { %4608 = vmax.xlane.f32.xlu0 %v4607_v54  ;;  %4611 = vmax.xlane.f32.xlu1 %v4610_v12 }
0x2ba7   :  { %v4567_v50 = vpop.xlane.xlu1 %4566 }
0x2ba8   :  { %v4613_v9 = vsub.f32 %v8892_v23, %v4567_v50 }
0x2ba9   :  { %v4570_v59 = vpop.xlane.xlu0 %4569 }
0x2baa   :  { %v4614_v38 = vsub.f32 %v8902_v17, %v4570_v59  ;;  %v4629_v30 = vmul.f32 1.442695, %v4613_v9 }
0x2bab   :  { %v4576_v35 = vpop.xlane.xlu1 %4575 }
0x2bac   :  { %v4616_v55 = vsub.f32 %v8897_v62, %v4576_v35  ;;  %v4631_v40 = vmul.f32 1.442695, %v4614_v38 }
0x2bad   :  { %v4573_v3 = vpop.xlane.xlu0 %4572 }
0x2bae   :  { %v4635_v21 = vmul.f32 1.442695, %v4616_v55  ;;  %v4615_v18 = vsub.f32 %v8909_v13, %v4573_v3 }
0x2bb0   :  { %6649 = vpow2.f32 %v4635_v21  ;;  %v4633_v11 = vmul.f32 1.442695, %v4615_v18 }
0x2bb1   :  { %6651 = vpow2.f32 %v4631_v40  ;;  %v4579_v0 = vpop.xlane.xlu0 %4578  ;;  %v4582_v51 = vpop.xlane.xlu1 %4581 }
0x2bb2   :  { %6653 = vpow2.f32 %v4633_v11  ;;  %v4617_v17 = vsub.f32 %v8918_v7, %v4579_v0  ;;  %v4618_v26 = vsub.f32 %v8925_v36, %v4582_v51 }
0x2bb3   :  { %6655 = vpow2.f32 %v4629_v30 }
0x2bb4   :  { %v4637_v29 = vmul.f32 1.442695, %v4617_v17  ;;  %v4639_v8 = vmul.f32 1.442695, %v4618_v26 }
0x2bb5   :  { %v4585_v23 = vpop.xlane.xlu0 %4584  ;;  %v4588_v41 = vpop.xlane.xlu1 %4587 }
0x2bb6   :  { %v4619_v62 = vsub.f32 %v8930_v31, %v4585_v23  ;;  %v4620_v28 = vsub.f32 %v8935_v57, %v4588_v41 }
0x2bb8   :  { %v4641_v13 = vmul.f32 1.442695, %v4619_v62  ;;  %v4643_v16 = vmul.f32 1.442695, %v4620_v28 }
0x2bb9   :  { %v4591_v45 = vpop.xlane.xlu0 %4590  ;;  %v4594_v58 = vpop.xlane.xlu1 %4593 }
0x2bba   :  { %v9009_v52 = vpop.eup %6649  ;;  %6657 = vpow2.f32 %v4641_v13  ;;  %v4621_v31 = vsub.f32 %v8944_v24, %v4591_v45  ;;  %v4622_v57 = vsub.f32 %v8953_v56, %v4594_v58 }
0x2bbb   :  { %v9011_v6 = vpop.eup %6651  ;;  %6659 = vpow2.f32 %v4643_v16  ;;  %v4670_v7 = vsel %vm195_vm1, %v9009_v52, 0.0 }
0x2bbc   :  { %v9015_v36 = vpop.eup %6653  ;;  %6661 = vpow2.f32 %v4637_v29  ;;  %4671 = vadd.xlane.f32.xlu1 %v4670_v7  ;;  %v4664_v44 = vsel %vm195_vm1, %v9011_v6, 0.0  ;;  %v4645_v24 = vmul.f32 1.442695, %v4621_v31  ;;  %v4647_v56 = vmul.f32 1.442695, %v4622_v57 }
0x2bbd   :  { %6663 = vpow2.f32 %v4639_v8  ;;  %v4597_v27 = vpop.xlane.xlu0 %4596  ;;  %v4600_v22 = vpop.xlane.xlu1 %4599  ;;  %v4667_v47 = vsel %vm195_vm1, %v9015_v36, 0.0 }
0x2bbe   :  { %v9021_v14 = vpop.eup %6655  ;;  %v4623_v46 = vsub.f32 %v8958_v10, %v4597_v27  ;;  %v4624_v34 = vsub.f32 %v8963_v1, %v4600_v22  ;;  %4668 = vadd.xlane.f32.xlu0 %v4667_v47 }
0x2bbf   :  { %v4661_v54 = vsel %vm195_vm1, %v9021_v14, 0.0 }
0x2bc0   :  { %v4649_v2 = vmul.f32 1.442695, %v4623_v46  ;;  %v4651_v20 = vmul.f32 1.442695, %v4624_v34  ;;  %4665 = vadd.xlane.f32.xlu1 %v4664_v44 }
0x2bc1   :  { %v4603_v25 = vpop.xlane.xlu0 %4602  ;;  %v4606_v19 = vpop.xlane.xlu1 %4605 }
0x2bc2   :  { %6665 = vpow2.f32 %v4649_v2  ;;  %4662 = vadd.xlane.f32.xlu0 %v4661_v54  ;;  %v4625_v12 = vsub.f32 %v8972_v4, %v4603_v25  ;;  %v4626_v0 = vsub.f32 %v8981_v61, %v4606_v19 }
0x2bc3   :  { %6667 = vpow2.f32 %v4651_v20 }
0x2bc4   :  { %v9029_v10 = vpop.eup %6657  ;;  %6669 = vpow2.f32 %v4645_v24  ;;  %v4653_v21 = vmul.f32 1.442695, %v4625_v12  ;;  %v4655_v41 = vmul.f32 1.442695, %v4626_v0 }
0x2bc5   :  { %v9031_v1 = vpop.eup %6659  ;;  %6671 = vpow2.f32 %v4647_v56  ;;  %v4609_v50 = vpop.xlane.xlu0 %4608  ;;  %v4679_v59 = vsel %vm195_vm1, %v9029_v10, 0.0 }
0x2bc6   :  { %v9036_v38 = vpop.eup %6661  ;;  %v4627_v35 = vsub.f32 %v8986_v60, %v4609_v50  ;;  %v4612_v9 = vpop.xlane.xlu1 %4611  ;;  %4680 = vadd.xlane.f32.xlu0 %v4679_v59  ;;  %v4682_v55 = vsel %vm195_vm1, %v9031_v1, 0.0 }
0x2bc7   :  { %v9041_v40 = vpop.eup %6663  ;;  %4683 = vadd.xlane.f32.xlu1 %v4682_v55  ;;  %v4628_v4 = vsub.f32 %v8991_v15, %v4612_v9  ;;  %v4673_v18 = vsel %vm195_vm1, %v9036_v38, 0.0 }
0x2bc8   :  { %v4657_v3 = vmul.f32 1.442695, %v4627_v35  ;;  %v4676_v60 = vsel %vm195_vm1, %v9041_v40, 0.0 }
0x2bc9   :  { %v4659_v51 = vmul.f32 1.442695, %v4628_v4 }
0x2bca   :  { %6673 = vpow2.f32 %v4657_v3  ;;  %4674 = vadd.xlane.f32.xlu0 %v4673_v18 }
0x2bcb   :  { %4677 = vadd.xlane.f32.xlu1 %v4676_v60  ;;  %6675 = vpow2.f32 %v4653_v21 }
0x2bcc   :  { %v9048_v30 = vpop.eup %6665  ;;  %6677 = vpow2.f32 %v4659_v51 }
0x2bcd   :  { %v9050_v11 = vpop.eup %6667  ;;  %v4691_v15 = vsel %vm195_vm1, %v9048_v30, 0.0  ;;  %6679 = vpow2.f32 %v4655_v41 }
0x2bce   :  { %v9055_v17 = vpop.eup %6669  ;;  %4692 = vadd.xlane.f32.xlu0 %v4691_v15  ;;  %v4694_v26 = vsel %vm195_vm1, %v9050_v11, 0.0 }
0x2bcf   :  { %v9059_v23 = vpop.eup %6671  ;;  %4695 = vadd.xlane.f32.xlu1 %v4694_v26  ;;  %v4685_v62 = vsel %vm195_vm1, %v9055_v17, 0.0 }
0x2bd0   :  { %v4688_v61 = vsel %vm195_vm1, %v9059_v23, 0.0 }
0x2bd2   :  { %4686 = vadd.xlane.f32.xlu0 %v4685_v62 }
0x2bd3   :  { %4689 = vadd.xlane.f32.xlu1 %v4688_v61 }
0x2bd4   :  { %v9065_v28 = vpop.eup %6673 }
0x2bd5   :  { %v4703_v29 = vsel %vm195_vm1, %v9065_v28, 0.0  ;;  %v9069_v13 = vpop.eup %6675 }
0x2bd6   :  { %v4697_v16 = vsel %vm195_vm1, %v9069_v13, 0.0  ;;  %v9073_v8 = vpop.eup %6677 }
0x2bd7   :  { %4704 = vadd.xlane.f32.xlu1 %v4703_v29  ;;  %v4706_v45 = vsel %vm195_vm1, %v9073_v8, 0.0  ;;  %v9077_v58 = vpop.eup %6679 }
0x2bd8   :  { %v4700_v7 = vsel %vm195_vm1, %v9077_v58, 0.0 }
0x2bdb   :  { %4698 = vadd.xlane.f32.xlu1 %v4697_v16 }
0x2bdf   :  { %4707 = vadd.xlane.f32.xlu1 %v4706_v45 }
0x2be3   :  { %4701 = vadd.xlane.f32.xlu1 %v4700_v7 }
0x2be8   :  { %4749 = vrot.lane.b32.xlu0 %v8864_v48, %s6887_s23 }
0x2bf4   :  { %4751 = vrot.lane.b32.xlu1 %v8860_v32, %s6887_s23 }
0x2c49   :  { %v4672_v31 = vpop.xlane.xlu1 %4671 }
0x2c4b   :  { %v4669_v57 = vpop.xlane.xlu0 %4668 }
0x2c4d   :  { %v4666_v27 = vpop.xlane.xlu1 %4665 }
0x2c4e   :  { %6681 = vrcp.f32 %v4666_v27 }
0x2c4f   :  { %v4663_v22 = vpop.xlane.xlu0 %4662 }
0x2c50   :  { %6683 = vrcp.f32 %v4663_v22 }
0x2c51   :  { %6685 = vrcp.f32 %v4669_v57 }
0x2c53   :  { %v4681_v47 = vpop.xlane.xlu0 %4680 }
0x2c54   :  { %v4684_v46 = vpop.xlane.xlu1 %4683 }
0x2c57   :  { %v4675_v34 = vpop.xlane.xlu0 %4674 }
0x2c58   :  { %v6682_v44 = vpop.eup %6681  ;;  %v4678_v24 = vpop.xlane.xlu1 %4677  ;;  %6687 = vrcp.f32 %v4675_v34 }
0x2c59   :  { %v4726_v48 = vmul.f32 %v6682_v44, %v9011_v6  ;;  %6689 = vrcp.f32 %v4678_v24 }
0x2c5a   :  { %v6684_v2 = vpop.eup %6683  ;;  %6691 = vrcp.f32 %v4672_v31 }
0x2c5b   :  { %v4693_v20 = vpop.xlane.xlu0 %4692  ;;  %v4725_v56 = vmul.f32 %v6684_v2, %v9021_v14  ;;  %6693 = vrcp.f32 %v4681_v47  ;;  %v6686_v6 = vpop.eup %6685 }
0x2c5c   :  { %v4696_v25 = vpop.xlane.xlu1 %4695  ;;  %6695 = vrcp.f32 %v4684_v46  ;;  %v4727_v21 = vmul.f32 %v6686_v6, %v9015_v36 }
0x2c5d   :  { %v4741_v19 = vpack.c.bf16 %v4726_v48, %v4725_v56  ;;  %v6846_v48 = vld [vmem:[%s9264_s10 + $0x30] sm:$0xff] }
0x2c5f   :  { %v4687_v32 = vpop.xlane.xlu0 %4686  ;;  %6161 = vmatprep.mubr.msk.bf16.mxu1 %vm195_vm1, %v4741_v19 }
0x2c60   :  { %v4690_v54 = vpop.xlane.xlu1 %4689  ;;  %6697 = vrcp.f32 %v4687_v32  ;;  %v6847_v32 = vld [vmem:[%s9264_s10] sm:$0xff] }
0x2c61   :  { %6699 = vrcp.f32 %v4690_v54 }
0x2c62   :  { %v6688_v14 = vpop.eup %6687  ;;  %6701 = vrcp.f32 %v4693_v20  ;;  %v6845_v20 = vld [vmem:[%s9264_s10 + $0x10] sm:$0xff] }
0x2c63   :  { %v4750_v12 = vpop.permute.xlu0 %4749  ;;  %v6690_v55 = vpop.eup %6689  ;;  %v4729_v18 = vmul.f32 %v6688_v14, %v9036_v38  ;;  %6703 = vrcp.f32 %v4696_v25 }
0x2c64   :  { %v4705_v50 = vpop.xlane.xlu1 %4704  ;;  %6157 = vmatprep.subr.bf16.mxu1 %v4750_v12  ;;  %v6692_v3 = vpop.eup %6691  ;;  %v4730_v60 = vmul.f32 %v6690_v55, %v9041_v40 }
0x2c65   :  { %6158 = vmatpush3.bf16.msra.mxu1 %v4750_v12  ;;  %v4728_v0 = vmul.f32 %v6692_v3, %v9009_v52  ;;  %v6694_v51 = vpop.eup %6693  ;;  %v6848_v12 = vld [vmem:[%s9264_s10 + $0x20] sm:$0xff] }
0x2c66   :  { %v6696_v15 = vpop.eup %6695  ;;  %v4743_v62 = vpack.c.bf16 %v4730_v60, %v4729_v18  ;;  %v4731_v36 = vmul.f32 %v6694_v51, %v9029_v10  ;;  %v6852_v60 = vld [vmem:[%s9264_s10 + $0x28] sm:$0xff] }
0x2c67   :  { %v4742_v26 = vpack.c.bf16 %v4728_v0, %v4727_v21  ;;  %v4732_v52 = vmul.f32 %v6696_v15, %v9031_v1  ;;  %v6851_v21 = vld [vmem:[%s9264_s10 + $0x8] sm:$0xff] }
0x2c68   :  { %v4699_v59 = vpop.xlane.xlu1 %4698 }
0x2c69   :  { %v4744_v16 = vpack.c.bf16 %v4732_v52, %v4731_v36  ;;  %v6854_v36 = vld [vmem:[%s9264_s10 + $0x40] sm:$0xff] }
0x2c6a   :  { %v6698_v41 = vpop.eup %6697 }
0x2c6b   :  { %v6700_v61 = vpop.eup %6699  ;;  %v4733_v38 = vmul.f32 %v6698_v41, %v9055_v17  ;;  %v6853_v41 = vld [vmem:[%s9264_s10 + $0x50] sm:$0xff] }
0x2c6c   :  { %v4708_v35 = vpop.xlane.xlu1 %4707  ;;  %v4734_v40 = vmul.f32 %v6700_v61, %v9059_v23  ;;  %v6702_v29 = vpop.eup %6701 }
0x2c6d   :  { %v6704_v45 = vpop.eup %6703  ;;  %v4735_v10 = vmul.f32 %v6702_v29, %v9048_v30  ;;  %v6279_v30 = vld [vmem:[%s9259_s5 + $0x40] sm:$0xff]   ;;  %v6855_v29 = vld [vmem:[%s9264_s10 + $0x58] sm:$0xff] }
0x2c6e   :  { %v4745_v7 = vpack.c.bf16 %v4734_v40, %v4733_v38  ;;  %v4736_v1 = vmul.f32 %v6704_v45, %v9050_v11  ;;  %6177 = vmatprep.subr.bf16.mxu0 %v6279_v30  ;;  %v6280_v11 = vld [vmem:[%s9259_s5 + $0x48] sm:$0xff]  }
0x2c6f   :  { %6178 = vmatpush3.bf16.msra.mxu0 %v6279_v30 }
0x2c70   :  { %v4702_v9 = vpop.xlane.xlu1 %4701  ;;  %v4746_v27 = vpack.c.bf16 %v4736_v1, %v4735_v10  ;;  %6179 = vmatprep.subr.bf16.mxu0 %v6280_v11 }
0x2c71   :  { %6705 = vrcp.f32 %v4702_v9  ;;  %v6850_v9 = vld [vmem:[%s9264_s10 + $0x38] sm:$0xff] }
0x2c72   :  { %6707 = vrcp.f32 %v4699_v59 }
0x2c73   :  { %6709 = vrcp.f32 %v4708_v35  ;;  %6180 = vmatpush3.bf16.msra.mxu0 %v6280_v11  ;;  %v6849_v35 = vld [vmem:[%s9264_s10 + $0x18] sm:$0xff] }
0x2c74   :  { %v4752_v4 = vpop.permute.xlu1 %4751  ;;  %6711 = vrcp.f32 %v4705_v50 }
0x2c75   :  { %6159 = vmatprep.subr.bf16.mxu1 %v4752_v4 }
0x2c76   :  { %6160 = vmatpush3.bf16.msra.mxu1 %v4752_v4 }
0x2c79   :  { %6162 = vmatmul.mubr.msk.bf16.vlgmr.msra.gmra.mrb[100].mxu1 %vm195_vm1, %v4742_v26 }
0x2c7a   :  { %6165 = vmatprep.mubr.msk.bf16.mxu1 %vm195_vm1, %v4743_v62 }
0x2c7b   :  { %v6706_v31 = vpop.eup %6705 }
0x2c7c   :  { %v6708_v57 = vpop.eup %6707  ;;  %v4738_v17 = vmul.f32 %v6706_v31, %v9077_v58  ;;  %v6856_v31 = vld [vmem:[%s9264_s10 + $0x48] sm:$0xff] }
0x2c7d   :  { %v4737_v23 = vmul.f32 %v6708_v57, %v9069_v13  ;;  %v6710_v22 = vpop.eup %6709 }
0x2c7e   :  { %v6712_v46 = vpop.eup %6711  ;;  %v4740_v34 = vmul.f32 %v6710_v22, %v9073_v8 }
0x2c7f   :  { %v4747_v47 = vpack.c.bf16 %v4738_v17, %v4737_v23  ;;  %v4739_v44 = vmul.f32 %v6712_v46, %v9065_v28  ;;  %v6857_v23 = vld [vmem:[%s9264_s10 + $0x70] sm:$0xff] }
0x2c81   :  { %6166 = vmatmul.mubr.msk.bf16.gmra.mrb[104].mxu1 %vm195_vm1, %v4744_v16  ;;  %v4748_v24 = vpack.c.bf16 %v4740_v34, %v4739_v44 }
0x2c82   :  { %6169 = vmatprep.mubr.msk.bf16.mxu1 %vm195_vm1, %v4745_v7 }
0x2c89   :  { %6170 = vmatmul.mubr.msk.bf16.gmra.mrb[108].mxu1 %vm195_vm1, %v4746_v27 }
0x2c8a   :  { %6173 = vmatprep.mubr.msk.bf16.mxu1 %vm195_vm1, %v4747_v47  ;;  %v6858_v47 = vld [vmem:[%s9264_s10 + $0x60] sm:$0xff] }
0x2c91   :  { %6174 = vmatmul.mubr.msk.bf16.gmra.mrb[112].mxu1 %vm195_vm1, %v4748_v24  ;;  %v6859_v24 = vld [vmem:[%s9264_s10 + $0x78] sm:$0xff] }
0x2d4c   :  { %v6163_v13 = vpop.f32.mrb[100].mxu1 }
0x2d4d   :  { %v4813_v58 = vpop.f32.mrb[101].mxu1  ;;  %v4878_v56 = vmul.f32 %v6845_v20, %v6163_v13 }
0x2d4e   :  { %v6164_v8 = vpop.f32.mrb[102].mxu1  ;;  %v4876_v54 = vmul.f32 %v6847_v32, %v4813_v58  ;;  %v6860_v58 = vld [vmem:[%s9264_s10 + $0x68] sm:$0xff] }
0x2d4f   :  { %v4816_v2 = vpop.f32.mrb[103].mxu1  ;;  %v4879_v6 = vmul.f32 %v6849_v35, %v6164_v8 }
0x2d50   :  { %v4877_v4 = vmul.f32 %v6851_v21, %v4816_v2 }
0x2d54   :  { %v6167_v28 = vpop.f32.mrb[104].mxu1 }
0x2d55   :  { %v4882_v25 = vmul.f32 %v6846_v48, %v6167_v28  ;;  %v4829_v19 = vpop.f32.mrb[105].mxu1  ;;  %v4914_v48 = vrot.slane %v8842_v49, %v7435_v42 }
0x2d56   :  { %v4880_v50 = vmul.f32 %v6848_v12, %v4829_v19  ;;  %v6168_v59 = vpop.f32.mrb[106].mxu1 }
0x2d57   :  { %v4894_v14 = vadd.f32 %v4882_v25, %v4878_v56  ;;  %v4883_v55 = vmul.f32 %v6850_v9, %v6168_v59  ;;  %v4832_v3 = vpop.f32.mrb[107].mxu1 }
0x2d58   :  { %v4892_v18 = vadd.f32 %v4880_v50, %v4876_v54  ;;  %v4881_v0 = vmul.f32 %v6852_v60, %v4832_v3 }
0x2d59   :  { %v4895_v51 = vadd.f32 %v4883_v55, %v4879_v6 }
0x2d5a   :  { %v4893_v15 = vadd.f32 %v4881_v0, %v4877_v4 }
0x2d5c   :  { %v6171_v26 = vpop.f32.mrb[108].mxu1 }
0x2d5d   :  { %v4886_v62 = vmul.f32 %v6853_v41, %v6171_v26  ;;  %v4845_v61 = vpop.f32.mrb[109].mxu1 }
0x2d5e   :  { %v4884_v52 = vmul.f32 %v6854_v36, %v4845_v61  ;;  %v6172_v38 = vpop.f32.mrb[110].mxu1 }
0x2d5f   :  { %v4898_v40 = vadd.f32 %v4894_v14, %v4886_v62  ;;  %v4887_v16 = vmul.f32 %v6855_v29, %v6172_v38  ;;  %v4848_v45 = vpop.f32.mrb[111].mxu1 }
0x2d60   :  { %v4896_v7 = vadd.f32 %v4892_v18, %v4884_v52  ;;  %v4885_v57 = vmul.f32 %v6856_v31, %v4848_v45  ;;  %v6282_v31 = vld [vmem:[%s9260_s6 + $0x48] sm:$0xff]  }
0x2d61   :  { %v4899_v10 = vadd.f32 %v4895_v51, %v4887_v16 }
0x2d62   :  { %v4897_v1 = vadd.f32 %v4893_v15, %v4885_v57 }
0x2d64   :  { %v6175_v17 = vpop.f32.mrb[112].mxu1 }
0x2d65   :  { %v4890_v27 = vmul.f32 %v6857_v23, %v6175_v17  ;;  %v4861_v22 = vpop.f32.mrb[113].mxu1 }
0x2d66   :  { %v4888_v46 = vmul.f32 %v6858_v47, %v4861_v22  ;;  %v6176_v34 = vpop.f32.mrb[114].mxu1 }
0x2d67   :  { %v4902_v44 = vadd.f32 %v4898_v40, %v4890_v27  ;;  %v4891_v30 = vmul.f32 %v6859_v24, %v6176_v34  ;;  %v4864_v11 = vpop.f32.mrb[115].mxu1 }
0x2d68   :  { %v4900_v13 = vadd.f32 %v4896_v7, %v4888_v46  ;;  %v4889_v8 = vmul.f32 %v6860_v58, %v4864_v11 }
0x2d69   :  { %v4903_v2 = vadd.f32 %v4899_v10, %v4891_v30 }
0x2d6a   :  { %v4901_v28 = vadd.f32 %v4897_v1, %v4889_v8 }
0x2d6b   :  { %v4905_v20 = vpack.c.bf16 %v4903_v2, %v4902_v44  ;;  %v5049_v2 = vrot.slane %v8842_v49, %v7487_v43  ;;  %v6283_v43 = vld [vmem:[%s9261_s7 + $0xc0] sm:$0xff]  }
0x2d6c   :  { %v4904_v56 = vpack.c.bf16 %v4901_v28, %v4900_v13  ;;  %v5041_v13 = vrot.slane %v8842_v49, %v7477_v5  ;;  %6193 = vmatprep.subr.bf16.mxu0 %v6283_v43  ;;  %v6284_v49 = vld [vmem:[%s9261_s7 + $0xc8] sm:$0xff]  }
0x2d6e   :  { %6181 = vmatprep.mubr.msk.bf16.mxu0 %vm195_vm1, %v4904_v56 }
0x2d6f   :  { %6182 = vmatmul.mubr.msk.bf16.vlgmr.msra.gmra.mrb[116].mxu0 %vm195_vm1, %v4905_v20 }
0x2d70   :  { %6194 = vmatpush3.bf16.msra.mxu0 %v6283_v43 }
0x2d71   :  { %6195 = vmatprep.subr.bf16.mxu0 %v6284_v49 }
0x2d74   :  { %6196 = vmatpush3.bf16.msra.mxu0 %v6284_v49 }
0x2e42   :  { %v6183_v25 = vpop.f32.mrb[116].mxu0 }
0x2e43   :  { %v4967_v19 = vpop.f32.mrb[117].mxu0  ;;  %v4976_v32 = vadd.f32 %v6183_v25, %v4914_v48 }
0x2e44   :  { %v4968_v54 = vadd.f32 %v4967_v19, %v4914_v48  ;;  %v6184_v12 = vpop.f32.mrb[118].mxu0 }
0x2e45   :  { %v4970_v50 = vpop.f32.mrb[119].mxu0  ;;  %v9171_v6 = vadd.f32 %v4976_v32, %v8809_v33  ;;  %v4979_v14 = vadd.f32 %v6184_v12, %v4914_v48 }
0x2e46   :  { %v9168_v59 = vadd.f32 %v4968_v54, %v8806_v63  ;;  %v4971_v35 = vadd.f32 %v4970_v50, %v4914_v48 }
0x2e47   :  { %v9181_v3 = vadd.f32 %v4979_v14, %v8817_v53  ;;  %v4992_v63 = vsel %vm195_vm1, %v9171_v6, 0.0 }
0x2e48   :  { %v9174_v9 = vadd.f32 %v4971_v35, %v8812_v39  ;;  %v4986_v42 = vsel %vm195_vm1, %v9168_v59, 0.0  ;;  %v6281_v39 = vld [vmem:[%s9260_s6 + $0x40] sm:$0xff]  }
0x2e49   :  { %4987 = vadd.xlane.f32.xlu0 %v4986_v42  ;;  %v4995_v33 = vsel %vm195_vm1, %v9181_v3, 0.0  ;;  %6185 = vmatprep.subr.bf16.mxu1 %v6281_v39 }
0x2e4a   :  { %v4989_v55 = vsel %vm195_vm1, %v9174_v9, 0.0  ;;  %6186 = vmatpush3.bf16.msra.mxu1 %v6281_v39  ;;  %v6288_v39 = vld [vmem:[%s9261_s7 + $0xe8] sm:$0xff]  }
0x2e4b   :  { %4990 = vadd.xlane.f32.xlu1 %v4989_v55  ;;  %6187 = vmatprep.subr.bf16.mxu1 %v6282_v31  ;;  %v6285_v55 = vld [vmem:[%s9261_s7 + $0xd0] sm:$0xff]  }
0x2e4c   :  { %6197 = vmatprep.subr.bf16.mxu0 %v6285_v55 }
0x2e4d   :  { %4993 = vadd.xlane.f32.xlu0 %v4992_v63  ;;  %6198 = vmatpush3.bf16.msra.mxu0 %v6285_v55  ;;  %v6286_v63 = vld [vmem:[%s9261_s7 + $0xd8] sm:$0xff]  }
0x2e4e   :  { %6188 = vmatpush3.bf16.msra.mxu1 %v6282_v31  ;;  %6199 = vmatprep.subr.bf16.mxu0 %v6286_v63 }
0x2e51   :  { %4996 = vadd.xlane.f32.xlu0 %v4995_v33  ;;  %6200 = vmatpush3.bf16.msra.mxu0 %v6286_v63  ;;  %v6287_v33 = vld [vmem:[%s9261_s7 + $0xe0] sm:$0xff]  }
0x2e52   :  { %6201 = vmatprep.subr.bf16.mxu0 %v6287_v33 }
0x2e55   :  { %6202 = vmatpush3.bf16.msra.mxu0 %v6287_v33 }
0x2e56   :  { %6203 = vmatprep.subr.bf16.mxu0 %v6288_v39 }
0x2e59   :  { %6204 = vmatpush3.bf16.msra.mxu0 %v6288_v39 }
0x2ed6   :  { %v4988_v21 = vpop.xlane.xlu0 %4987 }
0x2ed7   :  { %v4998_v4 = vmul.f32 0.03125, %v4988_v21  ;;  %v5569_v21 = vld [vmem:[%s9263_s9 + $0x4] ss:$0 sm:$0xff] }
0x2ed8   :  { %v4991_v18 = vpop.xlane.xlu1 %4990 }
0x2ed9   :  { %v5002_v53 = vsub.f32 %v9168_v59, %v4998_v4  ;;  %v4999_v60 = vmul.f32 0.03125, %v4991_v18 }
0x2eda   :  { %v4994_v0 = vpop.xlane.xlu0 %4993 }
0x2edb   :  { %v5003_v51 = vsub.f32 %v9174_v9, %v4999_v60  ;;  %v5000_v15 = vmul.f32 0.03125, %v4994_v0  ;;  %v5006_v26 = vmul.f32 %v5002_v53, %v5002_v53 }
0x2edd   :  { %v5004_v41 = vsub.f32 %v9171_v6, %v5000_v15  ;;  %v5010_v62 = vsel %vm195_vm1, %v5006_v26, 0.0  ;;  %v5007_v61 = vmul.f32 %v5003_v51, %v5003_v51 }
0x2ede   :  { %5011 = vadd.xlane.f32.xlu0 %v5010_v62  ;;  %v4997_v36 = vpop.xlane.xlu0 %4996 }
0x2edf   :  { %v5001_v52 = vmul.f32 0.03125, %v4997_v36  ;;  %v5013_v40 = vsel %vm195_vm1, %v5007_v61, 0.0  ;;  %v5008_v29 = vmul.f32 %v5004_v41, %v5004_v41 }
0x2ee1   :  { %v5005_v38 = vsub.f32 %v9181_v3, %v5001_v52  ;;  %v5016_v45 = vsel %vm195_vm1, %v5008_v29, 0.0 }
0x2ee2   :  { %5014 = vadd.xlane.f32.xlu0 %v5013_v40 }
0x2ee3   :  { %v5009_v16 = vmul.f32 %v5005_v38, %v5005_v38 }
0x2ee5   :  { %v5019_v7 = vsel %vm195_vm1, %v5009_v16, 0.0 }
0x2ee6   :  { %5017 = vadd.xlane.f32.xlu0 %v5016_v45  ;;  %5020 = vadd.xlane.f32.xlu1 %v5019_v7 }
0x2f6b   :  { %v5012_v57 = vpop.xlane.xlu0 %5011 }
0x2f6c   :  { %v5022_v10 = vmul.f32 0.03125, %v5012_v57 }
0x2f6e   :  { %v5026_v1 = vadd.f32 1e-05, %v5022_v10 }
0x2f6f   :  { %v5015_v17 = vpop.xlane.xlu0 %5014 }
0x2f70   :  { %6713 = vrsqrt.f32 %v5026_v1  ;;  %v5023_v23 = vmul.f32 0.03125, %v5015_v17 }
0x2f72   :  { %v5027_v27 = vadd.f32 1e-05, %v5023_v23 }
0x2f73   :  { %v5021_v22 = vpop.xlane.xlu1 %5020  ;;  %v5018_v47 = vpop.xlane.xlu0 %5017 }
0x2f74   :  { %6715 = vrsqrt.f32 %v5027_v27  ;;  %v5025_v46 = vmul.f32 0.03125, %v5021_v22  ;;  %v5024_v34 = vmul.f32 0.03125, %v5018_v47 }
0x2f76   :  { %v5029_v44 = vadd.f32 1e-05, %v5025_v46  ;;  %v5028_v24 = vadd.f32 1e-05, %v5024_v34 }
0x2f78   :  { %6717 = vrsqrt.f32 %v5029_v44  ;;  %v6861_v44 = vld [vmem:[%s9262_s8 + $0x20] sm:$0x3f]  ;;  %s6862_s8 = scalar_lea.vmem %s5278_s29, 512 }
0x2f79   :  { %6719 = vrsqrt.f32 %v5028_v24  ;;  %v5172_v24 = vrot.slane %v6861_v44, %v7514_v37  ;;  %p6863_p0 = scmp.ne.s32.totalorder %s5278_s29, %s6862_s8  ;;  %p6868_p2 = scmp.lt.s32.totalorder %s6862_s8, %s6862_s8 }
0x2f7a   :  { %v6714_v30 = vpop.eup %6713 }
0x2f7b   :  { %v5034_v11 = vmul.f32 %v6714_v30, %v5002_v53  ;;  %p6869_p3 = por %p6868_p2, %p6867_p1 }
0x2f7d   :  { %v5042_v28 = vmul.f32 %v5041_v13, %v5034_v11  ;;  %p6870_p4 = pnand %p6869_p3, %p6863_p0 }
0x2f7e   :  { %v6716_v58 = vpop.eup %6715 }
0x2f7f   :  { %v5035_v8 = vmul.f32 %v6716_v58, %v5003_v51  ;;  %v5050_v19 = vadd.f32 %v5049_v2, %v5042_v28 }
0x2f81   :  { %v5043_v20 = vmul.f32 %v5041_v13, %v5035_v8 }
0x2f82   :  { %v6718_v56 = vpop.eup %6717 }
0x2f83   :  { %v6720_v48 = vpop.eup %6719  ;;  %v5037_v25 = vmul.f32 %v6718_v56, %v5005_v38  ;;  %v5051_v32 = vadd.f32 %v5049_v2, %v5043_v20 }
0x2f84   :  { %v5036_v54 = vmul.f32 %v6720_v48, %v5004_v41 }
0x2f85   :  { %v5045_v12 = vmul.f32 %v5041_v13, %v5037_v25  ;;  %v5054_v50 = vpack.c.bf16 %v5051_v32, %v5050_v19 }
0x2f86   :  { %v5044_v35 = vmul.f32 %v5041_v13, %v5036_v54 }
0x2f87   :  { %v5053_v14 = vadd.f32 %v5049_v2, %v5045_v12  ;;  %6189 = vmatprep.mubr.msk.bf16.mxu1 %vm195_vm1, %v5054_v50 }
0x2f88   :  { %v5052_v5 = vadd.f32 %v5049_v2, %v5044_v35 }
0x2f8a   :  { %v5055_v42 = vpack.c.bf16 %v5053_v14, %v5052_v5 }
0x2f8c   :  { %6190 = vmatmul.mubr.msk.bf16.vlgmr.msra.gmra.mrb[116].mxu1 %vm195_vm1, %v5055_v42 }
0x305f   :  { %v6191_v4 = vpop.f32.mrb[116].mxu1 }
0x3060   :  { %v5128_v18 = vadd.f32 %v6191_v4, %v5569_v21  ;;  %v5119_v53 = vpop.f32.mrb[117].mxu1 }
0x3061   :  { %v5120_v60 = vadd.f32 %v5569_v21, %v5119_v53  ;;  %v6192_v0 = vpop.f32.mrb[118].mxu1 }
0x3062   :  { %v5140_v51 = vmul.f32 0.70710677, %v5128_v18  ;;  %v5131_v15 = vadd.f32 %v6192_v0, %v5569_v21  ;;  %v5122_v26 = vpop.f32.mrb[119].mxu1  ;;  %v5136_v7 = vmul.f32 0.5, %v5128_v18 }
0x3063   :  { %v5138_v41 = vmul.f32 0.70710677, %v5120_v60  ;;  %v5123_v62 = vadd.f32 %v5569_v21, %v5122_v26  ;;  %v5134_v10 = vmul.f32 0.5, %v5120_v60 }
0x3064   :  { %6721 = verf.f32 %v5140_v51  ;;  %v5141_v61 = vmul.f32 0.70710677, %v5131_v15  ;;  %v5137_v31 = vmul.f32 0.5, %v5131_v15 }
0x3065   :  { %6723 = verf.f32 %v5138_v41  ;;  %v5139_v36 = vmul.f32 0.70710677, %v5123_v62  ;;  %v5135_v1 = vmul.f32 0.5, %v5123_v62 }
0x3066   :  { %6725 = verf.f32 %v5141_v61 }
0x3067   :  { %6727 = verf.f32 %v5139_v36 }
0x306e   :  { %v6722_v52 = vpop.eup %6721 }
0x306f   :  { %v6724_v38 = vpop.eup %6723  ;;  %v5148_v40 = vadd.f32 1.0, %v6722_v52 }
0x3070   :  { %v6726_v29 = vpop.eup %6725  ;;  %v5146_v16 = vadd.f32 1.0, %v6724_v38 }
0x3071   :  { %v6728_v45 = vpop.eup %6727  ;;  %v5149_v57 = vadd.f32 1.0, %v6726_v29  ;;  %v5152_v23 = vmul.f32 %v5148_v40, %v5136_v7 }
0x3072   :  { %v5147_v17 = vadd.f32 1.0, %v6728_v45  ;;  %v5150_v22 = vmul.f32 %v5146_v16, %v5134_v10 }
0x3073   :  { %v5153_v27 = vmul.f32 %v5149_v57, %v5137_v31 }
0x3074   :  { %v5151_v47 = vmul.f32 %v5147_v17, %v5135_v1 }
0x3075   :  { %v5155_v46 = vpack.c.bf16 %v5153_v27, %v5152_v23 }
0x3076   :  { %v5154_v34 = vpack.c.bf16 %v5151_v47, %v5150_v22 }
0x3078   :  { %6205 = vmatprep.mubr.msk.bf16.mxu0 %vm1144_vm2, %v5154_v34 }
0x3079   :  { %6206 = vmatmul.mubr.msk.bf16.vlgmr.msra.gmra.mrb[120].mxu0 %vm1144_vm2, %v5155_v46 }
0x314c   :  { %v6207_v30 = vpop.f32.mrb[120].mxu0 }
0x314d   :  { %v5258_v11 = vadd.f32 %v6207_v30, %v5172_v24  ;;  %v5249_v13 = vpop.f32.mrb[121].mxu0 }
0x314e   :  { %v5250_v58 = vadd.f32 %v5249_v13, %v5172_v24  ;;  %v6208_v8 = vpop.f32.mrb[122].mxu0 }
0x314f   :  { %v5266_v2 = vadd.f32 %v5258_v11, %v9171_v6  ;;  %v5261_v28 = vadd.f32 %v6208_v8, %v5172_v24  ;;  %v5252_v20 = vpop.f32.mrb[123].mxu0 }
0x3150   :  { %v5264_v56 = vadd.f32 %v5250_v58, %v9168_v59  ;;  %v5253_v48 = vadd.f32 %v5252_v20, %v5172_v24 }
0x3151   :  { %5270 = vst.msk [vmem:[#allocation2 + $0x10] sm:$0xff] %vm195_vm1, %v5266_v2  ;;  %v5267_v25 = vadd.f32 %v5261_v28, %v9181_v3 }
0x3152   :  { %5268 = vst.msk [vmem:[#allocation2] sm:$0xff] %vm195_vm1, %v5264_v56  ;;  %v5265_v37 = vadd.f32 %v5253_v48, %v9174_v9 }
0x3153   :  { %5271 = vst.msk [vmem:[#allocation2 + $0x18] sm:$0xff] %vm195_vm1, %v5267_v25 }
0x3154   :  { %5269 = vst.msk [vmem:[#allocation2 + $0x8] sm:$0xff] %vm195_vm1, %v5265_v37 }
0x3155   :  { %6873 = shalt.err (!%p6870_p4)
}
0x3156   :  { %s6874_s0 = scalar_lea.hbm %s9266_s12, 512 }
0x3157   :  { %p6875_p5 = scmp.ne.s32.totalorder %s9266_s12, %s6874_s0  ;;  %p6878_p6 = scmp.lt.u32.totalorder %s6874_s0, %s9266_s12 }
0x3159   :  { %p6880_p7 = pnand %p6878_p6, %p6875_p5 }
0x315b   :  { %6883 = shalt.err (!%p6880_p7)
}
0x315c   :  { %s6889_s10 = smov 128   ;;  %s6890_s3 = smov 8  }
0x315d   :  { %5283 = dma.vmem_to_hbm [thread:$0]  %s5278_s29, 512, %s9266_s12, [#allocation3], %s6889_s10, %s6889_s10, %s6890_s3  }
0x315e   :  { %6884 = dma.done.wait [#allocation3], 512  }
0x315f   :  { %6885 = vsyncadd [#allocation3], 4294966784 }
0x3160   :  { %5287 = vsyncpa [#allocation3], 1 }

</bundles_post_ra>
